<compile_context>
chip_gen: v7x
topology: tpu7x:2x2x1
jax: 0.10.0
libtpu: 0.0.40
codegen_flags: <defaults>
</compile_context>

<pallas_src>
import functools

import jax
import jax.numpy as jnp
from jax.experimental import pallas as pl
from jax.experimental.pallas import tpu as pltpu

NEG_SLOPE = 0.01   # nn.LeakyReLU default
EPS = 1e-5         # nn.InstanceNorm3d default (affine=False)

# Tap ordering k = kd*9 + kh*3 + kw, spatial offset = tap index - 1 (padding = 1).
_OFFSETS = [(kd - 1, kh - 1, kw - 1)
            for kd in range(3) for kh in range(3) for kw in range(3)]


def _round_up(x, m):
    return (x + m - 1) // m * m


def _packed_boundary_bits(D, H, W):
    """(1, D*H*W) int32; bit k is set where the tap-k 3-D neighbour is in range."""
    HW = H * W
    lane = jnp.arange(D * HW, dtype=jnp.int32)
    d = lane // HW
    h = (lane // W) % H
    w = lane % W
    bits = jnp.zeros((D * HW,), jnp.int32)
    for k, (od, oh, ow) in enumerate(_OFFSETS):
        m = ((d + od >= 0) & (d + od < D) &
             (h + oh >= 0) & (h + oh < H) &
             (w + ow >= 0) & (w + ow < W))
        bits = bits | (m.astype(jnp.int32) << k)
    return bits.reshape(1, D * HW)


def _conv_in_lrelu_stage(x, w_ref, slab_ref, bits, shifts, cin_p, dhw):
    """Conv3d(k3, p1, bias dropped) + InstanceNorm3d(affine=False) + LeakyReLU.

    x        : (cin_p, DHW) activation in the matmul compute dtype.
    w_ref    : (3, cout_p, 9*cin_p) weights; [kd, cout, (kh*3+kw)*cin_p + cin].
    slab_ref : (9*cmax_p, DHW) shared VMEM im2col scratch (first 9*cin_p rows used).
    bits     : (1, DHW) int32 packed per-tap boundary masks.
    Returns  : (cout_p, DHW) float32.
    """
    acc = None
    for g in range(3):                      # split-K: one group per kd plane
        for j in range(9):
            k = 9 * g + j
            od, oh, ow = _OFFSETS[k]
            if od == 0 and oh == 0 and ow == 0:
                chunk = x
            else:
                shifted = pltpu.roll(x, shifts[k], axis=1)        # XLU lane rotate
                mk = (bits & (1 << k)) != 0                       # (1, DHW) bool
                chunk = jnp.where(mk, shifted, jnp.zeros_like(shifted))
            slab_ref[pl.ds(j * cin_p, cin_p), :] = chunk.astype(slab_ref.dtype)
        # (cout_p, 9*cin_p) x (9*cin_p, DHW) -> (cout_p, DHW) f32 on the MXU.
        part = jnp.dot(w_ref[g], slab_ref[pl.ds(0, 9 * cin_p), :],
                       preferred_element_type=jnp.float32)
        acc = part if acc is None else acc + part
    # (Conv bias intentionally omitted: exactly cancelled by the mean subtraction.)

    # InstanceNorm3d (affine=False): one-pass sum / sum-of-squares, all f32.
    inv_n = 1.0 / dhw
    mean = jnp.sum(acc, axis=1, keepdims=True) * inv_n
    var = jnp.sum(acc * acc, axis=1, keepdims=True) * inv_n - mean * mean
    y = (acc - mean) * jax.lax.rsqrt(var + EPS)
    # LeakyReLU(0.01).
    return jnp.where(y >= 0, y, NEG_SLOPE * y)


def _double_conv_kernel(mask_ref, x_ref, w1_ref, w2_ref, o_ref, slab_ref, *,
                        D, H, W):
    HW = H * W
    DHW = D * HW
    cin_p = x_ref.shape[1]
    c1_p = w2_ref.shape[2] // 9
    # chunk[s] = x[s + delta]  <=>  roll by (-delta) mod DHW; OOB lanes are masked.
    shifts = [(-(od * HW + oh * W + ow)) % DHW for od, oh, ow in _OFFSETS]
    bits = mask_ref[...]                                          # (1, DHW) int32

    x = x_ref[0]                                                  # (cin_p, DHW)
    h = _conv_in_lrelu_stage(x, w1_ref, slab_ref, bits, shifts, cin_p, DHW)
    h = h.astype(slab_ref.dtype)
    y = _conv_in_lrelu_stage(h, w2_ref, slab_ref, bits, shifts, c1_p, DHW)
    o_ref[...] = y[None].astype(o_ref.dtype)


def _flatten_weight(w, cin_p, cout_p):
    """(Cout, Cin, 3,3,3) -> (3, Cout_p, 9*Cin_p); [kd, cout, (kh*3+kw)*Cin_p + cin]."""
    cout, cin = w.shape[0], w.shape[1]
    w = jnp.pad(w, ((0, cout_p - cout), (0, cin_p - cin), (0, 0), (0, 0), (0, 0)))
    w = jnp.transpose(w, (2, 0, 3, 4, 1))            # (kd, Cout_p, kh, kw, Cin_p)
    return w.reshape(3, cout_p, 9 * cin_p)


def double_conv3d(x_ncdhw, w1, b1, w2, b2, *, compute_dtype=jnp.bfloat16,
                  out_dtype=None):
    """Pallas forward of DoubleConv3D.  x_ncdhw: (N, Cin, D, H, W).

    Output dtype defaults to compute_dtype (bf16 fast path); upcast in the caller
    if f32 is required downstream.
    """
    # Per-channel conv bias is exactly removed by InstanceNorm's mean subtraction.
    # NOTE: this relies on InstanceNorm3d(affine=False) — the module default.
    del b1, b2
    if out_dtype is None:
        out_dtype = compute_dtype

    N, cin, D, H, W = x_ncdhw.shape
    c1, c2 = w1.shape[0], w2.shape[0]
    DHW = D * H * W
    itemsize = jnp.dtype(compute_dtype).itemsize
    out_itemsize = jnp.dtype(out_dtype).itemsize
    # Pad channels to the sublane-packing unit of the compute dtype (8 for f32,
    # 16 for bf16) so every slab store lands on a full unmasked tile.
    sub = 8 * (4 // itemsize)
    cin_p, c1_p, c2_p = _round_up(cin, sub), _round_up(c1, sub), _round_up(c2, sub)
    cmax_p = max(cin_p, c1_p)

    # NCDHW -> (N, Cin_p, D*H*W): zero channel pad + free reshape (no transpose,
    # no spatial padding; DHW sits on the lane axis).
    x = jnp.pad(x_ncdhw, ((0, 0), (0, cin_p - cin), (0, 0), (0, 0), (0, 0)))
    x = x.reshape(N, cin_p, DHW).astype(compute_dtype)

    w1f = _flatten_weight(w1, cin_p, c1_p).astype(compute_dtype)  # (3, C1_p, 9*Cin_p)
    w2f = _flatten_weight(w2, c1_p, c2_p).astype(compute_dtype)   # (3, C2_p, 9*C1_p)
    bits = _packed_boundary_bits(D, H, W)                         # (1, DHW) int32

    kernel = functools.partial(_double_conv_kernel, D=D, H=H, W=W)

    flops = 2 * N * DHW * 27 * (cin * c1 + c1 * c2)
    bytes_accessed = int(x.size * itemsize + (w1f.size + w2f.size) * itemsize
                         + bits.size * 4 + N * c2_p * DHW * out_itemsize)

    # Explicit VMEM budget (v7x scoped default is 32 MiB, physical only 64 MiB).
    slab_bytes = 9 * cmax_p * DHW * itemsize                      # shared scratch
    block_bytes = (2 * cin_p * DHW * itemsize                     # x (double-buffered)
                   + 2 * c2_p * DHW * out_itemsize                # output block
                   + 2 * DHW * 4                                  # bitmask block
                   + 2 * (w1f.size + w2f.size) * itemsize)        # weight blocks
    temp_bytes = 4 * (c1_p + c2_p) * DHW * 4                      # f32 acc / activations
    vmem_limit = int(1.5 * (slab_bytes + block_bytes + temp_bytes)) + (8 << 20)
    vmem_limit = max(16 << 20, min(vmem_limit, 64 << 20))

    out = pl.pallas_call(
        kernel,
        out_shape=jax.ShapeDtypeStruct((N, c2_p, DHW), out_dtype),
        grid_spec=pltpu.PrefetchScalarGridSpec(
            num_scalar_prefetch=0,
            grid=(N,),
            in_specs=[
                pl.BlockSpec((1, DHW), lambda n: (0, 0)),                 # tap bitmask
                pl.BlockSpec((1, cin_p, DHW), lambda n: (n, 0, 0)),       # activation
                pl.BlockSpec((3, c1_p, 9 * cin_p), lambda n: (0, 0, 0)),  # stage-1 W
                pl.BlockSpec((3, c2_p, 9 * c1_p), lambda n: (0, 0, 0)),   # stage-2 W
            ],
            out_specs=pl.BlockSpec((1, c2_p, DHW), lambda n: (n, 0, 0)),
            scratch_shapes=[
                # ONE shared im2col slab (9 taps of a kd group), reused by both stages.
                pltpu.VMEM((9 * cmax_p, DHW), compute_dtype),
            ],
        ),
        compiler_params=pltpu.CompilerParams(
            # Independent batch elements: shards the grid across both TCs on v7x.
            dimension_semantics=("parallel",),
            vmem_limit_bytes=vmem_limit,
        ),
        cost_estimate=pl.CostEstimate(
            flops=flops, transcendentals=0, bytes_accessed=bytes_accessed),
    )(bits, x, w1f, w2f)

    # TODO(synk): for much larger volumes (especially v7x's 64 MiB VMEM) add the
    # spatial-tiling fallback (D-tiles with 1-plane halo + two-pass InstanceNorm)
    # and/or fold several batch elements per grid step when N is tiny.
    return out[:, :c2, :].reshape(N, c2, D, H, W)


# ----------------------------- reference (pure JAX) -----------------------------
def _ref_stage(x, w, b):
    y = jax.lax.conv_general_dilated(
        x, w, window_strides=(1, 1, 1), padding=((1, 1), (1, 1), (1, 1)),
        dimension_numbers=("NCDHW", "OIDHW", "NCDHW"))
    y = y + b.reshape(1, -1, 1, 1, 1)
    mean = jnp.mean(y, axis=(2, 3, 4), keepdims=True)
    var = jnp.mean((y - mean) ** 2, axis=(2, 3, 4), keepdims=True)
    y = (y - mean) * jax.lax.rsqrt(var + EPS)
    return jnp.where(y >= 0, y, NEG_SLOPE * y)


def double_conv3d_ref(x, w1, b1, w2, b2):
    return _ref_stage(_ref_stage(x, w1, b1), w2, b2)


# ----------------------------------- main ---------------------------------------
if __name__ == "__main__":
    N, in_ch, out_ch, reduction = 2, 4, 8, 1
    hidden_ch = out_ch // reduction
    D = H = W = 8

    key = jax.random.PRNGKey(0)
    kx, kw1, kb1, kw2, kb2 = jax.random.split(key, 5)

    x = jax.random.normal(kx, (N, in_ch, D, H, W), dtype=jnp.float32)

    # PyTorch-default-style init: U(-1/sqrt(fan_in), 1/sqrt(fan_in)), fan_in = Cin*27.
    bound1 = 1.0 / jnp.sqrt(in_ch * 27.0)
    w1 = jax.random.uniform(kw1, (hidden_ch, in_ch, 3, 3, 3),
                            minval=-bound1, maxval=bound1, dtype=jnp.float32)
    b1 = jax.random.uniform(kb1, (hidden_ch,),
                            minval=-bound1, maxval=bound1, dtype=jnp.float32)
    bound2 = 1.0 / jnp.sqrt(hidden_ch * 27.0)
    w2 = jax.random.uniform(kw2, (out_ch, hidden_ch, 3, 3, 3),
                            minval=-bound2, maxval=bound2, dtype=jnp.float32)
    b2 = jax.random.uniform(kb2, (out_ch,),
                            minval=-bound2, maxval=bound2, dtype=jnp.float32)

    ref = jax.block_until_ready(double_conv3d_ref(x, w1, b1, w2, b2))

    # f32-compute path: tight check of the fused-kernel algorithm.
    out_f32 = jax.block_until_ready(
        double_conv3d(x, w1, b1, w2, b2, compute_dtype=jnp.float32))
    assert out_f32.shape == (N, out_ch, D, H, W), out_f32.shape
    err_f32 = float(jnp.max(jnp.abs(out_f32.astype(jnp.float32) - ref)))
    assert err_f32 < 1e-3, err_f32

    # bf16 MXU-input + bf16 output path (the fast configuration); looser tolerance.
    out_bf16 = jax.block_until_ready(
        double_conv3d(x, w1, b1, w2, b2, compute_dtype=jnp.bfloat16))
    assert out_bf16.shape == (N, out_ch, D, H, W), out_bf16.shape
    assert out_bf16.dtype == jnp.bfloat16, out_bf16.dtype
    err_bf16 = float(jnp.max(jnp.abs(out_bf16.astype(jnp.float32) - ref)))
    assert err_bf16 < 2e-1, err_bf16

    print("KERNEL_OK")
</pallas_src>

<mosaic_0001>
module attributes {stable_mosaic.version = 11 : i64} {
  func.func @_double_conv_kernel(%arg0: i32, %arg1: memref<1x512xi32, #tpu.memory_space<vmem>>, %arg2: memref<1x8x512xf32, #tpu.memory_space<vmem>>, %arg3: memref<3x8x72xf32, #tpu.memory_space<vmem>>, %arg4: memref<3x8x72xf32, #tpu.memory_space<vmem>>, %arg5: memref<1x8x512xf32, #tpu.memory_space<vmem>>, %arg6: memref<72x512xf32, #tpu.memory_space<vmem>>) attributes {dimension_semantics = [#tpu.dimension_semantics<parallel>], iteration_bounds = array<i64: 2>, scalar_prefetch = 0 : i64, scratch_operands = 1 : i64, tpu.core_type = #tpu.core_type<tc>, window_params = [{pipeline_mode = #tpu.pipeline_mode<synchronous>, transform_indices = @transform_0, window_bounds = array<i64: 1, 512>}, {transform_indices = @transform_1, window_bounds = array<i64: 1, 8, 512>}, {pipeline_mode = #tpu.pipeline_mode<synchronous>, transform_indices = @transform_2, window_bounds = array<i64: 3, 8, 72>}, {pipeline_mode = #tpu.pipeline_mode<synchronous>, transform_indices = @transform_3, window_bounds = array<i64: 3, 8, 72>}, {transform_indices = @transform_4, window_bounds = array<i64: 1, 8, 512>}]} {
    %c0 = arith.constant 0 : index
    %c0_0 = arith.constant 0 : index
    %0 = vector.load %arg1[%c0, %c0_0] : memref<1x512xi32, #tpu.memory_space<vmem>>, vector<1x512xi32>
    %c0_1 = arith.constant 0 : index
    %c0_2 = arith.constant 0 : index
    %c0_3 = arith.constant 0 : index
    %1 = vector.load %arg2[%c0_1, %c0_2, %c0_3] : memref<1x8x512xf32, #tpu.memory_space<vmem>>, vector<1x8x512xf32>
    %2 = vector.shape_cast %1 : vector<1x8x512xf32> to vector<8x512xf32>
    %c73_i32 = arith.constant 73 : i32
    %3 = tpu.dynamic_rotate %2 by %c73_i32 dim 1 : vector<8x512xf32>, i32 -> vector<8x512xf32>
    %c1_i32 = arith.constant 1 : i32
    %4 = vector.broadcast %c1_i32 : i32 to vector<1x512xi32>
    %5 = arith.andi %0, %4 : vector<1x512xi32>
    %c0_i32 = arith.constant 0 : i32
    %6 = vector.broadcast %c0_i32 : i32 to vector<1x512xi32>
    %7 = arith.cmpi ne, %5, %6 : vector<1x512xi32>
    %cst = arith.constant 0.000000e+00 : f32
    %8 = vector.broadcast %cst : f32 to vector<8x512xf32>
    %9 = vector.shape_cast %7 : vector<1x512xi1> to vector<1x512xi1>
    %10 = vector.broadcast %9 : vector<1x512xi1> to vector<8x512xi1>
    %11 = arith.select %10, %3, %8 : vector<8x512xi1>, vector<8x512xf32>
    %c0_4 = arith.constant 0 : index
    %c0_5 = arith.constant 0 : index
    %12 = vector.load %arg6[%c0_4, %c0_5] : memref<72x512xf32, #tpu.memory_space<vmem>>, vector<8x512xf32>
    tpu.vector_store %arg6[%c0_4, %c0_5], %11 {strides = array<i32>} : memref<72x512xf32, #tpu.memory_space<vmem>>, vector<8x512xf32>,
    %c72_i32 = arith.constant 72 : i32
    %13 = tpu.dynamic_rotate %2 by %c72_i32 dim 1 : vector<8x512xf32>, i32 -> vector<8x512xf32>
    %c2_i32 = arith.constant 2 : i32
    %14 = vector.broadcast %c2_i32 : i32 to vector<1x512xi32>
    %15 = arith.andi %0, %14 : vector<1x512xi32>
    %c0_i32_6 = arith.constant 0 : i32
    %16 = vector.broadcast %c0_i32_6 : i32 to vector<1x512xi32>
    %17 = arith.cmpi ne, %15, %16 : vector<1x512xi32>
    %cst_7 = arith.constant 0.000000e+00 : f32
    %18 = vector.broadcast %cst_7 : f32 to vector<8x512xf32>
    %19 = vector.shape_cast %17 : vector<1x512xi1> to vector<1x512xi1>
    %20 = vector.broadcast %19 : vector<1x512xi1> to vector<8x512xi1>
    %21 = arith.select %20, %13, %18 : vector<8x512xi1>, vector<8x512xf32>
    %c8 = arith.constant 8 : index
    %c0_8 = arith.constant 0 : index
    %22 = vector.load %arg6[%c8, %c0_8] : memref<72x512xf32, #tpu.memory_space<vmem>>, vector<8x512xf32>
    tpu.vector_store %arg6[%c8, %c0_8], %21 {strides = array<i32>} : memref<72x512xf32, #tpu.memory_space<vmem>>, vector<8x512xf32>,
    %c71_i32 = arith.constant 71 : i32
    %23 = tpu.dynamic_rotate %2 by %c71_i32 dim 1 : vector<8x512xf32>, i32 -> vector<8x512xf32>
    %c4_i32 = arith.constant 4 : i32
    %24 = vector.broadcast %c4_i32 : i32 to vector<1x512xi32>
    %25 = arith.andi %0, %24 : vector<1x512xi32>
    %c0_i32_9 = arith.constant 0 : i32
    %26 = vector.broadcast %c0_i32_9 : i32 to vector<1x512xi32>
    %27 = arith.cmpi ne, %25, %26 : vector<1x512xi32>
    %cst_10 = arith.constant 0.000000e+00 : f32
    %28 = vector.broadcast %cst_10 : f32 to vector<8x512xf32>
    %29 = vector.shape_cast %27 : vector<1x512xi1> to vector<1x512xi1>
    %30 = vector.broadcast %29 : vector<1x512xi1> to vector<8x512xi1>
    %31 = arith.select %30, %23, %28 : vector<8x512xi1>, vector<8x512xf32>
    %c16 = arith.constant 16 : index
    %c0_11 = arith.constant 0 : index
    %32 = vector.load %arg6[%c16, %c0_11] : memref<72x512xf32, #tpu.memory_space<vmem>>, vector<8x512xf32>
    tpu.vector_store %arg6[%c16, %c0_11], %31 {strides = array<i32>} : memref<72x512xf32, #tpu.memory_space<vmem>>, vector<8x512xf32>,
    %c65_i32 = arith.constant 65 : i32
    %33 = tpu.dynamic_rotate %2 by %c65_i32 dim 1 : vector<8x512xf32>, i32 -> vector<8x512xf32>
    %c8_i32 = arith.constant 8 : i32
    %34 = vector.broadcast %c8_i32 : i32 to vector<1x512xi32>
    %35 = arith.andi %0, %34 : vector<1x512xi32>
    %c0_i32_12 = arith.constant 0 : i32
    %36 = vector.broadcast %c0_i32_12 : i32 to vector<1x512xi32>
    %37 = arith.cmpi ne, %35, %36 : vector<1x512xi32>
    %cst_13 = arith.constant 0.000000e+00 : f32
    %38 = vector.broadcast %cst_13 : f32 to vector<8x512xf32>
    %39 = vector.shape_cast %37 : vector<1x512xi1> to vector<1x512xi1>
    %40 = vector.broadcast %39 : vector<1x512xi1> to vector<8x512xi1>
    %41 = arith.select %40, %33, %38 : vector<8x512xi1>, vector<8x512xf32>
    %c24 = arith.constant 24 : index
    %c0_14 = arith.constant 0 : index
    %42 = vector.load %arg6[%c24, %c0_14] : memref<72x512xf32, #tpu.memory_space<vmem>>, vector<8x512xf32>
    tpu.vector_store %arg6[%c24, %c0_14], %41 {strides = array<i32>} : memref<72x512xf32, #tpu.memory_space<vmem>>, vector<8x512xf32>,
    %c64_i32 = arith.constant 64 : i32
    %43 = tpu.dynamic_rotate %2 by %c64_i32 dim 1 : vector<8x512xf32>, i32 -> vector<8x512xf32>
    %c16_i32 = arith.constant 16 : i32
    %44 = vector.broadcast %c16_i32 : i32 to vector<1x512xi32>
    %45 = arith.andi %0, %44 : vector<1x512xi32>
    %c0_i32_15 = arith.constant 0 : i32
    %46 = vector.broadcast %c0_i32_15 : i32 to vector<1x512xi32>
    %47 = arith.cmpi ne, %45, %46 : vector<1x512xi32>
    %cst_16 = arith.constant 0.000000e+00 : f32
    %48 = vector.broadcast %cst_16 : f32 to vector<8x512xf32>
    %49 = vector.shape_cast %47 : vector<1x512xi1> to vector<1x512xi1>
    %50 = vector.broadcast %49 : vector<1x512xi1> to vector<8x512xi1>
    %51 = arith.select %50, %43, %48 : vector<8x512xi1>, vector<8x512xf32>
    %c32 = arith.constant 32 : index
    %c0_17 = arith.constant 0 : index
    %52 = vector.load %arg6[%c32, %c0_17] : memref<72x512xf32, #tpu.memory_space<vmem>>, vector<8x512xf32>
    tpu.vector_store %arg6[%c32, %c0_17], %51 {strides = array<i32>} : memref<72x512xf32, #tpu.memory_space<vmem>>, vector<8x512xf32>,
    %c63_i32 = arith.constant 63 : i32
    %53 = tpu.dynamic_rotate %2 by %c63_i32 dim 1 : vector<8x512xf32>, i32 -> vector<8x512xf32>
    %c32_i32 = arith.constant 32 : i32
    %54 = vector.broadcast %c32_i32 : i32 to vector<1x512xi32>
    %55 = arith.andi %0, %54 : vector<1x512xi32>
    %c0_i32_18 = arith.constant 0 : i32
    %56 = vector.broadcast %c0_i32_18 : i32 to vector<1x512xi32>
    %57 = arith.cmpi ne, %55, %56 : vector<1x512xi32>
    %cst_19 = arith.constant 0.000000e+00 : f32
    %58 = vector.broadcast %cst_19 : f32 to vector<8x512xf32>
    %59 = vector.shape_cast %57 : vector<1x512xi1> to vector<1x512xi1>
    %60 = vector.broadcast %59 : vector<1x512xi1> to vector<8x512xi1>
    %61 = arith.select %60, %53, %58 : vector<8x512xi1>, vector<8x512xf32>
    %c40 = arith.constant 40 : index
    %c0_20 = arith.constant 0 : index
    %62 = vector.load %arg6[%c40, %c0_20] : memref<72x512xf32, #tpu.memory_space<vmem>>, vector<8x512xf32>
    tpu.vector_store %arg6[%c40, %c0_20], %61 {strides = array<i32>} : memref<72x512xf32, #tpu.memory_space<vmem>>, vector<8x512xf32>,
    %c57_i32 = arith.constant 57 : i32
    %63 = tpu.dynamic_rotate %2 by %c57_i32 dim 1 : vector<8x512xf32>, i32 -> vector<8x512xf32>
    %c64_i32_21 = arith.constant 64 : i32
    %64 = vector.broadcast %c64_i32_21 : i32 to vector<1x512xi32>
    %65 = arith.andi %0, %64 : vector<1x512xi32>
    %c0_i32_22 = arith.constant 0 : i32
    %66 = vector.broadcast %c0_i32_22 : i32 to vector<1x512xi32>
    %67 = arith.cmpi ne, %65, %66 : vector<1x512xi32>
    %cst_23 = arith.constant 0.000000e+00 : f32
    %68 = vector.broadcast %cst_23 : f32 to vector<8x512xf32>
    %69 = vector.shape_cast %67 : vector<1x512xi1> to vector<1x512xi1>
    %70 = vector.broadcast %69 : vector<1x512xi1> to vector<8x512xi1>
    %71 = arith.select %70, %63, %68 : vector<8x512xi1>, vector<8x512xf32>
    %c48 = arith.constant 48 : index
    %c0_24 = arith.constant 0 : index
    %72 = vector.load %arg6[%c48, %c0_24] : memref<72x512xf32, #tpu.memory_space<vmem>>, vector<8x512xf32>
    tpu.vector_store %arg6[%c48, %c0_24], %71 {strides = array<i32>} : memref<72x512xf32, #tpu.memory_space<vmem>>, vector<8x512xf32>,
    %c56_i32 = arith.constant 56 : i32
    %73 = tpu.dynamic_rotate %2 by %c56_i32 dim 1 : vector<8x512xf32>, i32 -> vector<8x512xf32>
    %c128_i32 = arith.constant 128 : i32
    %74 = vector.broadcast %c128_i32 : i32 to vector<1x512xi32>
    %75 = arith.andi %0, %74 : vector<1x512xi32>
    %c0_i32_25 = arith.constant 0 : i32
    %76 = vector.broadcast %c0_i32_25 : i32 to vector<1x512xi32>
    %77 = arith.cmpi ne, %75, %76 : vector<1x512xi32>
    %cst_26 = arith.constant 0.000000e+00 : f32
    %78 = vector.broadcast %cst_26 : f32 to vector<8x512xf32>
    %79 = vector.shape_cast %77 : vector<1x512xi1> to vector<1x512xi1>
    %80 = vector.broadcast %79 : vector<1x512xi1> to vector<8x512xi1>
    %81 = arith.select %80, %73, %78 : vector<8x512xi1>, vector<8x512xf32>
    %c56 = arith.constant 56 : index
    %c0_27 = arith.constant 0 : index
    %82 = vector.load %arg6[%c56, %c0_27] : memref<72x512xf32, #tpu.memory_space<vmem>>, vector<8x512xf32>
    tpu.vector_store %arg6[%c56, %c0_27], %81 {strides = array<i32>} : memref<72x512xf32, #tpu.memory_space<vmem>>, vector<8x512xf32>,
    %c55_i32 = arith.constant 55 : i32
    %83 = tpu.dynamic_rotate %2 by %c55_i32 dim 1 : vector<8x512xf32>, i32 -> vector<8x512xf32>
    %c256_i32 = arith.constant 256 : i32
    %84 = vector.broadcast %c256_i32 : i32 to vector<1x512xi32>
    %85 = arith.andi %0, %84 : vector<1x512xi32>
    %c0_i32_28 = arith.constant 0 : i32
    %86 = vector.broadcast %c0_i32_28 : i32 to vector<1x512xi32>
    %87 = arith.cmpi ne, %85, %86 : vector<1x512xi32>
    %cst_29 = arith.constant 0.000000e+00 : f32
    %88 = vector.broadcast %cst_29 : f32 to vector<8x512xf32>
    %89 = vector.shape_cast %87 : vector<1x512xi1> to vector<1x512xi1>
    %90 = vector.broadcast %89 : vector<1x512xi1> to vector<8x512xi1>
    %91 = arith.select %90, %83, %88 : vector<8x512xi1>, vector<8x512xf32>
    %c64 = arith.constant 64 : index
    %c0_30 = arith.constant 0 : index
    %92 = vector.load %arg6[%c64, %c0_30] : memref<72x512xf32, #tpu.memory_space<vmem>>, vector<8x512xf32>
    tpu.vector_store %arg6[%c64, %c0_30], %91 {strides = array<i32>} : memref<72x512xf32, #tpu.memory_space<vmem>>, vector<8x512xf32>,
    %c0_31 = arith.constant 0 : index
    %c0_32 = arith.constant 0 : index
    %c0_33 = arith.constant 0 : index
    %93 = vector.load %arg3[%c0_31, %c0_32, %c0_33] : memref<3x8x72xf32, #tpu.memory_space<vmem>>, vector<1x8x72xf32>
    %94 = vector.shape_cast %93 : vector<1x8x72xf32> to vector<8x72xf32>
    %c0_34 = arith.constant 0 : index
    %c0_35 = arith.constant 0 : index
    %95 = vector.load %arg6[%c0_34, %c0_35] : memref<72x512xf32, #tpu.memory_space<vmem>>, vector<72x512xf32>
    %cst_36 = arith.constant dense<0.000000e+00> : vector<8x512xf32>
    %96 = tpu.matmul %94, %95, %cst_36 {dimension_numbers = #tpu.dot_dimension_numbers<[1], [0], [0], [1], [0, 0, 1, 1], [], []>} : vector<8x72xf32>, vector<72x512xf32>, vector<8x512xf32> -> vector<8x512xf32>
    %c9_i32 = arith.constant 9 : i32
    %97 = tpu.dynamic_rotate %2 by %c9_i32 dim 1 : vector<8x512xf32>, i32 -> vector<8x512xf32>
    %c512_i32 = arith.constant 512 : i32
    %98 = vector.broadcast %c512_i32 : i32 to vector<1x512xi32>
    %99 = arith.andi %0, %98 : vector<1x512xi32>
    %c0_i32_37 = arith.constant 0 : i32
    %100 = vector.broadcast %c0_i32_37 : i32 to vector<1x512xi32>
    %101 = arith.cmpi ne, %99, %100 : vector<1x512xi32>
    %cst_38 = arith.constant 0.000000e+00 : f32
    %102 = vector.broadcast %cst_38 : f32 to vector<8x512xf32>
    %103 = vector.shape_cast %101 : vector<1x512xi1> to vector<1x512xi1>
    %104 = vector.broadcast %103 : vector<1x512xi1> to vector<8x512xi1>
    %105 = arith.select %104, %97, %102 : vector<8x512xi1>, vector<8x512xf32>
    %c0_39 = arith.constant 0 : index
    %c0_40 = arith.constant 0 : index
    %106 = vector.load %arg6[%c0_39, %c0_40] : memref<72x512xf32, #tpu.memory_space<vmem>>, vector<8x512xf32>
    tpu.vector_store %arg6[%c0_39, %c0_40], %105 {strides = array<i32>} : memref<72x512xf32, #tpu.memory_space<vmem>>, vector<8x512xf32>,
    %c8_i32_41 = arith.constant 8 : i32
    %107 = tpu.dynamic_rotate %2 by %c8_i32_41 dim 1 : vector<8x512xf32>, i32 -> vector<8x512xf32>
    %c1024_i32 = arith.constant 1024 : i32
    %108 = vector.broadcast %c1024_i32 : i32 to vector<1x512xi32>
    %109 = arith.andi %0, %108 : vector<1x512xi32>
    %c0_i32_42 = arith.constant 0 : i32
    %110 = vector.broadcast %c0_i32_42 : i32 to vector<1x512xi32>
    %111 = arith.cmpi ne, %109, %110 : vector<1x512xi32>
    %cst_43 = arith.constant 0.000000e+00 : f32
    %112 = vector.broadcast %cst_43 : f32 to vector<8x512xf32>
    %113 = vector.shape_cast %111 : vector<1x512xi1> to vector<1x512xi1>
    %114 = vector.broadcast %113 : vector<1x512xi1> to vector<8x512xi1>
    %115 = arith.select %114, %107, %112 : vector<8x512xi1>, vector<8x512xf32>
    %c8_44 = arith.constant 8 : index
    %c0_45 = arith.constant 0 : index
    %116 = vector.load %arg6[%c8_44, %c0_45] : memref<72x512xf32, #tpu.memory_space<vmem>>, vector<8x512xf32>
    tpu.vector_store %arg6[%c8_44, %c0_45], %115 {strides = array<i32>} : memref<72x512xf32, #tpu.memory_space<vmem>>, vector<8x512xf32>,
    %c7_i32 = arith.constant 7 : i32
    %117 = tpu.dynamic_rotate %2 by %c7_i32 dim 1 : vector<8x512xf32>, i32 -> vector<8x512xf32>
    %c2048_i32 = arith.constant 2048 : i32
    %118 = vector.broadcast %c2048_i32 : i32 to vector<1x512xi32>
    %119 = arith.andi %0, %118 : vector<1x512xi32>
    %c0_i32_46 = arith.constant 0 : i32
    %120 = vector.broadcast %c0_i32_46 : i32 to vector<1x512xi32>
    %121 = arith.cmpi ne, %119, %120 : vector<1x512xi32>
    %cst_47 = arith.constant 0.000000e+00 : f32
    %122 = vector.broadcast %cst_47 : f32 to vector<8x512xf32>
    %123 = vector.shape_cast %121 : vector<1x512xi1> to vector<1x512xi1>
    %124 = vector.broadcast %123 : vector<1x512xi1> to vector<8x512xi1>
    %125 = arith.select %124, %117, %122 : vector<8x512xi1>, vector<8x512xf32>
    %c16_48 = arith.constant 16 : index
    %c0_49 = arith.constant 0 : index
    %126 = vector.load %arg6[%c16_48, %c0_49] : memref<72x512xf32, #tpu.memory_space<vmem>>, vector<8x512xf32>
    tpu.vector_store %arg6[%c16_48, %c0_49], %125 {strides = array<i32>} : memref<72x512xf32, #tpu.memory_space<vmem>>, vector<8x512xf32>,
    %c1_i32_50 = arith.constant 1 : i32
    %127 = tpu.dynamic_rotate %2 by %c1_i32_50 dim 1 : vector<8x512xf32>, i32 -> vector<8x512xf32>
    %c4096_i32 = arith.constant 4096 : i32
    %128 = vector.broadcast %c4096_i32 : i32 to vector<1x512xi32>
    %129 = arith.andi %0, %128 : vector<1x512xi32>
    %c0_i32_51 = arith.constant 0 : i32
    %130 = vector.broadcast %c0_i32_51 : i32 to vector<1x512xi32>
    %131 = arith.cmpi ne, %129, %130 : vector<1x512xi32>
    %cst_52 = arith.constant 0.000000e+00 : f32
    %132 = vector.broadcast %cst_52 : f32 to vector<8x512xf32>
    %133 = vector.shape_cast %131 : vector<1x512xi1> to vector<1x512xi1>
    %134 = vector.broadcast %133 : vector<1x512xi1> to vector<8x512xi1>
    %135 = arith.select %134, %127, %132 : vector<8x512xi1>, vector<8x512xf32>
    %c24_53 = arith.constant 24 : index
    %c0_54 = arith.constant 0 : index
    %136 = vector.load %arg6[%c24_53, %c0_54] : memref<72x512xf32, #tpu.memory_space<vmem>>, vector<8x512xf32>
    tpu.vector_store %arg6[%c24_53, %c0_54], %135 {strides = array<i32>} : memref<72x512xf32, #tpu.memory_space<vmem>>, vector<8x512xf32>,
    %c32_55 = arith.constant 32 : index
    %c0_56 = arith.constant 0 : index
    %137 = vector.load %arg6[%c32_55, %c0_56] : memref<72x512xf32, #tpu.memory_space<vmem>>, vector<8x512xf32>
    tpu.vector_store %arg6[%c32_55, %c0_56], %2 {strides = array<i32>} : memref<72x512xf32, #tpu.memory_space<vmem>>, vector<8x512xf32>,
    %c511_i32 = arith.constant 511 : i32
    %138 = tpu.dynamic_rotate %2 by %c511_i32 dim 1 : vector<8x512xf32>, i32 -> vector<8x512xf32>
    %c16384_i32 = arith.constant 16384 : i32
    %139 = vector.broadcast %c16384_i32 : i32 to vector<1x512xi32>
    %140 = arith.andi %0, %139 : vector<1x512xi32>
    %c0_i32_57 = arith.constant 0 : i32
    %141 = vector.broadcast %c0_i32_57 : i32 to vector<1x512xi32>
    %142 = arith.cmpi ne, %140, %141 : vector<1x512xi32>
    %cst_58 = arith.constant 0.000000e+00 : f32
    %143 = vector.broadcast %cst_58 : f32 to vector<8x512xf32>
    %144 = vector.shape_cast %142 : vector<1x512xi1> to vector<1x512xi1>
    %145 = vector.broadcast %144 : vector<1x512xi1> to vector<8x512xi1>
    %146 = arith.select %145, %138, %143 : vector<8x512xi1>, vector<8x512xf32>
    %c40_59 = arith.constant 40 : index
    %c0_60 = arith.constant 0 : index
    %147 = vector.load %arg6[%c40_59, %c0_60] : memref<72x512xf32, #tpu.memory_space<vmem>>, vector<8x512xf32>
    tpu.vector_store %arg6[%c40_59, %c0_60], %146 {strides = array<i32>} : memref<72x512xf32, #tpu.memory_space<vmem>>, vector<8x512xf32>,
    %c505_i32 = arith.constant 505 : i32
    %148 = tpu.dynamic_rotate %2 by %c505_i32 dim 1 : vector<8x512xf32>, i32 -> vector<8x512xf32>
    %c32768_i32 = arith.constant 32768 : i32
    %149 = vector.broadcast %c32768_i32 : i32 to vector<1x512xi32>
    %150 = arith.andi %0, %149 : vector<1x512xi32>
    %c0_i32_61 = arith.constant 0 : i32
    %151 = vector.broadcast %c0_i32_61 : i32 to vector<1x512xi32>
    %152 = arith.cmpi ne, %150, %151 : vector<1x512xi32>
    %cst_62 = arith.constant 0.000000e+00 : f32
    %153 = vector.broadcast %cst_62 : f32 to vector<8x512xf32>
    %154 = vector.shape_cast %152 : vector<1x512xi1> to vector<1x512xi1>
    %155 = vector.broadcast %154 : vector<1x512xi1> to vector<8x512xi1>
    %156 = arith.select %155, %148, %153 : vector<8x512xi1>, vector<8x512xf32>
    %c48_63 = arith.constant 48 : index
    %c0_64 = arith.constant 0 : index
    %157 = vector.load %arg6[%c48_63, %c0_64] : memref<72x512xf32, #tpu.memory_space<vmem>>, vector<8x512xf32>
    tpu.vector_store %arg6[%c48_63, %c0_64], %156 {strides = array<i32>} : memref<72x512xf32, #tpu.memory_space<vmem>>, vector<8x512xf32>,
    %c504_i32 = arith.constant 504 : i32
    %158 = tpu.dynamic_rotate %2 by %c504_i32 dim 1 : vector<8x512xf32>, i32 -> vector<8x512xf32>
    %c65536_i32 = arith.constant 65536 : i32
    %159 = vector.broadcast %c65536_i32 : i32 to vector<1x512xi32>
    %160 = arith.andi %0, %159 : vector<1x512xi32>
    %c0_i32_65 = arith.constant 0 : i32
    %161 = vector.broadcast %c0_i32_65 : i32 to vector<1x512xi32>
    %162 = arith.cmpi ne, %160, %161 : vector<1x512xi32>
    %cst_66 = arith.constant 0.000000e+00 : f32
    %163 = vector.broadcast %cst_66 : f32 to vector<8x512xf32>
    %164 = vector.shape_cast %162 : vector<1x512xi1> to vector<1x512xi1>
    %165 = vector.broadcast %164 : vector<1x512xi1> to vector<8x512xi1>
    %166 = arith.select %165, %158, %163 : vector<8x512xi1>, vector<8x512xf32>
    %c56_67 = arith.constant 56 : index
    %c0_68 = arith.constant 0 : index
    %167 = vector.load %arg6[%c56_67, %c0_68] : memref<72x512xf32, #tpu.memory_space<vmem>>, vector<8x512xf32>
    tpu.vector_store %arg6[%c56_67, %c0_68], %166 {strides = array<i32>} : memref<72x512xf32, #tpu.memory_space<vmem>>, vector<8x512xf32>,
    %c503_i32 = arith.constant 503 : i32
    %168 = tpu.dynamic_rotate %2 by %c503_i32 dim 1 : vector<8x512xf32>, i32 -> vector<8x512xf32>
    %c131072_i32 = arith.constant 131072 : i32
    %169 = vector.broadcast %c131072_i32 : i32 to vector<1x512xi32>
    %170 = arith.andi %0, %169 : vector<1x512xi32>
    %c0_i32_69 = arith.constant 0 : i32
    %171 = vector.broadcast %c0_i32_69 : i32 to vector<1x512xi32>
    %172 = arith.cmpi ne, %170, %171 : vector<1x512xi32>
    %cst_70 = arith.constant 0.000000e+00 : f32
    %173 = vector.broadcast %cst_70 : f32 to vector<8x512xf32>
    %174 = vector.shape_cast %172 : vector<1x512xi1> to vector<1x512xi1>
    %175 = vector.broadcast %174 : vector<1x512xi1> to vector<8x512xi1>
    %176 = arith.select %175, %168, %173 : vector<8x512xi1>, vector<8x512xf32>
    %c64_71 = arith.constant 64 : index
    %c0_72 = arith.constant 0 : index
    %177 = vector.load %arg6[%c64_71, %c0_72] : memref<72x512xf32, #tpu.memory_space<vmem>>, vector<8x512xf32>
    tpu.vector_store %arg6[%c64_71, %c0_72], %176 {strides = array<i32>} : memref<72x512xf32, #tpu.memory_space<vmem>>, vector<8x512xf32>,
    %c1 = arith.constant 1 : index
    %c0_73 = arith.constant 0 : index
    %c0_74 = arith.constant 0 : index
    %178 = vector.load %arg3[%c1, %c0_73, %c0_74] : memref<3x8x72xf32, #tpu.memory_space<vmem>>, vector<1x8x72xf32>
    %179 = vector.shape_cast %178 : vector<1x8x72xf32> to vector<8x72xf32>
    %c0_75 = arith.constant 0 : index
    %c0_76 = arith.constant 0 : index
    %180 = vector.load %arg6[%c0_75, %c0_76] : memref<72x512xf32, #tpu.memory_space<vmem>>, vector<72x512xf32>
    %cst_77 = arith.constant dense<0.000000e+00> : vector<8x512xf32>
    %181 = tpu.matmul %179, %180, %cst_77 {dimension_numbers = #tpu.dot_dimension_numbers<[1], [0], [0], [1], [0, 0, 1, 1], [], []>} : vector<8x72xf32>, vector<72x512xf32>, vector<8x512xf32> -> vector<8x512xf32>
    %182 = arith.addf %96, %181 : vector<8x512xf32>
    %c457_i32 = arith.constant 457 : i32
    %183 = tpu.dynamic_rotate %2 by %c457_i32 dim 1 : vector<8x512xf32>, i32 -> vector<8x512xf32>
    %c262144_i32 = arith.constant 262144 : i32
    %184 = vector.broadcast %c262144_i32 : i32 to vector<1x512xi32>
    %185 = arith.andi %0, %184 : vector<1x512xi32>
    %c0_i32_78 = arith.constant 0 : i32
    %186 = vector.broadcast %c0_i32_78 : i32 to vector<1x512xi32>
    %187 = arith.cmpi ne, %185, %186 : vector<1x512xi32>
    %cst_79 = arith.constant 0.000000e+00 : f32
    %188 = vector.broadcast %cst_79 : f32 to vector<8x512xf32>
    %189 = vector.shape_cast %187 : vector<1x512xi1> to vector<1x512xi1>
    %190 = vector.broadcast %189 : vector<1x512xi1> to vector<8x512xi1>
    %191 = arith.select %190, %183, %188 : vector<8x512xi1>, vector<8x512xf32>
    %c0_80 = arith.constant 0 : index
    %c0_81 = arith.constant 0 : index
    %192 = vector.load %arg6[%c0_80, %c0_81] : memref<72x512xf32, #tpu.memory_space<vmem>>, vector<8x512xf32>
    tpu.vector_store %arg6[%c0_80, %c0_81], %191 {strides = array<i32>} : memref<72x512xf32, #tpu.memory_space<vmem>>, vector<8x512xf32>,
    %c456_i32 = arith.constant 456 : i32
    %193 = tpu.dynamic_rotate %2 by %c456_i32 dim 1 : vector<8x512xf32>, i32 -> vector<8x512xf32>
    %c524288_i32 = arith.constant 524288 : i32
    %194 = vector.broadcast %c524288_i32 : i32 to vector<1x512xi32>
    %195 = arith.andi %0, %194 : vector<1x512xi32>
    %c0_i32_82 = arith.constant 0 : i32
    %196 = vector.broadcast %c0_i32_82 : i32 to vector<1x512xi32>
    %197 = arith.cmpi ne, %195, %196 : vector<1x512xi32>
    %cst_83 = arith.constant 0.000000e+00 : f32
    %198 = vector.broadcast %cst_83 : f32 to vector<8x512xf32>
    %199 = vector.shape_cast %197 : vector<1x512xi1> to vector<1x512xi1>
    %200 = vector.broadcast %199 : vector<1x512xi1> to vector<8x512xi1>
    %201 = arith.select %200, %193, %198 : vector<8x512xi1>, vector<8x512xf32>
    %c8_84 = arith.constant 8 : index
    %c0_85 = arith.constant 0 : index
    %202 = vector.load %arg6[%c8_84, %c0_85] : memref<72x512xf32, #tpu.memory_space<vmem>>, vector<8x512xf32>
    tpu.vector_store %arg6[%c8_84, %c0_85], %201 {strides = array<i32>} : memref<72x512xf32, #tpu.memory_space<vmem>>, vector<8x512xf32>,
    %c455_i32 = arith.constant 455 : i32
    %203 = tpu.dynamic_rotate %2 by %c455_i32 dim 1 : vector<8x512xf32>, i32 -> vector<8x512xf32>
    %c1048576_i32 = arith.constant 1048576 : i32
    %204 = vector.broadcast %c1048576_i32 : i32 to vector<1x512xi32>
    %205 = arith.andi %0, %204 : vector<1x512xi32>
    %c0_i32_86 = arith.constant 0 : i32
    %206 = vector.broadcast %c0_i32_86 : i32 to vector<1x512xi32>
    %207 = arith.cmpi ne, %205, %206 : vector<1x512xi32>
    %cst_87 = arith.constant 0.000000e+00 : f32
    %208 = vector.broadcast %cst_87 : f32 to vector<8x512xf32>
    %209 = vector.shape_cast %207 : vector<1x512xi1> to vector<1x512xi1>
    %210 = vector.broadcast %209 : vector<1x512xi1> to vector<8x512xi1>
    %211 = arith.select %210, %203, %208 : vector<8x512xi1>, vector<8x512xf32>
    %c16_88 = arith.constant 16 : index
    %c0_89 = arith.constant 0 : index
    %212 = vector.load %arg6[%c16_88, %c0_89] : memref<72x512xf32, #tpu.memory_space<vmem>>, vector<8x512xf32>
    tpu.vector_store %arg6[%c16_88, %c0_89], %211 {strides = array<i32>} : memref<72x512xf32, #tpu.memory_space<vmem>>, vector<8x512xf32>,
    %c449_i32 = arith.constant 449 : i32
    %213 = tpu.dynamic_rotate %2 by %c449_i32 dim 1 : vector<8x512xf32>, i32 -> vector<8x512xf32>
    %c2097152_i32 = arith.constant 2097152 : i32
    %214 = vector.broadcast %c2097152_i32 : i32 to vector<1x512xi32>
    %215 = arith.andi %0, %214 : vector<1x512xi32>
    %c0_i32_90 = arith.constant 0 : i32
    %216 = vector.broadcast %c0_i32_90 : i32 to vector<1x512xi32>
    %217 = arith.cmpi ne, %215, %216 : vector<1x512xi32>
    %cst_91 = arith.constant 0.000000e+00 : f32
    %218 = vector.broadcast %cst_91 : f32 to vector<8x512xf32>
    %219 = vector.shape_cast %217 : vector<1x512xi1> to vector<1x512xi1>
    %220 = vector.broadcast %219 : vector<1x512xi1> to vector<8x512xi1>
    %221 = arith.select %220, %213, %218 : vector<8x512xi1>, vector<8x512xf32>
    %c24_92 = arith.constant 24 : index
    %c0_93 = arith.constant 0 : index
    %222 = vector.load %arg6[%c24_92, %c0_93] : memref<72x512xf32, #tpu.memory_space<vmem>>, vector<8x512xf32>
    tpu.vector_store %arg6[%c24_92, %c0_93], %221 {strides = array<i32>} : memref<72x512xf32, #tpu.memory_space<vmem>>, vector<8x512xf32>,
    %c448_i32 = arith.constant 448 : i32
    %223 = tpu.dynamic_rotate %2 by %c448_i32 dim 1 : vector<8x512xf32>, i32 -> vector<8x512xf32>
    %c4194304_i32 = arith.constant 4194304 : i32
    %224 = vector.broadcast %c4194304_i32 : i32 to vector<1x512xi32>
    %225 = arith.andi %0, %224 : vector<1x512xi32>
    %c0_i32_94 = arith.constant 0 : i32
    %226 = vector.broadcast %c0_i32_94 : i32 to vector<1x512xi32>
    %227 = arith.cmpi ne, %225, %226 : vector<1x512xi32>
    %cst_95 = arith.constant 0.000000e+00 : f32
    %228 = vector.broadcast %cst_95 : f32 to vector<8x512xf32>
    %229 = vector.shape_cast %227 : vector<1x512xi1> to vector<1x512xi1>
    %230 = vector.broadcast %229 : vector<1x512xi1> to vector<8x512xi1>
    %231 = arith.select %230, %223, %228 : vector<8x512xi1>, vector<8x512xf32>
    %c32_96 = arith.constant 32 : index
    %c0_97 = arith.constant 0 : index
    %232 = vector.load %arg6[%c32_96, %c0_97] : memref<72x512xf32, #tpu.memory_space<vmem>>, vector<8x512xf32>
    tpu.vector_store %arg6[%c32_96, %c0_97], %231 {strides = array<i32>} : memref<72x512xf32, #tpu.memory_space<vmem>>, vector<8x512xf32>,
    %c447_i32 = arith.constant 447 : i32
    %233 = tpu.dynamic_rotate %2 by %c447_i32 dim 1 : vector<8x512xf32>, i32 -> vector<8x512xf32>
    %c8388608_i32 = arith.constant 8388608 : i32
    %234 = vector.broadcast %c8388608_i32 : i32 to vector<1x512xi32>
    %235 = arith.andi %0, %234 : vector<1x512xi32>
    %c0_i32_98 = arith.constant 0 : i32
    %236 = vector.broadcast %c0_i32_98 : i32 to vector<1x512xi32>
    %237 = arith.cmpi ne, %235, %236 : vector<1x512xi32>
    %cst_99 = arith.constant 0.000000e+00 : f32
    %238 = vector.broadcast %cst_99 : f32 to vector<8x512xf32>
    %239 = vector.shape_cast %237 : vector<1x512xi1> to vector<1x512xi1>
    %240 = vector.broadcast %239 : vector<1x512xi1> to vector<8x512xi1>
    %241 = arith.select %240, %233, %238 : vector<8x512xi1>, vector<8x512xf32>
    %c40_100 = arith.constant 40 : index
    %c0_101 = arith.constant 0 : index
    %242 = vector.load %arg6[%c40_100, %c0_101] : memref<72x512xf32, #tpu.memory_space<vmem>>, vector<8x512xf32>
    tpu.vector_store %arg6[%c40_100, %c0_101], %241 {strides = array<i32>} : memref<72x512xf32, #tpu.memory_space<vmem>>, vector<8x512xf32>,
    %c441_i32 = arith.constant 441 : i32
    %243 = tpu.dynamic_rotate %2 by %c441_i32 dim 1 : vector<8x512xf32>, i32 -> vector<8x512xf32>
    %c16777216_i32 = arith.constant 16777216 : i32
    %244 = vector.broadcast %c16777216_i32 : i32 to vector<1x512xi32>
    %245 = arith.andi %0, %244 : vector<1x512xi32>
    %c0_i32_102 = arith.constant 0 : i32
    %246 = vector.broadcast %c0_i32_102 : i32 to vector<1x512xi32>
    %247 = arith.cmpi ne, %245, %246 : vector<1x512xi32>
    %cst_103 = arith.constant 0.000000e+00 : f32
    %248 = vector.broadcast %cst_103 : f32 to vector<8x512xf32>
    %249 = vector.shape_cast %247 : vector<1x512xi1> to vector<1x512xi1>
    %250 = vector.broadcast %249 : vector<1x512xi1> to vector<8x512xi1>
    %251 = arith.select %250, %243, %248 : vector<8x512xi1>, vector<8x512xf32>
    %c48_104 = arith.constant 48 : index
    %c0_105 = arith.constant 0 : index
    %252 = vector.load %arg6[%c48_104, %c0_105] : memref<72x512xf32, #tpu.memory_space<vmem>>, vector<8x512xf32>
    tpu.vector_store %arg6[%c48_104, %c0_105], %251 {strides = array<i32>} : memref<72x512xf32, #tpu.memory_space<vmem>>, vector<8x512xf32>,
    %c440_i32 = arith.constant 440 : i32
    %253 = tpu.dynamic_rotate %2 by %c440_i32 dim 1 : vector<8x512xf32>, i32 -> vector<8x512xf32>
    %c33554432_i32 = arith.constant 33554432 : i32
    %254 = vector.broadcast %c33554432_i32 : i32 to vector<1x512xi32>
    %255 = arith.andi %0, %254 : vector<1x512xi32>
    %c0_i32_106 = arith.constant 0 : i32
    %256 = vector.broadcast %c0_i32_106 : i32 to vector<1x512xi32>
    %257 = arith.cmpi ne, %255, %256 : vector<1x512xi32>
    %cst_107 = arith.constant 0.000000e+00 : f32
    %258 = vector.broadcast %cst_107 : f32 to vector<8x512xf32>
    %259 = vector.shape_cast %257 : vector<1x512xi1> to vector<1x512xi1>
    %260 = vector.broadcast %259 : vector<1x512xi1> to vector<8x512xi1>
    %261 = arith.select %260, %253, %258 : vector<8x512xi1>, vector<8x512xf32>
    %c56_108 = arith.constant 56 : index
    %c0_109 = arith.constant 0 : index
    %262 = vector.load %arg6[%c56_108, %c0_109] : memref<72x512xf32, #tpu.memory_space<vmem>>, vector<8x512xf32>
    tpu.vector_store %arg6[%c56_108, %c0_109], %261 {strides = array<i32>} : memref<72x512xf32, #tpu.memory_space<vmem>>, vector<8x512xf32>,
    %c439_i32 = arith.constant 439 : i32
    %263 = tpu.dynamic_rotate %2 by %c439_i32 dim 1 : vector<8x512xf32>, i32 -> vector<8x512xf32>
    %c67108864_i32 = arith.constant 67108864 : i32
    %264 = vector.broadcast %c67108864_i32 : i32 to vector<1x512xi32>
    %265 = arith.andi %0, %264 : vector<1x512xi32>
    %c0_i32_110 = arith.constant 0 : i32
    %266 = vector.broadcast %c0_i32_110 : i32 to vector<1x512xi32>
    %267 = arith.cmpi ne, %265, %266 : vector<1x512xi32>
    %cst_111 = arith.constant 0.000000e+00 : f32
    %268 = vector.broadcast %cst_111 : f32 to vector<8x512xf32>
    %269 = vector.shape_cast %267 : vector<1x512xi1> to vector<1x512xi1>
    %270 = vector.broadcast %269 : vector<1x512xi1> to vector<8x512xi1>
    %271 = arith.select %270, %263, %268 : vector<8x512xi1>, vector<8x512xf32>
    %c64_112 = arith.constant 64 : index
    %c0_113 = arith.constant 0 : index
    %272 = vector.load %arg6[%c64_112, %c0_113] : memref<72x512xf32, #tpu.memory_space<vmem>>, vector<8x512xf32>
    tpu.vector_store %arg6[%c64_112, %c0_113], %271 {strides = array<i32>} : memref<72x512xf32, #tpu.memory_space<vmem>>, vector<8x512xf32>,
    %c2 = arith.constant 2 : index
    %c0_114 = arith.constant 0 : index
    %c0_115 = arith.constant 0 : index
    %273 = vector.load %arg3[%c2, %c0_114, %c0_115] : memref<3x8x72xf32, #tpu.memory_space<vmem>>, vector<1x8x72xf32>
    %274 = vector.shape_cast %273 : vector<1x8x72xf32> to vector<8x72xf32>
    %c0_116 = arith.constant 0 : index
    %c0_117 = arith.constant 0 : index
    %275 = vector.load %arg6[%c0_116, %c0_117] : memref<72x512xf32, #tpu.memory_space<vmem>>, vector<72x512xf32>
    %cst_118 = arith.constant dense<0.000000e+00> : vector<8x512xf32>
    %276 = tpu.matmul %274, %275, %cst_118 {dimension_numbers = #tpu.dot_dimension_numbers<[1], [0], [0], [1], [0, 0, 1, 1], [], []>} : vector<8x72xf32>, vector<72x512xf32>, vector<8x512xf32> -> vector<8x512xf32>
    %277 = arith.addf %182, %276 : vector<8x512xf32>
    %cst_119 = arith.constant dense<0.000000e+00> : vector<8xf32>
    %278 = vector.multi_reduction <add>, %277, %cst_119 [1] : vector<8x512xf32> to vector<8xf32>
    %279 = vector.shape_cast %278 : vector<8xf32> to vector<8x1xf32>
    %cst_120 = arith.constant 0.001953125 : f32
    %280 = vector.broadcast %cst_120 : f32 to vector<8x1xf32>
    %281 = arith.mulf %279, %280 : vector<8x1xf32>
    %282 = arith.mulf %277, %277 : vector<8x512xf32>
    %cst_121 = arith.constant dense<0.000000e+00> : vector<8xf32>
    %283 = vector.multi_reduction <add>, %282, %cst_121 [1] : vector<8x512xf32> to vector<8xf32>
    %284 = vector.shape_cast %283 : vector<8xf32> to vector<8x1xf32>
    %cst_122 = arith.constant 0.001953125 : f32
    %285 = vector.broadcast %cst_122 : f32 to vector<8x1xf32>
    %286 = arith.mulf %284, %285 : vector<8x1xf32>
    %287 = arith.mulf %281, %281 : vector<8x1xf32>
    %288 = arith.subf %286, %287 : vector<8x1xf32>
    %289 = vector.broadcast %281 : vector<8x1xf32> to vector<8x512xf32>
    %290 = arith.subf %277, %289 : vector<8x512xf32>
    %cst_123 = arith.constant 9.99999974E-6 : f32
    %291 = vector.broadcast %cst_123 : f32 to vector<8x1xf32>
    %292 = arith.addf %288, %291 : vector<8x1xf32>
    %293 = math.rsqrt %292 : vector<8x1xf32>
    %294 = vector.broadcast %293 : vector<8x1xf32> to vector<8x512xf32>
    %295 = arith.mulf %290, %294 : vector<8x512xf32>
    %cst_124 = arith.constant 0.000000e+00 : f32
    %296 = vector.broadcast %cst_124 : f32 to vector<8x512xf32>
    %297 = arith.cmpf oge, %295, %296 : vector<8x512xf32>
    %cst_125 = arith.constant 0.00999999977 : f32
    %298 = vector.broadcast %cst_125 : f32 to vector<8x512xf32>
    %299 = arith.mulf %298, %295 : vector<8x512xf32>
    %300 = arith.select %297, %295, %299 : vector<8x512xi1>, vector<8x512xf32>
    %c73_i32_126 = arith.constant 73 : i32
    %301 = tpu.dynamic_rotate %300 by %c73_i32_126 dim 1 : vector<8x512xf32>, i32 -> vector<8x512xf32>
    %c1_i32_127 = arith.constant 1 : i32
    %302 = vector.broadcast %c1_i32_127 : i32 to vector<1x512xi32>
    %303 = arith.andi %0, %302 : vector<1x512xi32>
    %c0_i32_128 = arith.constant 0 : i32
    %304 = vector.broadcast %c0_i32_128 : i32 to vector<1x512xi32>
    %305 = arith.cmpi ne, %303, %304 : vector<1x512xi32>
    %cst_129 = arith.constant 0.000000e+00 : f32
    %306 = vector.broadcast %cst_129 : f32 to vector<8x512xf32>
    %307 = vector.shape_cast %305 : vector<1x512xi1> to vector<1x512xi1>
    %308 = vector.broadcast %307 : vector<1x512xi1> to vector<8x512xi1>
    %309 = arith.select %308, %301, %306 : vector<8x512xi1>, vector<8x512xf32>
    %c0_130 = arith.constant 0 : index
    %c0_131 = arith.constant 0 : index
    %310 = vector.load %arg6[%c0_130, %c0_131] : memref<72x512xf32, #tpu.memory_space<vmem>>, vector<8x512xf32>
    tpu.vector_store %arg6[%c0_130, %c0_131], %309 {strides = array<i32>} : memref<72x512xf32, #tpu.memory_space<vmem>>, vector<8x512xf32>,
    %c72_i32_132 = arith.constant 72 : i32
    %311 = tpu.dynamic_rotate %300 by %c72_i32_132 dim 1 : vector<8x512xf32>, i32 -> vector<8x512xf32>
    %c2_i32_133 = arith.constant 2 : i32
    %312 = vector.broadcast %c2_i32_133 : i32 to vector<1x512xi32>
    %313 = arith.andi %0, %312 : vector<1x512xi32>
    %c0_i32_134 = arith.constant 0 : i32
    %314 = vector.broadcast %c0_i32_134 : i32 to vector<1x512xi32>
    %315 = arith.cmpi ne, %313, %314 : vector<1x512xi32>
    %cst_135 = arith.constant 0.000000e+00 : f32
    %316 = vector.broadcast %cst_135 : f32 to vector<8x512xf32>
    %317 = vector.shape_cast %315 : vector<1x512xi1> to vector<1x512xi1>
    %318 = vector.broadcast %317 : vector<1x512xi1> to vector<8x512xi1>
    %319 = arith.select %318, %311, %316 : vector<8x512xi1>, vector<8x512xf32>
    %c8_136 = arith.constant 8 : index
    %c0_137 = arith.constant 0 : index
    %320 = vector.load %arg6[%c8_136, %c0_137] : memref<72x512xf32, #tpu.memory_space<vmem>>, vector<8x512xf32>
    tpu.vector_store %arg6[%c8_136, %c0_137], %319 {strides = array<i32>} : memref<72x512xf32, #tpu.memory_space<vmem>>, vector<8x512xf32>,
    %c71_i32_138 = arith.constant 71 : i32
    %321 = tpu.dynamic_rotate %300 by %c71_i32_138 dim 1 : vector<8x512xf32>, i32 -> vector<8x512xf32>
    %c4_i32_139 = arith.constant 4 : i32
    %322 = vector.broadcast %c4_i32_139 : i32 to vector<1x512xi32>
    %323 = arith.andi %0, %322 : vector<1x512xi32>
    %c0_i32_140 = arith.constant 0 : i32
    %324 = vector.broadcast %c0_i32_140 : i32 to vector<1x512xi32>
    %325 = arith.cmpi ne, %323, %324 : vector<1x512xi32>
    %cst_141 = arith.constant 0.000000e+00 : f32
    %326 = vector.broadcast %cst_141 : f32 to vector<8x512xf32>
    %327 = vector.shape_cast %325 : vector<1x512xi1> to vector<1x512xi1>
    %328 = vector.broadcast %327 : vector<1x512xi1> to vector<8x512xi1>
    %329 = arith.select %328, %321, %326 : vector<8x512xi1>, vector<8x512xf32>
    %c16_142 = arith.constant 16 : index
    %c0_143 = arith.constant 0 : index
    %330 = vector.load %arg6[%c16_142, %c0_143] : memref<72x512xf32, #tpu.memory_space<vmem>>, vector<8x512xf32>
    tpu.vector_store %arg6[%c16_142, %c0_143], %329 {strides = array<i32>} : memref<72x512xf32, #tpu.memory_space<vmem>>, vector<8x512xf32>,
    %c65_i32_144 = arith.constant 65 : i32
    %331 = tpu.dynamic_rotate %300 by %c65_i32_144 dim 1 : vector<8x512xf32>, i32 -> vector<8x512xf32>
    %c8_i32_145 = arith.constant 8 : i32
    %332 = vector.broadcast %c8_i32_145 : i32 to vector<1x512xi32>
    %333 = arith.andi %0, %332 : vector<1x512xi32>
    %c0_i32_146 = arith.constant 0 : i32
    %334 = vector.broadcast %c0_i32_146 : i32 to vector<1x512xi32>
    %335 = arith.cmpi ne, %333, %334 : vector<1x512xi32>
    %cst_147 = arith.constant 0.000000e+00 : f32
    %336 = vector.broadcast %cst_147 : f32 to vector<8x512xf32>
    %337 = vector.shape_cast %335 : vector<1x512xi1> to vector<1x512xi1>
    %338 = vector.broadcast %337 : vector<1x512xi1> to vector<8x512xi1>
    %339 = arith.select %338, %331, %336 : vector<8x512xi1>, vector<8x512xf32>
    %c24_148 = arith.constant 24 : index
    %c0_149 = arith.constant 0 : index
    %340 = vector.load %arg6[%c24_148, %c0_149] : memref<72x512xf32, #tpu.memory_space<vmem>>, vector<8x512xf32>
    tpu.vector_store %arg6[%c24_148, %c0_149], %339 {strides = array<i32>} : memref<72x512xf32, #tpu.memory_space<vmem>>, vector<8x512xf32>,
    %c64_i32_150 = arith.constant 64 : i32
    %341 = tpu.dynamic_rotate %300 by %c64_i32_150 dim 1 : vector<8x512xf32>, i32 -> vector<8x512xf32>
    %c16_i32_151 = arith.constant 16 : i32
    %342 = vector.broadcast %c16_i32_151 : i32 to vector<1x512xi32>
    %343 = arith.andi %0, %342 : vector<1x512xi32>
    %c0_i32_152 = arith.constant 0 : i32
    %344 = vector.broadcast %c0_i32_152 : i32 to vector<1x512xi32>
    %345 = arith.cmpi ne, %343, %344 : vector<1x512xi32>
    %cst_153 = arith.constant 0.000000e+00 : f32
    %346 = vector.broadcast %cst_153 : f32 to vector<8x512xf32>
    %347 = vector.shape_cast %345 : vector<1x512xi1> to vector<1x512xi1>
    %348 = vector.broadcast %347 : vector<1x512xi1> to vector<8x512xi1>
    %349 = arith.select %348, %341, %346 : vector<8x512xi1>, vector<8x512xf32>
    %c32_154 = arith.constant 32 : index
    %c0_155 = arith.constant 0 : index
    %350 = vector.load %arg6[%c32_154, %c0_155] : memref<72x512xf32, #tpu.memory_space<vmem>>, vector<8x512xf32>
    tpu.vector_store %arg6[%c32_154, %c0_155], %349 {strides = array<i32>} : memref<72x512xf32, #tpu.memory_space<vmem>>, vector<8x512xf32>,
    %c63_i32_156 = arith.constant 63 : i32
    %351 = tpu.dynamic_rotate %300 by %c63_i32_156 dim 1 : vector<8x512xf32>, i32 -> vector<8x512xf32>
    %c32_i32_157 = arith.constant 32 : i32
    %352 = vector.broadcast %c32_i32_157 : i32 to vector<1x512xi32>
    %353 = arith.andi %0, %352 : vector<1x512xi32>
    %c0_i32_158 = arith.constant 0 : i32
    %354 = vector.broadcast %c0_i32_158 : i32 to vector<1x512xi32>
    %355 = arith.cmpi ne, %353, %354 : vector<1x512xi32>
    %cst_159 = arith.constant 0.000000e+00 : f32
    %356 = vector.broadcast %cst_159 : f32 to vector<8x512xf32>
    %357 = vector.shape_cast %355 : vector<1x512xi1> to vector<1x512xi1>
    %358 = vector.broadcast %357 : vector<1x512xi1> to vector<8x512xi1>
    %359 = arith.select %358, %351, %356 : vector<8x512xi1>, vector<8x512xf32>
    %c40_160 = arith.constant 40 : index
    %c0_161 = arith.constant 0 : index
    %360 = vector.load %arg6[%c40_160, %c0_161] : memref<72x512xf32, #tpu.memory_space<vmem>>, vector<8x512xf32>
    tpu.vector_store %arg6[%c40_160, %c0_161], %359 {strides = array<i32>} : memref<72x512xf32, #tpu.memory_space<vmem>>, vector<8x512xf32>,
    %c57_i32_162 = arith.constant 57 : i32
    %361 = tpu.dynamic_rotate %300 by %c57_i32_162 dim 1 : vector<8x512xf32>, i32 -> vector<8x512xf32>
    %c64_i32_163 = arith.constant 64 : i32
    %362 = vector.broadcast %c64_i32_163 : i32 to vector<1x512xi32>
    %363 = arith.andi %0, %362 : vector<1x512xi32>
    %c0_i32_164 = arith.constant 0 : i32
    %364 = vector.broadcast %c0_i32_164 : i32 to vector<1x512xi32>
    %365 = arith.cmpi ne, %363, %364 : vector<1x512xi32>
    %cst_165 = arith.constant 0.000000e+00 : f32
    %366 = vector.broadcast %cst_165 : f32 to vector<8x512xf32>
    %367 = vector.shape_cast %365 : vector<1x512xi1> to vector<1x512xi1>
    %368 = vector.broadcast %367 : vector<1x512xi1> to vector<8x512xi1>
    %369 = arith.select %368, %361, %366 : vector<8x512xi1>, vector<8x512xf32>
    %c48_166 = arith.constant 48 : index
    %c0_167 = arith.constant 0 : index
    %370 = vector.load %arg6[%c48_166, %c0_167] : memref<72x512xf32, #tpu.memory_space<vmem>>, vector<8x512xf32>
    tpu.vector_store %arg6[%c48_166, %c0_167], %369 {strides = array<i32>} : memref<72x512xf32, #tpu.memory_space<vmem>>, vector<8x512xf32>,
    %c56_i32_168 = arith.constant 56 : i32
    %371 = tpu.dynamic_rotate %300 by %c56_i32_168 dim 1 : vector<8x512xf32>, i32 -> vector<8x512xf32>
    %c128_i32_169 = arith.constant 128 : i32
    %372 = vector.broadcast %c128_i32_169 : i32 to vector<1x512xi32>
    %373 = arith.andi %0, %372 : vector<1x512xi32>
    %c0_i32_170 = arith.constant 0 : i32
    %374 = vector.broadcast %c0_i32_170 : i32 to vector<1x512xi32>
    %375 = arith.cmpi ne, %373, %374 : vector<1x512xi32>
    %cst_171 = arith.constant 0.000000e+00 : f32
    %376 = vector.broadcast %cst_171 : f32 to vector<8x512xf32>
    %377 = vector.shape_cast %375 : vector<1x512xi1> to vector<1x512xi1>
    %378 = vector.broadcast %377 : vector<1x512xi1> to vector<8x512xi1>
    %379 = arith.select %378, %371, %376 : vector<8x512xi1>, vector<8x512xf32>
    %c56_172 = arith.constant 56 : index
    %c0_173 = arith.constant 0 : index
    %380 = vector.load %arg6[%c56_172, %c0_173] : memref<72x512xf32, #tpu.memory_space<vmem>>, vector<8x512xf32>
    tpu.vector_store %arg6[%c56_172, %c0_173], %379 {strides = array<i32>} : memref<72x512xf32, #tpu.memory_space<vmem>>, vector<8x512xf32>,
    %c55_i32_174 = arith.constant 55 : i32
    %381 = tpu.dynamic_rotate %300 by %c55_i32_174 dim 1 : vector<8x512xf32>, i32 -> vector<8x512xf32>
    %c256_i32_175 = arith.constant 256 : i32
    %382 = vector.broadcast %c256_i32_175 : i32 to vector<1x512xi32>
    %383 = arith.andi %0, %382 : vector<1x512xi32>
    %c0_i32_176 = arith.constant 0 : i32
    %384 = vector.broadcast %c0_i32_176 : i32 to vector<1x512xi32>
    %385 = arith.cmpi ne, %383, %384 : vector<1x512xi32>
    %cst_177 = arith.constant 0.000000e+00 : f32
    %386 = vector.broadcast %cst_177 : f32 to vector<8x512xf32>
    %387 = vector.shape_cast %385 : vector<1x512xi1> to vector<1x512xi1>
    %388 = vector.broadcast %387 : vector<1x512xi1> to vector<8x512xi1>
    %389 = arith.select %388, %381, %386 : vector<8x512xi1>, vector<8x512xf32>
    %c64_178 = arith.constant 64 : index
    %c0_179 = arith.constant 0 : index
    %390 = vector.load %arg6[%c64_178, %c0_179] : memref<72x512xf32, #tpu.memory_space<vmem>>, vector<8x512xf32>
    tpu.vector_store %arg6[%c64_178, %c0_179], %389 {strides = array<i32>} : memref<72x512xf32, #tpu.memory_space<vmem>>, vector<8x512xf32>,
    %c0_180 = arith.constant 0 : index
    %c0_181 = arith.constant 0 : index
    %c0_182 = arith.constant 0 : index
    %391 = vector.load %arg4[%c0_180, %c0_181, %c0_182] : memref<3x8x72xf32, #tpu.memory_space<vmem>>, vector<1x8x72xf32>
    %392 = vector.shape_cast %391 : vector<1x8x72xf32> to vector<8x72xf32>
    %c0_183 = arith.constant 0 : index
    %c0_184 = arith.constant 0 : index
    %393 = vector.load %arg6[%c0_183, %c0_184] : memref<72x512xf32, #tpu.memory_space<vmem>>, vector<72x512xf32>
    %cst_185 = arith.constant dense<0.000000e+00> : vector<8x512xf32>
    %394 = tpu.matmul %392, %393, %cst_185 {dimension_numbers = #tpu.dot_dimension_numbers<[1], [0], [0], [1], [0, 0, 1, 1], [], []>} : vector<8x72xf32>, vector<72x512xf32>, vector<8x512xf32> -> vector<8x512xf32>
    %c9_i32_186 = arith.constant 9 : i32
    %395 = tpu.dynamic_rotate %300 by %c9_i32_186 dim 1 : vector<8x512xf32>, i32 -> vector<8x512xf32>
    %c512_i32_187 = arith.constant 512 : i32
    %396 = vector.broadcast %c512_i32_187 : i32 to vector<1x512xi32>
    %397 = arith.andi %0, %396 : vector<1x512xi32>
    %c0_i32_188 = arith.constant 0 : i32
    %398 = vector.broadcast %c0_i32_188 : i32 to vector<1x512xi32>
    %399 = arith.cmpi ne, %397, %398 : vector<1x512xi32>
    %cst_189 = arith.constant 0.000000e+00 : f32
    %400 = vector.broadcast %cst_189 : f32 to vector<8x512xf32>
    %401 = vector.shape_cast %399 : vector<1x512xi1> to vector<1x512xi1>
    %402 = vector.broadcast %401 : vector<1x512xi1> to vector<8x512xi1>
    %403 = arith.select %402, %395, %400 : vector<8x512xi1>, vector<8x512xf32>
    %c0_190 = arith.constant 0 : index
    %c0_191 = arith.constant 0 : index
    %404 = vector.load %arg6[%c0_190, %c0_191] : memref<72x512xf32, #tpu.memory_space<vmem>>, vector<8x512xf32>
    tpu.vector_store %arg6[%c0_190, %c0_191], %403 {strides = array<i32>} : memref<72x512xf32, #tpu.memory_space<vmem>>, vector<8x512xf32>,
    %c8_i32_192 = arith.constant 8 : i32
    %405 = tpu.dynamic_rotate %300 by %c8_i32_192 dim 1 : vector<8x512xf32>, i32 -> vector<8x512xf32>
    %c1024_i32_193 = arith.constant 1024 : i32
    %406 = vector.broadcast %c1024_i32_193 : i32 to vector<1x512xi32>
    %407 = arith.andi %0, %406 : vector<1x512xi32>
    %c0_i32_194 = arith.constant 0 : i32
    %408 = vector.broadcast %c0_i32_194 : i32 to vector<1x512xi32>
    %409 = arith.cmpi ne, %407, %408 : vector<1x512xi32>
    %cst_195 = arith.constant 0.000000e+00 : f32
    %410 = vector.broadcast %cst_195 : f32 to vector<8x512xf32>
    %411 = vector.shape_cast %409 : vector<1x512xi1> to vector<1x512xi1>
    %412 = vector.broadcast %411 : vector<1x512xi1> to vector<8x512xi1>
    %413 = arith.select %412, %405, %410 : vector<8x512xi1>, vector<8x512xf32>
    %c8_196 = arith.constant 8 : index
    %c0_197 = arith.constant 0 : index
    %414 = vector.load %arg6[%c8_196, %c0_197] : memref<72x512xf32, #tpu.memory_space<vmem>>, vector<8x512xf32>
    tpu.vector_store %arg6[%c8_196, %c0_197], %413 {strides = array<i32>} : memref<72x512xf32, #tpu.memory_space<vmem>>, vector<8x512xf32>,
    %c7_i32_198 = arith.constant 7 : i32
    %415 = tpu.dynamic_rotate %300 by %c7_i32_198 dim 1 : vector<8x512xf32>, i32 -> vector<8x512xf32>
    %c2048_i32_199 = arith.constant 2048 : i32
    %416 = vector.broadcast %c2048_i32_199 : i32 to vector<1x512xi32>
    %417 = arith.andi %0, %416 : vector<1x512xi32>
    %c0_i32_200 = arith.constant 0 : i32
    %418 = vector.broadcast %c0_i32_200 : i32 to vector<1x512xi32>
    %419 = arith.cmpi ne, %417, %418 : vector<1x512xi32>
    %cst_201 = arith.constant 0.000000e+00 : f32
    %420 = vector.broadcast %cst_201 : f32 to vector<8x512xf32>
    %421 = vector.shape_cast %419 : vector<1x512xi1> to vector<1x512xi1>
    %422 = vector.broadcast %421 : vector<1x512xi1> to vector<8x512xi1>
    %423 = arith.select %422, %415, %420 : vector<8x512xi1>, vector<8x512xf32>
    %c16_202 = arith.constant 16 : index
    %c0_203 = arith.constant 0 : index
    %424 = vector.load %arg6[%c16_202, %c0_203] : memref<72x512xf32, #tpu.memory_space<vmem>>, vector<8x512xf32>
    tpu.vector_store %arg6[%c16_202, %c0_203], %423 {strides = array<i32>} : memref<72x512xf32, #tpu.memory_space<vmem>>, vector<8x512xf32>,
    %c1_i32_204 = arith.constant 1 : i32
    %425 = tpu.dynamic_rotate %300 by %c1_i32_204 dim 1 : vector<8x512xf32>, i32 -> vector<8x512xf32>
    %c4096_i32_205 = arith.constant 4096 : i32
    %426 = vector.broadcast %c4096_i32_205 : i32 to vector<1x512xi32>
    %427 = arith.andi %0, %426 : vector<1x512xi32>
    %c0_i32_206 = arith.constant 0 : i32
    %428 = vector.broadcast %c0_i32_206 : i32 to vector<1x512xi32>
    %429 = arith.cmpi ne, %427, %428 : vector<1x512xi32>
    %cst_207 = arith.constant 0.000000e+00 : f32
    %430 = vector.broadcast %cst_207 : f32 to vector<8x512xf32>
    %431 = vector.shape_cast %429 : vector<1x512xi1> to vector<1x512xi1>
    %432 = vector.broadcast %431 : vector<1x512xi1> to vector<8x512xi1>
    %433 = arith.select %432, %425, %430 : vector<8x512xi1>, vector<8x512xf32>
    %c24_208 = arith.constant 24 : index
    %c0_209 = arith.constant 0 : index
    %434 = vector.load %arg6[%c24_208, %c0_209] : memref<72x512xf32, #tpu.memory_space<vmem>>, vector<8x512xf32>
    tpu.vector_store %arg6[%c24_208, %c0_209], %433 {strides = array<i32>} : memref<72x512xf32, #tpu.memory_space<vmem>>, vector<8x512xf32>,
    %c32_210 = arith.constant 32 : index
    %c0_211 = arith.constant 0 : index
    %435 = vector.load %arg6[%c32_210, %c0_211] : memref<72x512xf32, #tpu.memory_space<vmem>>, vector<8x512xf32>
    tpu.vector_store %arg6[%c32_210, %c0_211], %300 {strides = array<i32>} : memref<72x512xf32, #tpu.memory_space<vmem>>, vector<8x512xf32>,
    %c511_i32_212 = arith.constant 511 : i32
    %436 = tpu.dynamic_rotate %300 by %c511_i32_212 dim 1 : vector<8x512xf32>, i32 -> vector<8x512xf32>
    %c16384_i32_213 = arith.constant 16384 : i32
    %437 = vector.broadcast %c16384_i32_213 : i32 to vector<1x512xi32>
    %438 = arith.andi %0, %437 : vector<1x512xi32>
    %c0_i32_214 = arith.constant 0 : i32
    %439 = vector.broadcast %c0_i32_214 : i32 to vector<1x512xi32>
    %440 = arith.cmpi ne, %438, %439 : vector<1x512xi32>
    %cst_215 = arith.constant 0.000000e+00 : f32
    %441 = vector.broadcast %cst_215 : f32 to vector<8x512xf32>
    %442 = vector.shape_cast %440 : vector<1x512xi1> to vector<1x512xi1>
    %443 = vector.broadcast %442 : vector<1x512xi1> to vector<8x512xi1>
    %444 = arith.select %443, %436, %441 : vector<8x512xi1>, vector<8x512xf32>
    %c40_216 = arith.constant 40 : index
    %c0_217 = arith.constant 0 : index
    %445 = vector.load %arg6[%c40_216, %c0_217] : memref<72x512xf32, #tpu.memory_space<vmem>>, vector<8x512xf32>
    tpu.vector_store %arg6[%c40_216, %c0_217], %444 {strides = array<i32>} : memref<72x512xf32, #tpu.memory_space<vmem>>, vector<8x512xf32>,
    %c505_i32_218 = arith.constant 505 : i32
    %446 = tpu.dynamic_rotate %300 by %c505_i32_218 dim 1 : vector<8x512xf32>, i32 -> vector<8x512xf32>
    %c32768_i32_219 = arith.constant 32768 : i32
    %447 = vector.broadcast %c32768_i32_219 : i32 to vector<1x512xi32>
    %448 = arith.andi %0, %447 : vector<1x512xi32>
    %c0_i32_220 = arith.constant 0 : i32
    %449 = vector.broadcast %c0_i32_220 : i32 to vector<1x512xi32>
    %450 = arith.cmpi ne, %448, %449 : vector<1x512xi32>
    %cst_221 = arith.constant 0.000000e+00 : f32
    %451 = vector.broadcast %cst_221 : f32 to vector<8x512xf32>
    %452 = vector.shape_cast %450 : vector<1x512xi1> to vector<1x512xi1>
    %453 = vector.broadcast %452 : vector<1x512xi1> to vector<8x512xi1>
    %454 = arith.select %453, %446, %451 : vector<8x512xi1>, vector<8x512xf32>
    %c48_222 = arith.constant 48 : index
    %c0_223 = arith.constant 0 : index
    %455 = vector.load %arg6[%c48_222, %c0_223] : memref<72x512xf32, #tpu.memory_space<vmem>>, vector<8x512xf32>
    tpu.vector_store %arg6[%c48_222, %c0_223], %454 {strides = array<i32>} : memref<72x512xf32, #tpu.memory_space<vmem>>, vector<8x512xf32>,
    %c504_i32_224 = arith.constant 504 : i32
    %456 = tpu.dynamic_rotate %300 by %c504_i32_224 dim 1 : vector<8x512xf32>, i32 -> vector<8x512xf32>
    %c65536_i32_225 = arith.constant 65536 : i32
    %457 = vector.broadcast %c65536_i32_225 : i32 to vector<1x512xi32>
    %458 = arith.andi %0, %457 : vector<1x512xi32>
    %c0_i32_226 = arith.constant 0 : i32
    %459 = vector.broadcast %c0_i32_226 : i32 to vector<1x512xi32>
    %460 = arith.cmpi ne, %458, %459 : vector<1x512xi32>
    %cst_227 = arith.constant 0.000000e+00 : f32
    %461 = vector.broadcast %cst_227 : f32 to vector<8x512xf32>
    %462 = vector.shape_cast %460 : vector<1x512xi1> to vector<1x512xi1>
    %463 = vector.broadcast %462 : vector<1x512xi1> to vector<8x512xi1>
    %464 = arith.select %463, %456, %461 : vector<8x512xi1>, vector<8x512xf32>
    %c56_228 = arith.constant 56 : index
    %c0_229 = arith.constant 0 : index
    %465 = vector.load %arg6[%c56_228, %c0_229] : memref<72x512xf32, #tpu.memory_space<vmem>>, vector<8x512xf32>
    tpu.vector_store %arg6[%c56_228, %c0_229], %464 {strides = array<i32>} : memref<72x512xf32, #tpu.memory_space<vmem>>, vector<8x512xf32>,
    %c503_i32_230 = arith.constant 503 : i32
    %466 = tpu.dynamic_rotate %300 by %c503_i32_230 dim 1 : vector<8x512xf32>, i32 -> vector<8x512xf32>
    %c131072_i32_231 = arith.constant 131072 : i32
    %467 = vector.broadcast %c131072_i32_231 : i32 to vector<1x512xi32>
    %468 = arith.andi %0, %467 : vector<1x512xi32>
    %c0_i32_232 = arith.constant 0 : i32
    %469 = vector.broadcast %c0_i32_232 : i32 to vector<1x512xi32>
    %470 = arith.cmpi ne, %468, %469 : vector<1x512xi32>
    %cst_233 = arith.constant 0.000000e+00 : f32
    %471 = vector.broadcast %cst_233 : f32 to vector<8x512xf32>
    %472 = vector.shape_cast %470 : vector<1x512xi1> to vector<1x512xi1>
    %473 = vector.broadcast %472 : vector<1x512xi1> to vector<8x512xi1>
    %474 = arith.select %473, %466, %471 : vector<8x512xi1>, vector<8x512xf32>
    %c64_234 = arith.constant 64 : index
    %c0_235 = arith.constant 0 : index
    %475 = vector.load %arg6[%c64_234, %c0_235] : memref<72x512xf32, #tpu.memory_space<vmem>>, vector<8x512xf32>
    tpu.vector_store %arg6[%c64_234, %c0_235], %474 {strides = array<i32>} : memref<72x512xf32, #tpu.memory_space<vmem>>, vector<8x512xf32>,
    %c1_236 = arith.constant 1 : index
    %c0_237 = arith.constant 0 : index
    %c0_238 = arith.constant 0 : index
    %476 = vector.load %arg4[%c1_236, %c0_237, %c0_238] : memref<3x8x72xf32, #tpu.memory_space<vmem>>, vector<1x8x72xf32>
    %477 = vector.shape_cast %476 : vector<1x8x72xf32> to vector<8x72xf32>
    %c0_239 = arith.constant 0 : index
    %c0_240 = arith.constant 0 : index
    %478 = vector.load %arg6[%c0_239, %c0_240] : memref<72x512xf32, #tpu.memory_space<vmem>>, vector<72x512xf32>
    %cst_241 = arith.constant dense<0.000000e+00> : vector<8x512xf32>
    %479 = tpu.matmul %477, %478, %cst_241 {dimension_numbers = #tpu.dot_dimension_numbers<[1], [0], [0], [1], [0, 0, 1, 1], [], []>} : vector<8x72xf32>, vector<72x512xf32>, vector<8x512xf32> -> vector<8x512xf32>
    %480 = arith.addf %394, %479 : vector<8x512xf32>
    %c457_i32_242 = arith.constant 457 : i32
    %481 = tpu.dynamic_rotate %300 by %c457_i32_242 dim 1 : vector<8x512xf32>, i32 -> vector<8x512xf32>
    %c262144_i32_243 = arith.constant 262144 : i32
    %482 = vector.broadcast %c262144_i32_243 : i32 to vector<1x512xi32>
    %483 = arith.andi %0, %482 : vector<1x512xi32>
    %c0_i32_244 = arith.constant 0 : i32
    %484 = vector.broadcast %c0_i32_244 : i32 to vector<1x512xi32>
    %485 = arith.cmpi ne, %483, %484 : vector<1x512xi32>
    %cst_245 = arith.constant 0.000000e+00 : f32
    %486 = vector.broadcast %cst_245 : f32 to vector<8x512xf32>
    %487 = vector.shape_cast %485 : vector<1x512xi1> to vector<1x512xi1>
    %488 = vector.broadcast %487 : vector<1x512xi1> to vector<8x512xi1>
    %489 = arith.select %488, %481, %486 : vector<8x512xi1>, vector<8x512xf32>
    %c0_246 = arith.constant 0 : index
    %c0_247 = arith.constant 0 : index
    %490 = vector.load %arg6[%c0_246, %c0_247] : memref<72x512xf32, #tpu.memory_space<vmem>>, vector<8x512xf32>
    tpu.vector_store %arg6[%c0_246, %c0_247], %489 {strides = array<i32>} : memref<72x512xf32, #tpu.memory_space<vmem>>, vector<8x512xf32>,
    %c456_i32_248 = arith.constant 456 : i32
    %491 = tpu.dynamic_rotate %300 by %c456_i32_248 dim 1 : vector<8x512xf32>, i32 -> vector<8x512xf32>
    %c524288_i32_249 = arith.constant 524288 : i32
    %492 = vector.broadcast %c524288_i32_249 : i32 to vector<1x512xi32>
    %493 = arith.andi %0, %492 : vector<1x512xi32>
    %c0_i32_250 = arith.constant 0 : i32
    %494 = vector.broadcast %c0_i32_250 : i32 to vector<1x512xi32>
    %495 = arith.cmpi ne, %493, %494 : vector<1x512xi32>
    %cst_251 = arith.constant 0.000000e+00 : f32
    %496 = vector.broadcast %cst_251 : f32 to vector<8x512xf32>
    %497 = vector.shape_cast %495 : vector<1x512xi1> to vector<1x512xi1>
    %498 = vector.broadcast %497 : vector<1x512xi1> to vector<8x512xi1>
    %499 = arith.select %498, %491, %496 : vector<8x512xi1>, vector<8x512xf32>
    %c8_252 = arith.constant 8 : index
    %c0_253 = arith.constant 0 : index
    %500 = vector.load %arg6[%c8_252, %c0_253] : memref<72x512xf32, #tpu.memory_space<vmem>>, vector<8x512xf32>
    tpu.vector_store %arg6[%c8_252, %c0_253], %499 {strides = array<i32>} : memref<72x512xf32, #tpu.memory_space<vmem>>, vector<8x512xf32>,
    %c455_i32_254 = arith.constant 455 : i32
    %501 = tpu.dynamic_rotate %300 by %c455_i32_254 dim 1 : vector<8x512xf32>, i32 -> vector<8x512xf32>
    %c1048576_i32_255 = arith.constant 1048576 : i32
    %502 = vector.broadcast %c1048576_i32_255 : i32 to vector<1x512xi32>
    %503 = arith.andi %0, %502 : vector<1x512xi32>
    %c0_i32_256 = arith.constant 0 : i32
    %504 = vector.broadcast %c0_i32_256 : i32 to vector<1x512xi32>
    %505 = arith.cmpi ne, %503, %504 : vector<1x512xi32>
    %cst_257 = arith.constant 0.000000e+00 : f32
    %506 = vector.broadcast %cst_257 : f32 to vector<8x512xf32>
    %507 = vector.shape_cast %505 : vector<1x512xi1> to vector<1x512xi1>
    %508 = vector.broadcast %507 : vector<1x512xi1> to vector<8x512xi1>
    %509 = arith.select %508, %501, %506 : vector<8x512xi1>, vector<8x512xf32>
    %c16_258 = arith.constant 16 : index
    %c0_259 = arith.constant 0 : index
    %510 = vector.load %arg6[%c16_258, %c0_259] : memref<72x512xf32, #tpu.memory_space<vmem>>, vector<8x512xf32>
    tpu.vector_store %arg6[%c16_258, %c0_259], %509 {strides = array<i32>} : memref<72x512xf32, #tpu.memory_space<vmem>>, vector<8x512xf32>,
    %c449_i32_260 = arith.constant 449 : i32
    %511 = tpu.dynamic_rotate %300 by %c449_i32_260 dim 1 : vector<8x512xf32>, i32 -> vector<8x512xf32>
    %c2097152_i32_261 = arith.constant 2097152 : i32
    %512 = vector.broadcast %c2097152_i32_261 : i32 to vector<1x512xi32>
    %513 = arith.andi %0, %512 : vector<1x512xi32>
    %c0_i32_262 = arith.constant 0 : i32
    %514 = vector.broadcast %c0_i32_262 : i32 to vector<1x512xi32>
    %515 = arith.cmpi ne, %513, %514 : vector<1x512xi32>
    %cst_263 = arith.constant 0.000000e+00 : f32
    %516 = vector.broadcast %cst_263 : f32 to vector<8x512xf32>
    %517 = vector.shape_cast %515 : vector<1x512xi1> to vector<1x512xi1>
    %518 = vector.broadcast %517 : vector<1x512xi1> to vector<8x512xi1>
    %519 = arith.select %518, %511, %516 : vector<8x512xi1>, vector<8x512xf32>
    %c24_264 = arith.constant 24 : index
    %c0_265 = arith.constant 0 : index
    %520 = vector.load %arg6[%c24_264, %c0_265] : memref<72x512xf32, #tpu.memory_space<vmem>>, vector<8x512xf32>
    tpu.vector_store %arg6[%c24_264, %c0_265], %519 {strides = array<i32>} : memref<72x512xf32, #tpu.memory_space<vmem>>, vector<8x512xf32>,
    %c448_i32_266 = arith.constant 448 : i32
    %521 = tpu.dynamic_rotate %300 by %c448_i32_266 dim 1 : vector<8x512xf32>, i32 -> vector<8x512xf32>
    %c4194304_i32_267 = arith.constant 4194304 : i32
    %522 = vector.broadcast %c4194304_i32_267 : i32 to vector<1x512xi32>
    %523 = arith.andi %0, %522 : vector<1x512xi32>
    %c0_i32_268 = arith.constant 0 : i32
    %524 = vector.broadcast %c0_i32_268 : i32 to vector<1x512xi32>
    %525 = arith.cmpi ne, %523, %524 : vector<1x512xi32>
    %cst_269 = arith.constant 0.000000e+00 : f32
    %526 = vector.broadcast %cst_269 : f32 to vector<8x512xf32>
    %527 = vector.shape_cast %525 : vector<1x512xi1> to vector<1x512xi1>
    %528 = vector.broadcast %527 : vector<1x512xi1> to vector<8x512xi1>
    %529 = arith.select %528, %521, %526 : vector<8x512xi1>, vector<8x512xf32>
    %c32_270 = arith.constant 32 : index
    %c0_271 = arith.constant 0 : index
    %530 = vector.load %arg6[%c32_270, %c0_271] : memref<72x512xf32, #tpu.memory_space<vmem>>, vector<8x512xf32>
    tpu.vector_store %arg6[%c32_270, %c0_271], %529 {strides = array<i32>} : memref<72x512xf32, #tpu.memory_space<vmem>>, vector<8x512xf32>,
    %c447_i32_272 = arith.constant 447 : i32
    %531 = tpu.dynamic_rotate %300 by %c447_i32_272 dim 1 : vector<8x512xf32>, i32 -> vector<8x512xf32>
    %c8388608_i32_273 = arith.constant 8388608 : i32
    %532 = vector.broadcast %c8388608_i32_273 : i32 to vector<1x512xi32>
    %533 = arith.andi %0, %532 : vector<1x512xi32>
    %c0_i32_274 = arith.constant 0 : i32
    %534 = vector.broadcast %c0_i32_274 : i32 to vector<1x512xi32>
    %535 = arith.cmpi ne, %533, %534 : vector<1x512xi32>
    %cst_275 = arith.constant 0.000000e+00 : f32
    %536 = vector.broadcast %cst_275 : f32 to vector<8x512xf32>
    %537 = vector.shape_cast %535 : vector<1x512xi1> to vector<1x512xi1>
    %538 = vector.broadcast %537 : vector<1x512xi1> to vector<8x512xi1>
    %539 = arith.select %538, %531, %536 : vector<8x512xi1>, vector<8x512xf32>
    %c40_276 = arith.constant 40 : index
    %c0_277 = arith.constant 0 : index
    %540 = vector.load %arg6[%c40_276, %c0_277] : memref<72x512xf32, #tpu.memory_space<vmem>>, vector<8x512xf32>
    tpu.vector_store %arg6[%c40_276, %c0_277], %539 {strides = array<i32>} : memref<72x512xf32, #tpu.memory_space<vmem>>, vector<8x512xf32>,
    %c441_i32_278 = arith.constant 441 : i32
    %541 = tpu.dynamic_rotate %300 by %c441_i32_278 dim 1 : vector<8x512xf32>, i32 -> vector<8x512xf32>
    %c16777216_i32_279 = arith.constant 16777216 : i32
    %542 = vector.broadcast %c16777216_i32_279 : i32 to vector<1x512xi32>
    %543 = arith.andi %0, %542 : vector<1x512xi32>
    %c0_i32_280 = arith.constant 0 : i32
    %544 = vector.broadcast %c0_i32_280 : i32 to vector<1x512xi32>
    %545 = arith.cmpi ne, %543, %544 : vector<1x512xi32>
    %cst_281 = arith.constant 0.000000e+00 : f32
    %546 = vector.broadcast %cst_281 : f32 to vector<8x512xf32>
    %547 = vector.shape_cast %545 : vector<1x512xi1> to vector<1x512xi1>
    %548 = vector.broadcast %547 : vector<1x512xi1> to vector<8x512xi1>
    %549 = arith.select %548, %541, %546 : vector<8x512xi1>, vector<8x512xf32>
    %c48_282 = arith.constant 48 : index
    %c0_283 = arith.constant 0 : index
    %550 = vector.load %arg6[%c48_282, %c0_283] : memref<72x512xf32, #tpu.memory_space<vmem>>, vector<8x512xf32>
    tpu.vector_store %arg6[%c48_282, %c0_283], %549 {strides = array<i32>} : memref<72x512xf32, #tpu.memory_space<vmem>>, vector<8x512xf32>,
    %c440_i32_284 = arith.constant 440 : i32
    %551 = tpu.dynamic_rotate %300 by %c440_i32_284 dim 1 : vector<8x512xf32>, i32 -> vector<8x512xf32>
    %c33554432_i32_285 = arith.constant 33554432 : i32
    %552 = vector.broadcast %c33554432_i32_285 : i32 to vector<1x512xi32>
    %553 = arith.andi %0, %552 : vector<1x512xi32>
    %c0_i32_286 = arith.constant 0 : i32
    %554 = vector.broadcast %c0_i32_286 : i32 to vector<1x512xi32>
    %555 = arith.cmpi ne, %553, %554 : vector<1x512xi32>
    %cst_287 = arith.constant 0.000000e+00 : f32
    %556 = vector.broadcast %cst_287 : f32 to vector<8x512xf32>
    %557 = vector.shape_cast %555 : vector<1x512xi1> to vector<1x512xi1>
    %558 = vector.broadcast %557 : vector<1x512xi1> to vector<8x512xi1>
    %559 = arith.select %558, %551, %556 : vector<8x512xi1>, vector<8x512xf32>
    %c56_288 = arith.constant 56 : index
    %c0_289 = arith.constant 0 : index
    %560 = vector.load %arg6[%c56_288, %c0_289] : memref<72x512xf32, #tpu.memory_space<vmem>>, vector<8x512xf32>
    tpu.vector_store %arg6[%c56_288, %c0_289], %559 {strides = array<i32>} : memref<72x512xf32, #tpu.memory_space<vmem>>, vector<8x512xf32>,
    %c439_i32_290 = arith.constant 439 : i32
    %561 = tpu.dynamic_rotate %300 by %c439_i32_290 dim 1 : vector<8x512xf32>, i32 -> vector<8x512xf32>
    %c67108864_i32_291 = arith.constant 67108864 : i32
    %562 = vector.broadcast %c67108864_i32_291 : i32 to vector<1x512xi32>
    %563 = arith.andi %0, %562 : vector<1x512xi32>
    %c0_i32_292 = arith.constant 0 : i32
    %564 = vector.broadcast %c0_i32_292 : i32 to vector<1x512xi32>
    %565 = arith.cmpi ne, %563, %564 : vector<1x512xi32>
    %cst_293 = arith.constant 0.000000e+00 : f32
    %566 = vector.broadcast %cst_293 : f32 to vector<8x512xf32>
    %567 = vector.shape_cast %565 : vector<1x512xi1> to vector<1x512xi1>
    %568 = vector.broadcast %567 : vector<1x512xi1> to vector<8x512xi1>
    %569 = arith.select %568, %561, %566 : vector<8x512xi1>, vector<8x512xf32>
    %c64_294 = arith.constant 64 : index
    %c0_295 = arith.constant 0 : index
    %570 = vector.load %arg6[%c64_294, %c0_295] : memref<72x512xf32, #tpu.memory_space<vmem>>, vector<8x512xf32>
    tpu.vector_store %arg6[%c64_294, %c0_295], %569 {strides = array<i32>} : memref<72x512xf32, #tpu.memory_space<vmem>>, vector<8x512xf32>,
    %c2_296 = arith.constant 2 : index
    %c0_297 = arith.constant 0 : index
    %c0_298 = arith.constant 0 : index
    %571 = vector.load %arg4[%c2_296, %c0_297, %c0_298] : memref<3x8x72xf32, #tpu.memory_space<vmem>>, vector<1x8x72xf32>
    %572 = vector.shape_cast %571 : vector<1x8x72xf32> to vector<8x72xf32>
    %c0_299 = arith.constant 0 : index
    %c0_300 = arith.constant 0 : index
    %573 = vector.load %arg6[%c0_299, %c0_300] : memref<72x512xf32, #tpu.memory_space<vmem>>, vector<72x512xf32>
    %cst_301 = arith.constant dense<0.000000e+00> : vector<8x512xf32>
    %574 = tpu.matmul %572, %573, %cst_301 {dimension_numbers = #tpu.dot_dimension_numbers<[1], [0], [0], [1], [0, 0, 1, 1], [], []>} : vector<8x72xf32>, vector<72x512xf32>, vector<8x512xf32> -> vector<8x512xf32>
    %575 = arith.addf %480, %574 : vector<8x512xf32>
    %cst_302 = arith.constant dense<0.000000e+00> : vector<8xf32>
    %576 = vector.multi_reduction <add>, %575, %cst_302 [1] : vector<8x512xf32> to vector<8xf32>
    %577 = vector.shape_cast %576 : vector<8xf32> to vector<8x1xf32>
    %cst_303 = arith.constant 0.001953125 : f32
    %578 = vector.broadcast %cst_303 : f32 to vector<8x1xf32>
    %579 = arith.mulf %577, %578 : vector<8x1xf32>
    %580 = arith.mulf %575, %575 : vector<8x512xf32>
    %cst_304 = arith.constant dense<0.000000e+00> : vector<8xf32>
    %581 = vector.multi_reduction <add>, %580, %cst_304 [1] : vector<8x512xf32> to vector<8xf32>
    %582 = vector.shape_cast %581 : vector<8xf32> to vector<8x1xf32>
    %cst_305 = arith.constant 0.001953125 : f32
    %583 = vector.broadcast %cst_305 : f32 to vector<8x1xf32>
    %584 = arith.mulf %582, %583 : vector<8x1xf32>
    %585 = arith.mulf %579, %579 : vector<8x1xf32>
    %586 = arith.subf %584, %585 : vector<8x1xf32>
    %587 = vector.broadcast %579 : vector<8x1xf32> to vector<8x512xf32>
    %588 = arith.subf %575, %587 : vector<8x512xf32>
    %cst_306 = arith.constant 9.99999974E-6 : f32
    %589 = vector.broadcast %cst_306 : f32 to vector<8x1xf32>
    %590 = arith.addf %586, %589 : vector<8x1xf32>
    %591 = math.rsqrt %590 : vector<8x1xf32>
    %592 = vector.broadcast %591 : vector<8x1xf32> to vector<8x512xf32>
    %593 = arith.mulf %588, %592 : vector<8x512xf32>
    %cst_307 = arith.constant 0.000000e+00 : f32
    %594 = vector.broadcast %cst_307 : f32 to vector<8x512xf32>
    %595 = arith.cmpf oge, %593, %594 : vector<8x512xf32>
    %cst_308 = arith.constant 0.00999999977 : f32
    %596 = vector.broadcast %cst_308 : f32 to vector<8x512xf32>
    %597 = arith.mulf %596, %593 : vector<8x512xf32>
    %598 = arith.select %595, %593, %597 : vector<8x512xi1>, vector<8x512xf32>
    %599 = vector.shape_cast %598 : vector<8x512xf32> to vector<1x8x512xf32>
    %c0_309 = arith.constant 0 : index
    %c0_310 = arith.constant 0 : index
    %c0_311 = arith.constant 0 : index
    %600 = vector.load %arg5[%c0_309, %c0_310, %c0_311] : memref<1x8x512xf32, #tpu.memory_space<vmem>>, vector<1x8x512xf32>
    tpu.vector_store %arg5[%c0_309, %c0_310, %c0_311], %599 {strides = array<i32>} : memref<1x8x512xf32, #tpu.memory_space<vmem>>, vector<1x8x512xf32>,
    return
  }
  func.func @transform_0(%arg0: i32) -> (i32, i32) {
    %c0_i32 = arith.constant 0 : i32
    %c0_i32_0 = arith.constant 0 : i32
    %c0_i32_1 = arith.constant 0 : i32
    return %c0_i32, %c0_i32_0 : i32, i32
  }
  func.func @transform_1(%arg0: i32) -> (i32, i32, i32) {
    %c0_i32 = arith.constant 0 : i32
    %c0_i32_0 = arith.constant 0 : i32
    %c0_i32_1 = arith.constant 0 : i32
    return %arg0, %c0_i32, %c0_i32_0 : i32, i32, i32
  }
  func.func @transform_2(%arg0: i32) -> (i32, i32, i32) {
    %c0_i32 = arith.constant 0 : i32
    %c0_i32_0 = arith.constant 0 : i32
    %c0_i32_1 = arith.constant 0 : i32
    %c0_i32_2 = arith.constant 0 : i32
    return %c0_i32, %c0_i32_0, %c0_i32_1 : i32, i32, i32
  }
  func.func @transform_3(%arg0: i32) -> (i32, i32, i32) {
    %c0_i32 = arith.constant 0 : i32
    %c0_i32_0 = arith.constant 0 : i32
    %c0_i32_1 = arith.constant 0 : i32
    %c0_i32_2 = arith.constant 0 : i32
    return %c0_i32, %c0_i32_0, %c0_i32_1 : i32, i32, i32
  }
  func.func @transform_4(%arg0: i32) -> (i32, i32, i32) {
    %c0_i32 = arith.constant 0 : i32
    %c0_i32_0 = arith.constant 0 : i32
    %c0_i32_1 = arith.constant 0 : i32
    return %arg0, %c0_i32, %c0_i32_0 : i32, i32, i32
  }
}

</mosaic_0001>

<bundles_post_ra>
// kernel: tpu_custom_call.1
= control target key start
LH: loop header
LB: loop body
LE: loop exit
PB: predicated region body
PF: predicated region fallthrough
CT: control target
= control target key end

     0   :  { %9 = vsyncpa [#allocation4], 0  ;;  %s6700_s0 = inlined_call_operand.hbm [shape: s32[1,512], index: 0, kind: input, shape index: {}]   ;;  %s6701_s1 = inlined_call_operand.hbm [shape: f32[2,8,512], index: 1, kind: input, shape index: {}]   ;;  %s6702_s2 = inlined_call_operand.hbm [shape: f32[3,8,72], index: 2, kind: input, shape index: {}]   ;;  %s6703_s3 = inlined_call_operand.hbm [shape: f32[3,8,72], index: 3, kind: input, shape index: {}]   ;;  %s6704_s4 = inlined_call_operand.hbm [shape: f32[2,8,512], index: 4, kind: output, shape index: {}]  }
   0x1   :  { %10 = vsyncpa [#allocation7], 0 }
   0x2   :  { %12 = vsyncpa [#allocation7 + $0x1], 0 }
   0x3   :  { %13 = vsyncpa [#allocation10], 0 }
   0x4   :  { %14 = vsyncpa [#allocation5], 0 }
   0x5   :  { %16 = vsyncpa [#allocation5 + $0x1], 0  ;;  %s4211_s15 = smov 0   ;;  %s4213_s16 = smov 0  }
   0x6   :  { %s4215_s17 = smov 0   ;;  %s4217_s18 = smov 0  }
   0x7 LB: > { %s4232_s19 = sadd.s32 4294967295, %s4157_s18   ;;  %s3015_s20 = sadd.s32 4294967294, %s4157_s18   ;;  %s4157_s18 = sphi %s4217_s18, %s7758_s18   ;;  %s4153_s17 = sphi %s4215_s17, %s7757_s17   ;;  %s4149_s16 = sphi %s4213_s16, %s7756_s16   ;;  %s4145_s15 = sphi %s4211_s15, %s7755_s15  }
   0x8   : > { %p63_p0 = scmp.ne.s32.totalorder %s4149_s16, %s4145_s15  ;;  %p6705_p1 = scmp.eq.s32.totalorder %s4232_s19, 0 }
   0x9   : > { %p135_p3 = scmp.eq.s32.totalorder %s3015_s20, 1  ;;  %p3016_p5 = scmp.ge.s32.totalorder %s4157_s18, 1 }
   0xa   : > { %p4241_p4 = por %p6705_p1, %p63_p0  ;;  %p142_p7 = scmp.lt.s32.totalorder %s4157_s18, 3 }
   0xb   : > { %p4246_p6 = por %p135_p3, %p63_p0  ;;  %s4159_s24 = smov [#allocation8]  }
   0xc   : > { %s6933_s21 = scalar_select %p4241_p4, 1, 0 }
   0xd   : > { %s6934_s22 = scalar_select %p4246_p6, 1, 0 }
   0xe   : > { %p4251_p8 = pnand %p3016_p5, %p142_p7  ;;  %s165_s25 = sshll.u32 %s4159_s24, 4  ;;  %s4255_s25 = int_to_ptr.vmem [resolvable:$true] %s165_s25 }
   0xf   : > { %s4160_s27 = smov [#allocation3]   ;;  %s4161_s29 = smov [#allocation9]  }
  0x10   : > { %s6935_s23 = scalar_select %p4251_p8, 1, 0 }
  0x11   : > { %p3577_p9 = pneg %p4251_p8  ;;  %s155_s28 = sshll.u32 %s4160_s27, 4  ;;  %s4266_s28 = int_to_ptr.vmem [resolvable:$true] %s155_s28 }
  0x12   : > { %s4268_s30 = sshll.u32 %s4161_s29, 4  ;;  %s3965_s7 = scalar_lea.hbm %s6702_s2, 384  ;;  %s179_s30 = int_to_ptr.vmem [resolvable:$true] %s4268_s30 }
  0x13   : > { %p4262_p11 = pnand %p3577_p9, %p6705_p1  ;;  %p3966_p12 = scmp.ne.s32.totalorder %s6702_s2, %s3965_s7 }
  0x14   : > { %p3972_p5 = scmp.lt.u32.totalorder %s3965_s7, %s6702_s2 }
  0x15   : > { %p4278_p13 = pneg %p4262_p11 }
  0x17   : > { %p3968_p0 = pnand %p4278_p13, %p3966_p12 }
  0x19   : > { %p3969_p3 = pneg %p3968_p0 }
  0x1b   : > { %p3974_p7 = pnand %p3972_p5, %p3969_p3 }
  0x1d   : > { %3977 = shalt.err (!%p3974_p7)
}
  0x1e   : > { %s3978_s13 = scalar_lea.vmem %s4255_s25, 384  ;;  %p3986_p2 = scmp.lt.s32.totalorder %s4255_s25, %s4255_s25 }
  0x1f   : > { %p3979_p9 = scmp.ne.s32.totalorder %s4255_s25, %s3978_s13  ;;  %p3987_p6 = scmp.lt.s32.totalorder %s3978_s13, %s3978_s13 }
  0x21   : > { %p3981_p10 = pnand %p3979_p9, %p4278_p13  ;;  %p3988_p12 = por %p3987_p6, %p3986_p2 }
  0x23   : > { %p3982_p1 = pneg %p3981_p10 }
  0x25   : > { %p3989_p0 = pnand %p3988_p12, %p3982_p1 }
  0x27   : > { %3992 = shalt.err (!%p3989_p0)
}
  0x28   : > { %s4162_s14 = smov 128   ;;  %s4163_s20 = smov 8  }
  0x29   : > { %3583 = dma.hbm_to_vmem [thread:$0]  (!%p4262_p11), %s6702_s2, 384, %s4255_s25, [#allocation7], %s4162_s14, %s4162_s14, %s4163_s20  }
  0x2a   : > { %s3993_s6 = scalar_lea.hbm %s6700_s0, 64 }
  0x2b   : > { %p3994_p1 = scmp.ne.s32.totalorder %s6700_s0, %s3993_s6  ;;  %p4000_p10 = scmp.lt.u32.totalorder %s3993_s6, %s6700_s0 }
  0x2d   : > { %p3996_p2 = pnand %p3994_p1, %p4278_p13 }
  0x2f   : > { %p3997_p6 = pneg %p3996_p2 }
  0x31   : > { %p4002_p3 = pnand %p4000_p10, %p3997_p6 }
  0x33   : > { %4005 = shalt.err (!%p4002_p3)
}
  0x34   : > { %s4006_s25 = scalar_lea.vmem %s4266_s28, 64  ;;  %p4014_p12 = scmp.lt.s32.totalorder %s4266_s28, %s4266_s28 }
  0x35   : > { %p4007_p5 = scmp.ne.s32.totalorder %s4266_s28, %s4006_s25  ;;  %p4015_p0 = scmp.lt.s32.totalorder %s4006_s25, %s4006_s25 }
  0x37   : > { %p4009_p7 = pnand %p4007_p5, %p4278_p13  ;;  %p4016_p1 = por %p4015_p0, %p4014_p12 }
  0x39   : > { %p4010_p9 = pneg %p4009_p7 }
  0x3b   : > { %p4017_p2 = pnand %p4016_p1, %p4010_p9 }
  0x3d   : > { %4020 = shalt.err (!%p4017_p2)
}
  0x3e   : > { %3580 = dma.hbm_to_vmem [thread:$0]  (!%p4262_p11), %s6700_s0, 64, %s4266_s28, [#allocation4]  }
  0x3f   : > { %s4021_s29 = scalar_lea.hbm %s6703_s3, 384 }
  0x40   : > { %p4022_p6 = scmp.ne.s32.totalorder %s6703_s3, %s4021_s29  ;;  %p4028_p5 = scmp.lt.u32.totalorder %s4021_s29, %s6703_s3 }
  0x42   : > { %p4024_p10 = pnand %p4022_p6, %p4278_p13 }
  0x44   : > { %p4025_p3 = pneg %p4024_p10 }
  0x46   : > { %p4030_p7 = pnand %p4028_p5, %p4025_p3 }
  0x48   : > { %4033 = shalt.err (!%p4030_p7)
}
  0x49   : > { %s4034_s9 = scalar_lea.vmem %s179_s30, 384  ;;  %p4042_p1 = scmp.lt.s32.totalorder %s179_s30, %s179_s30 }
  0x4a   : > { %p4035_p9 = scmp.ne.s32.totalorder %s179_s30, %s4034_s9  ;;  %p4043_p2 = scmp.lt.s32.totalorder %s4034_s9, %s4034_s9 }
  0x4c   : > { %p4037_p12 = pnand %p4035_p9, %p4278_p13  ;;  %p4044_p4 = por %p4043_p2, %p4042_p1 }
  0x4e   : > { %p4038_p0 = pneg %p4037_p12 }
  0x50   : > { %p4045_p8 = pnand %p4044_p4, %p4038_p0 }
  0x52   : > { %4048 = shalt.err (!%p4045_p8)
}
  0x53   : > { %3586 = dma.hbm_to_vmem [thread:$0]  (!%p4262_p11), %s6703_s3, 384, %s179_s30, [#allocation10], %s4162_s14, %s4162_s14, %s4163_s20  }
  0x54   : > { %s4348_s26 = sadd.s32 1, %s4157_s18   ;;  %s50_s25 = sadd.s32 1, %s4153_s17 }
  0x55   : > { %s47_s10 = ssub.s32 %s4157_s18, %s4348_s26  ;;  %p57_p8 = scmp.ne.s32.totalorder %s4153_s17, %s4149_s16 }
  0x56   : > { %p48_p4 = scmp.eq.s32.totalorder %s47_s10, 0  ;;  %p58_p13 = scmp.eq.s32.totalorder %s4157_s18, 0 }
  0x57   : > { %p3598_p6 = scmp.lt.s32.totalorder %s4157_s18, 2  ;;  %p6938_p3 = scmp.eq.s32.totalorder %s4232_s19, 1 }
  0x58   : > { %s4358_s12 = scalar_select %p48_p4, %s4153_s17, %s50_s25  }
  0x59   : > { %p59_p10 = por %p58_p13, %p57_p8  ;;  %p4362_p5 = por %p6938_p3, %p57_p8 }
  0x5a   : > { %s192_s24 = sand.u32 1, %s4157_s18   ;;  %s194_s27 = sand.u32 1, %s4153_s17  }
  0x5b   : > { %s3021_s30 = sshll.u32 %s194_s27, 5  ;;  %s3047_s14 = sshll.u32 %s4157_s18, 9 }
  0x5c   : > { %s4372_s5 = scalar_lea.hbm %s6701_s1, %s3047_s14  ;;  %s196_s6 = scalar_lea.vmem [#allocation6], %s3021_s30 }
  0x5d   : > { %s204_s7 = sshll.u32 %s196_s6, 4  ;;  %p4376_p11 = pnand %p3598_p6, %p59_p10  ;;  %s4374_s7 = int_to_ptr.vmem [resolvable:$true] %s204_s7 }
  0x5e   : > { %s193_s9 = scalar_lea.sflag [#allocation7], %s192_s24  ;;  %s4049_s28 = scalar_lea.hbm %s4372_s5, 512 }
  0x5f   : > { %p4050_p7 = scmp.ne.s32.totalorder %s4372_s5, %s4049_s28  ;;  %p4051_p9 = pneg %p4376_p11 }
  0x60   : > { %s4054_s25 = scalar_lea.hbm %s6701_s1, 1024  ;;  %p4055_p1 = scmp.lt.u32.totalorder %s4372_s5, %s6701_s1 }
  0x61   : > { %p4052_p12 = pnand %p4051_p9, %p4050_p7  ;;  %p4056_p2 = scmp.lt.u32.totalorder %s4054_s25, %s4049_s28 }
  0x62   : > { %p4058_p8 = scmp.lt.u32.totalorder %s4049_s28, %s4372_s5 }
  0x63   : > { %p4053_p0 = pneg %p4052_p12  ;;  %p4057_p4 = por %p4056_p2, %p4055_p1 }
  0x65   : > { %p4059_p13 = por %p4058_p8, %p4057_p4 }
  0x67   : > { %p4060_p6 = pnand %p4059_p13, %p4053_p0 }
  0x69   : > { %4063 = shalt.err (!%p4060_p6)
}
  0x6a   : > { %s4064_s24 = scalar_lea.vmem %s4374_s7, 512  ;;  %s4164_s14 = smov [#allocation6]  }
  0x6b   : > { %p4065_p10 = scmp.ne.s32.totalorder %s4374_s7, %s4064_s24  ;;  %s4069_s20 = sshll.u32 %s4164_s14, 4  ;;  %s4070_s20 = int_to_ptr.vmem [resolvable:$false] %s4069_s20 }
  0x6c   : > { %s4071_s29 = scalar_lea.vmem %s4070_s20, 1024  ;;  %p4072_p12 = scmp.lt.s32.totalorder %s4374_s7, %s4070_s20 }
  0x6d   : > { %p4067_p3 = pnand %p4065_p10, %p4051_p9  ;;  %p4073_p1 = scmp.lt.s32.totalorder %s4071_s29, %s4064_s24 }
  0x6f   : > { %p4068_p7 = pneg %p4067_p3  ;;  %p4074_p2 = por %p4073_p1, %p4072_p12 }
  0x71   : > { %p4075_p4 = pnand %p4074_p2, %p4068_p7 }
  0x73   : > { %4078 = shalt.err (!%p4075_p4)
}
  0x74   : > { %3590 = dma.hbm_to_vmem [thread:$0]  (!%p4376_p11), %s4372_s5, 512, %s4374_s7, %s193_s9  }
  0x75   : > { %p6941_p0 = scmp.ne.s32.totalorder %s6935_s23, 0 }
  0x77   : > { %213 = sbr.rel (%p6941_p0) target bundleno = 1428 (0x594), region = 36 }
  0x7e   : > { %p6942_p9 = scmp.eq.s32.totalorder %s4232_s19, 0 }
  0x80   : > { %4124 = dma.done.wait (%p6942_p9), [#allocation4], 64   ;;  %p6943_p8 = pmov %p6942_p9 }
  0x81   : > { %s219_s6 = sand.u32 1, %s4232_s19   ;;  %s6708_s28 = sand.u32 1, %s4149_s16  }
  0x82   : > { %4126 = vsyncadd (%p6943_p8), [#allocation4], 4294967232  ;;  %s4415_s8 = sshll.u32 %s6708_s28, 5  ;;  %s220_s5 = scalar_lea.sflag [#allocation7], %s219_s6 }
  0x83   : > { %s223_s7 = scalar_lea.vmem [#allocation6], %s4415_s8  ;;  %p6944_p11 = scmp.ne.s32.totalorder %s6933_s21, 0 }
  0x85   : > { %4128 = dma.done.wait (%p6944_p11), %s220_s5, 512  }
  0x86   : > { %4130 = vsyncadd (%p6944_p11), %s220_s5, 4294966784  ;;  %p6945_p13 = pmov %p6943_p8 }
  0x87   : > { %p6946_p6 = pmov %p6943_p8 }
  0x88   : > { %4132 = dma.done.wait (%p6945_p13), [#allocation7], 384  }
  0x89   : > { %4134 = vsyncadd (%p6946_p6), [#allocation7], 4294966912  ;;  %p6947_p10 = pmov %p6946_p6 }
  0x8a   : > { %p6948_p3 = pmov %p6946_p6 }
  0x8b   : > { %4136 = dma.done.wait (%p6947_p10), [#allocation10], 384  }
  0x8c   : > { %4138 = vsyncadd (%p6948_p3), [#allocation10], 4294966912  ;;  %v4430_v0 = vld [vmem:[%s223_s7 + $0x10] sm:$0xff]  ;;  %v4432_v1 = vld [vmem:[%s223_s7 + $0x18] sm:$0xff]  ;;  %s4165_s21 = smov 9   ;;  %s4166_s23 = smov 8   ;;  %v269_v10 = vlaneseq }
  0x8d   : > { %v4434_v2 = vld [vmem:[%s223_s7] sm:$0xff]  ;;  %v3670_v3 = vpack.i.bf16 %v4430_v0, %v4432_v1  ;;  %v4438_v4 = vld [vmem:[%s223_s7 + $0x8] sm:$0xff]  ;;  %s4167_s9 = smov 1   ;;  %s4168_s11 = smov 7   ;;  %v6726_v8 = vmov 0.0   ;;  %v6759_v20 = vmov 0  }
  0x8e   : > { %v3660_v5 = vpack.i.bf16 %v4438_v4, %v4434_v2  ;;  %v3705_v6 = vpack.i.bf16 %v4432_v1, %v4434_v2  ;;  %v3700_v7 = vpack.i.bf16 %v4430_v0, %v4438_v4  ;;  %s4169_s10 = smov 127   ;;  %s4170_s25 = smov 120   ;;  %1158 = vmatprep.mubr.f32.mxu0 %v6726_v8  ;;  %1229 = vmatprep.mubr.f32.mxu1 %v6726_v8  ;;  %v4494_v9 = vld [vmem:[#allocation3] sm:$0xf]  ;;  %v280_v13 = vshrl.u32 %v269_v10, 7 }
  0x8f   : > { %3671 = vrot.lane.b32.xlu1 %v3670_v3, %s4165_s21  ;;  %s4171_s27 = smov 121   ;;  %s4172_s30 = smov 72   ;;  %v709_v11 = vand.u32 512, %v4494_v9  ;;  %v753_v12 = vand.u32 1024, %v4494_v9  ;;  %v797_v14 = vand.u32 2048, %v4494_v9  ;;  %v841_v15 = vand.u32 4096, %v4494_v9 }
  0x90   : > { %3661 = vrot.lane.b32.xlu0 %v3660_v5, %s4165_s21  ;;  %s4173_s24 = smov 73   ;;  %s4175_s14 = smov 119   ;;  %v4500_v16 = vsub.s32 1, %v280_v13  ;;  %v4502_v17 = vsub.s32 3, %v280_v13  ;;  %v4504_v18 = vsub.s32 0, %v280_v13  ;;  %v4506_v19 = vsub.s32 2, %v280_v13 }
  0x91   : > { %s4176_s20 = smov 65   ;;  %s6709_s29 = smov 71   ;;  %vm710_vm0 = vcmp.ne.s32.totalorder %v709_v11, 0  ;;  %vm754_vm1 = vcmp.ne.s32.totalorder %v753_v12, 0  ;;  %v889_v23 = vand.u32 16384, %v4494_v9  ;;  %v4511_v24 = vand.u32 127, %v269_v10 }
  0x92   : > { %s4178_s6 = smov 63   ;;  %s4179_s5 = smov 64   ;;  %v711_v21 = vsel %vm710_vm0, 1, %v6759_v20  ;;  %v755_v22 = vsel %vm754_vm1, 1, %v6759_v20  ;;  %vm798_vm2 = vcmp.ne.s32.totalorder %v797_v14, 0  ;;  %vm842_vm3 = vcmp.ne.s32.totalorder %v841_v15, 0 }
  0x93   : > { %3676 = vrot.lane.b32.xlu1 %v3670_v3, %s4166_s23  ;;  %s4180_s7 = smov 56   ;;  %s4181_s28 = smov 57   ;;  %v933_v25 = vand.u32 32768, %v4494_v9  ;;  %v719_v26 = vrot.slane %v711_v21, %v4500_v16  ;;  %v763_v27 = vrot.slane %v755_v22, %v4500_v16  ;;  %v727_v28 = vrot.slane %v711_v21, %v4502_v17 }
  0x94   : > { %3666 = vrot.lane.b32.xlu0 %v3660_v5, %s4166_s23  ;;  %v771_v29 = vrot.slane %v755_v22, %v4502_v17  ;;  %v715_v30 = vrot.slane %v711_v21, %v4504_v18  ;;  %v759_v31 = vrot.slane %v755_v22, %v4504_v18  ;;  %v723_v32 = vrot.slane %v711_v21, %v4506_v19 }
  0x95   : > { %v767_v33 = vrot.slane %v755_v22, %v4506_v19  ;;  %v4523_v34 = vsel %vm798_vm2, 1, %v6759_v20  ;;  %v4526_v35 = vsel %vm842_vm3, 1, %v6759_v20  ;;  %vm890_vm4 = vcmp.ne.s32.totalorder %v889_v23, 0 }
  0x96   : > { %v977_v36 = vand.u32 65536, %v4494_v9  ;;  %vm934_vm6 = vcmp.ne.s32.totalorder %v933_v25, 0  ;;  %vm4530_vm7 = vcmp.eq.s32.totalorder %v719_v26, 1  ;;  %v6949_v37 = vmov 0 }
  0x97   : > { %3686 = vrot.lane.b32.xlu1 %v3660_v5, %s4167_s9  ;;  %v6950_v37 = vsel %vm4530_vm7, 4294967295, %v6949_v37  ;;  %vm4535_vm9 = vcmp.eq.s32.totalorder %v763_v27, 1  ;;  %v6952_v38 = vmov 0  ;;  %vm4539_vm10 = vcmp.eq.s32.totalorder %v727_v28, 1 }
  0x98   : > { %3681 = vrot.lane.b32.xlu0 %v3660_v5, %s4168_s11  ;;  %6951 = vst [vmem:[#allocation17_spill] sm:$0xff] %v6950_v37  ;;  %v6953_v38 = vsel %vm4535_vm9, 4294967295, %v6952_v38  ;;  %v6955_v39 = vmov 0  ;;  %vm4543_vm11 = vcmp.eq.s32.totalorder %v771_v29, 1  ;;  %v6958_v40 = vmov 0 }
  0x99   : > { %6954 = vst [vmem:[#allocation18_spill] sm:$0xff] %v6953_v38  ;;  %v6956_v39 = vsel %vm4539_vm10, 4294967295, %v6955_v39  ;;  %v6959_v40 = vsel %vm4543_vm11, 4294967295, %v6958_v40  ;;  %vm4547_vm12 = vcmp.eq.s32.totalorder %v715_v30, 1  ;;  %v6961_v41 = vmov 0 }
  0x9a   : > { %6957 = vst [vmem:[#allocation19_spill] sm:$0xff] %v6956_v39  ;;  %6960 = vst [vmem:[#allocation20_spill] sm:$0xff] %v6959_v40  ;;  %v6962_v41 = vsel %vm4547_vm12, 4294967295, %v6961_v41  ;;  %vm4551_vm13 = vcmp.eq.s32.totalorder %v759_v31, 1  ;;  %v6964_v42 = vmov 0  ;;  %v807_v43 = vrot.slane %v4523_v34, %v4500_v16 }
  0x9b   : > { %3696 = vrot.lane.b32.xlu1 %v3670_v3, %s4167_s9  ;;  %6963 = vst [vmem:[#allocation21_spill] sm:$0xff] %v6962_v41  ;;  %v6965_v42 = vsel %vm4551_vm13, 4294967295, %v6964_v42  ;;  %v851_v44 = vrot.slane %v4526_v35, %v4500_v16  ;;  %v4560_v45 = vsel %vm890_vm4, 1, %v6759_v20  ;;  %vm4562_vm14 = vcmp.eq.s32.totalorder %v723_v32, 1 }
  0x9c   : > { %3691 = vrot.lane.b32.xlu0 %v3670_v3, %s4168_s11  ;;  %6966 = vst [vmem:[#allocation22_spill] sm:$0xff] %v6965_v42  ;;  %v6967_v46 = vmov 0  ;;  %vm4566_vm15 = vcmp.eq.s32.totalorder %v767_v33, 1  ;;  %v6970_v47 = vmov 0  ;;  %v803_v48 = vrot.slane %v4523_v34, %v4504_v18 }
  0x9d   : > { %v6968_v46 = vsel %vm4562_vm14, 4294967295, %v6967_v46  ;;  %v6971_v47 = vsel %vm4566_vm15, 4294967295, %v6970_v47  ;;  %v4573_v49 = vsel %vm934_vm6, 1, %v6759_v20  ;;  %vm4575_vm0 = vcmp.ne.s32.totalorder %v977_v36, 0 }
  0x9e   : > { %6969 = vst [vmem:[#allocation23_spill] sm:$0xff] %v6968_v46  ;;  %6972 = vst [vmem:[#allocation24_spill] sm:$0xff] %v6971_v47  ;;  %v1021_v51 = vand.u32 131072, %v4494_v9  ;;  %v847_v52 = vrot.slane %v4526_v35, %v4504_v18  ;;  %v815_v53 = vrot.slane %v4523_v34, %v4502_v17  ;;  %v859_v54 = vrot.slane %v4526_v35, %v4502_v17 }
  0x9f   : > { %3706 = vrot.lane.b32.xlu1 %v3705_v6, %s4169_s10  ;;  %v811_v55 = vrot.slane %v4523_v34, %v4506_v19  ;;  %v855_v57 = vrot.slane %v4526_v35, %v4506_v19  ;;  %v899_v58 = vrot.slane %v4560_v45, %v4500_v16  ;;  %v907_v59 = vrot.slane %v4560_v45, %v4502_v17 }
  0xa0   : > { %3701 = vrot.lane.b32.xlu0 %v3700_v7, %s4169_s10  ;;  %v895_v60 = vrot.slane %v4560_v45, %v4504_v18  ;;  %vm4598_vm3 = vcmp.eq.s32.totalorder %v807_v43, 1  ;;  %v6975_v62 = vmov 0  ;;  %vm4602_vm4 = vcmp.eq.s32.totalorder %v851_v44, 1 }
  0xa1   : > { %v6976_v62 = vsel %vm4598_vm3, 4294967295, %v6975_v62  ;;  %v6978_v63 = vmov 0  ;;  %vm4616_vm6 = vcmp.ne.s32.totalorder %v1021_v51, 0  ;;  %v320_v13 = vand.u32 2, %v4494_v9 }
  0xa2   : > { %6977 = vst [vmem:[#allocation25_spill] sm:$0xff] %v6976_v62  ;;  %v6979_v63 = vsel %vm4602_vm4, 4294967295, %v6978_v63  ;;  %v939_v21 = vrot.slane %v4573_v49, %v4504_v18  ;;  %v951_v22 = vrot.slane %v4573_v49, %v4502_v17  ;;  %v6983_v25 = vmov 0 }
  0xa3   : > { %3716 = vrot.lane.b32.xlu1 %v3700_v7, %s4170_s25  ;;  %6980 = vst [vmem:[#allocation26_spill] sm:$0xff] %v6979_v63  ;;  %vm4629_vm2 = vcmp.eq.s32.totalorder %v847_v52, 1  ;;  %v6986_v26 = vmov 0  ;;  %v947_v30 = vrot.slane %v4573_v49, %v4506_v19  ;;  %vm4641_vm1 = vcmp.eq.s32.totalorder %v815_v53, 1 }
  0xa4   : > { %3711 = vrot.lane.b32.xlu0 %v3700_v7, %s4171_s27  ;;  %v276_v7 = vand.u32 1, %v4494_v9  ;;  %v6987_v26 = vsel %vm4629_vm2, 4294967295, %v6986_v26  ;;  %v6989_v34 = vmov 0  ;;  %vm4645_vm8 = vcmp.eq.s32.totalorder %v859_v54, 1 }
  0xa5   : > { %6988 = vst [vmem:[#allocation28_spill] sm:$0xff] %v6987_v26  ;;  %v6990_v34 = vsel %vm4641_vm1, 4294967295, %v6989_v34  ;;  %v6992_v35 = vmov 0  ;;  %v4652_v36 = vsel %vm4616_vm6, 1, %v6759_v20  ;;  %vm6997_vm2 = vcmp.lt.s32.totalorder %v4511_v24, 9 }
  0xa6   : > { %6991 = vst [vmem:[#allocation29_spill] sm:$0xff] %v6990_v34  ;;  %v6993_v35 = vsel %vm4645_vm8, 4294967295, %v6992_v35  ;;  %vm4654_vm5 = vcmp.ne.s32.totalorder %v276_v7, 0  ;;  %vm4664_vm8 = vcmp.eq.s32.totalorder %v811_v55, 1  ;;  %v6998_v51 = vmov 0  ;;  %vm7006_vm4 = vmmov %vm6997_vm2 }
  0xa7   : > { %3726 = vrot.lane.b32.xlu1 %v3705_v6, %s4170_s25  ;;  %6994 = vst [vmem:[#allocation30_spill] sm:$0xff] %v6993_v35  ;;  %v6999_v51 = vsel %vm4664_vm8, 4294967295, %v6998_v51  ;;  %vm4668_vm6 = vcmp.eq.s32.totalorder %v855_v57, 1  ;;  %v7001_v52 = vmov 0  ;;  %vm7007_vm1 = vcmp.lt.s32.totalorder %v4511_v24, 8  ;;  %vm7008_vm8 = vmmov %vm6997_vm2 }
  0xa8   : > { %3721 = vrot.lane.b32.xlu0 %v3705_v6, %s4171_s27  ;;  %v4613_v6 = vsel %vm4575_vm0, 1, %v6759_v20  ;;  %vm4625_vm0 = vcmp.eq.s32.totalorder %v803_v48, 1  ;;  %7000 = vst [vmem:[#allocation31_spill] sm:$0xff] %v6999_v51  ;;  %v7002_v52 = vsel %vm4668_vm6, 4294967295, %v7001_v52  ;;  %vm7009_vm6 = vmmov %vm6997_vm2  ;;  %vm4688_vm3 = vcmp.eq.s32.totalorder %v899_v58, 1 }
  0xa9   : > { %v6984_v25 = vsel %vm4625_vm0, 4294967295, %v6983_v25  ;;  %v987_v27 = vrot.slane %v4613_v6, %v4500_v16  ;;  %v983_v28 = vrot.slane %v4613_v6, %v4504_v18  ;;  %v995_v29 = vrot.slane %v4613_v6, %v4502_v17  ;;  %7003 = vst [vmem:[#allocation32_spill] sm:$0xff] %v7002_v52 }
  0xaa   : > { %6985 = vst [vmem:[#allocation27_spill] sm:$0xff] %v6984_v25  ;;  %vm4672_vm0 = vcmp.ne.s32.totalorder %v320_v13, 0  ;;  %v1505_v41 = vand.u32 4194304, %v4494_v9 }
  0xab   : > { %3736 = vrot.lane.b32.xlu1 %v3660_v5, %s4172_s30 }
  0xac   : > { %3731 = vrot.lane.b32.xlu0 %v3660_v5, %s4173_s24 }
  0xaf   : > { %1012 = vrot.lane.b32.xlu1 %v4430_v0, %s4175_s14 }
  0xb0   : > { %1010 = vrot.lane.b32.xlu0 %v4438_v4, %s4175_s14 }
  0xb3   : > { %3746 = vrot.lane.b32.xlu1 %v3670_v3, %s4172_s30 }
  0xb4   : > { %3741 = vrot.lane.b32.xlu0 %v3670_v3, %s4173_s24 }
  0xb7   : > { %1014 = vrot.lane.b32.xlu1 %v4432_v1, %s4175_s14 }
  0xb8   : > { %1008 = vrot.lane.b32.xlu0 %v4434_v2, %s4175_s14 }
  0xbb   : > { %3756 = vrot.lane.b32.xlu1 %v3660_v5, %s4176_s20 }
  0xbc   : > { %3751 = vrot.lane.b32.xlu0 %v3660_v5, %s6709_s29 }
  0xbf   : > { %3766 = vrot.lane.b32.xlu1 %v3670_v3, %s4176_s20 }
  0xc0   : > { %3761 = vrot.lane.b32.xlu0 %v3670_v3, %s6709_s29  ;;  %s4182_s29 = smov 55  }
  0xc3   : > { %3776 = vrot.lane.b32.xlu1 %v3660_v5, %s4178_s6 }
  0xc4   : > { %3771 = vrot.lane.b32.xlu0 %v3660_v5, %s4179_s5 }
  0xc7   : > { %3786 = vrot.lane.b32.xlu1 %v3670_v3, %s4178_s6 }
  0xc8   : > { %3781 = vrot.lane.b32.xlu0 %v3670_v3, %s4179_s5 }
  0xcb   : > { %3796 = vrot.lane.b32.xlu1 %v3660_v5, %s4180_s7 }
  0xcc   : > { %3791 = vrot.lane.b32.xlu0 %v3660_v5, %s4181_s28  ;;  %v943_v5 = vrot.slane %v4573_v49, %v4500_v16  ;;  %v7071_v49 = vmov 0 }
  0xcf   : > { %3806 = vrot.lane.b32.xlu1 %v3670_v3, %s4180_s7 }
  0xd0   : > { %3801 = vrot.lane.b32.xlu0 %v3670_v3, %s4181_s28  ;;  %v903_v3 = vrot.slane %v4560_v45, %v4506_v19  ;;  %v7028_v45 = vmov 0 }
  0xd3   : > { %617 = vrot.lane.b32.xlu1 %v4438_v4, %s4182_s29 }
  0xd4   : > { %615 = vrot.lane.b32.xlu0 %v4434_v2, %s4182_s29 }
  0xd7   : > { %619 = vrot.lane.b32.xlu1 %v4430_v0, %s4182_s29 }
  0xd8   : > { %621 = vrot.lane.b32.xlu0 %v4432_v1, %s4182_s29 }
 0x101   : > { %v3672_v56 = vpop.permute.xlu1 %3671 }
 0x102   : > { %v3662_v61 = vpop.permute.xlu0 %3661  ;;  %v3674_v10 = vunpack.i.h.bf16 %v3672_v56  ;;  %v3673_v11 = vunpack.i.l.bf16 %v3672_v56 }
 0x103   : > { %v3664_v14 = vunpack.i.h.bf16 %v3662_v61  ;;  %v3663_v15 = vunpack.i.l.bf16 %v3662_v61 }
 0x104   : > { %v705_v50 = vsel %vm6997_vm2, %v3674_v10, %v3673_v11  ;;  %vm7013_vm2 = vmmov %vm7007_vm1 }
 0x105   : > { %v3677_v23 = vpop.permute.xlu1 %3676  ;;  %v707_v54 = vsel %vm7006_vm4, %v3663_v15, %v3664_v14  ;;  %v708_v55 = vsel %vm7008_vm8, %v3673_v11, %v3663_v15  ;;  %v706_v57 = vsel %vm7009_vm6, %v3664_v14, %v3674_v10  ;;  %vm7012_vm4 = vmmov %vm7007_vm1  ;;  %vm4702_vm6 = vcmp.eq.s32.totalorder %v907_v59, 1 }
 0x106   : > { %v3679_v31 = vunpack.i.h.bf16 %v3677_v23  ;;  %v3678_v32 = vunpack.i.l.bf16 %v3677_v23  ;;  %v3667_v33 = vpop.permute.xlu0 %3666  ;;  %vm4711_vm8 = vcmp.eq.s32.totalorder %v895_v60, 1  ;;  %v1031_v60 = vrot.slane %v4652_v36, %v4500_v16 }
 0x107   : > { %v3669_v44 = vunpack.i.h.bf16 %v3667_v33  ;;  %v3668_v48 = vunpack.i.l.bf16 %v3667_v33 }
 0x108   : > { %v749_v56 = vsel %vm7007_vm1, %v3679_v31, %v3678_v32 }
 0x109   : > { %v3687_v7 = vpop.permute.xlu1 %3686  ;;  %v751_v12 = vsel %vm7012_vm4, %v3668_v48, %v3669_v44  ;;  %v3281_v13 = vpack.c.bf16 %v749_v56, %v705_v50  ;;  %v752_v23 = vsel %vm7007_vm1, %v3678_v32, %v3668_v48  ;;  %v750_v10 = vsel %vm7013_vm2, %v3669_v44, %v3679_v31  ;;  %vm7018_vm2 = vmpackc.low %vm4543_vm11, %vm4539_vm10 }
 0x10a   : > { %v3689_v11 = vunpack.i.h.bf16 %v3687_v7  ;;  %v3688_v14 = vunpack.i.l.bf16 %v3687_v7  ;;  %v3682_v15 = vpop.permute.xlu0 %3681  ;;  %v3257_v33 = vpack.c.bf16 %v751_v12, %v707_v54  ;;  %v3260_v50 = vpack.c.bf16 %v752_v23, %v708_v55  ;;  %vm7020_vm1 = vmpackc.low %vm4535_vm9, %vm4530_vm7 }
 0x10b   : > { %v3684_v59 = vunpack.i.h.bf16 %v3682_v15  ;;  %v3683_v31 = vunpack.i.l.bf16 %v3682_v15  ;;  %3283 = vmatprep.subr.msk.bf16.mxu1 %vm7018_vm2, %v3281_v13  ;;  %v3284_v44 = vpack.c.bf16 %v750_v10, %v706_v57  ;;  %v991_v48 = vrot.slane %v4613_v6, %v4506_v19 }
 0x10c   : > { %vm7019_vm4 = vcmp.lt.s32.totalorder %v4511_v24, 1  ;;  %3259 = vmatprep.subr.msk.bf16.mxu0 %vm7020_vm1, %v3257_v33  ;;  %v4734_v56 = vsel %vm4654_vm5, 1, %v6759_v20  ;;  %v4739_v55 = vsel %vm4672_vm0, 1, %v6759_v20  ;;  %vm7022_vm1 = vmpackc.low %vm4551_vm13, %vm4547_vm12  ;;  %vm7024_vm2 = vnez %v6976_v62 }
 0x10d   : > { %v839_v54 = vsel %vm7019_vm4, %v3688_v14, %v3689_v11  ;;  %vm7021_vm4 = vcmp.lt.s32.totalorder %v4511_v24, 7  ;;  %3262 = vmatpush1.bf16.msk.msra.mxu0 %vm7022_vm1, %v3260_v50  ;;  %vm7023_vm5 = vmpackc.low %vm4566_vm15, %vm4562_vm14  ;;  %v3697_v43 = vpop.permute.xlu1 %3696  ;;  %vm7025_vm0 = vnez %v6979_v63  ;;  %vm4773_vm10 = vcmp.eq.s32.totalorder %v943_v5, 1 }
 0x10e   : > { %v795_v57 = vsel %vm7021_vm4, %v3683_v31, %v3684_v59  ;;  %3286 = vmatpush1.bf16.msk.msra.mxu1 %vm7023_vm5, %v3284_v44  ;;  %vm4760_vm4 = vcmp.eq.s32.totalorder %v903_v3, 1  ;;  %v3699_v23 = vunpack.i.h.bf16 %v3697_v43  ;;  %v3698_v10 = vunpack.i.l.bf16 %v3697_v43  ;;  %v3692_v15 = vpop.permute.xlu0 %3691  ;;  %vm7037_vm12 = vmpackc.low %vm7025_vm0, %vm7024_vm2 }
 0x10f   : > { %v3263_v13 = vpack.c.bf16 %v839_v54, %v795_v57  ;;  %v7029_v45 = vsel %vm4773_vm10, 4294967295, %v7028_v45  ;;  %vm4780_vm14 = vcmp.eq.s32.totalorder %v987_v27, 1  ;;  %v7031_v3 = vmov 0 }
 0x110   : > { %7030 = vst [vmem:[#allocation33_spill] sm:$0xff] %v7029_v45  ;;  %v7032_v3 = vsel %vm4780_vm14, 4294967295, %v7031_v3  ;;  %v3694_v50 = vunpack.i.h.bf16 %v3692_v15  ;;  %v3693_v44 = vunpack.i.l.bf16 %v3692_v15  ;;  %v286_v54 = vrot.slane %v4734_v56, %v4500_v16 }
 0x111   : > { %7033 = vst [vmem:[#allocation34_spill] sm:$0xff] %v7032_v3  ;;  %v330_v5 = vrot.slane %v4739_v55, %v4500_v16  ;;  %vm7034_vm5 = vcmp.lt.s32.totalorder %v4511_v24, 1  ;;  %3265 = vmatprep.subr.msk.bf16.mxu0 %vm7037_vm12, %v3263_v13  ;;  %vm7038_vm13 = vnez %v6984_v25  ;;  %vm7039_vm11 = vnez %v6987_v26 }
 0x112   : > { %v837_v57 = vsel %vm7034_vm5, %v3699_v23, %v3698_v10  ;;  %vm7035_vm1 = vmmov %vm7034_vm5  ;;  %v364_v15 = vand.u32 4, %v4494_v9  ;;  %vm7040_vm5 = vcmp.lt.s32.totalorder %v4511_v24, 7  ;;  %vm7043_vm2 = vnez %v6990_v34  ;;  %v3702_v12 = vpop.permute.xlu0 %3701 }
 0x113   : > { %v838_v27 = vsel %vm7035_vm1, %v3689_v11, %v3699_v23  ;;  %vm7036_vm15 = vmmov %vm7035_vm1  ;;  %v793_v8 = vsel %vm7040_vm5, %v3694_v50, %v3693_v44  ;;  %v3707_v23 = vpop.permute.xlu1 %3706  ;;  %vm7044_vm12 = vnez %v6993_v35  ;;  %vm4819_vm7 = vcmp.eq.s32.totalorder %v939_v21, 1 }
 0x114   : > { %v840_v43 = vsel %vm7036_vm15, %v3698_v10, %v3688_v14  ;;  %vm7041_vm1 = vmmov %vm7040_vm5  ;;  %v7045_v13 = vmov 0  ;;  %vm4826_vm5 = vcmp.eq.s32.totalorder %v983_v28, 1  ;;  %v3709_v33 = vunpack.i.h.bf16 %v3707_v23 }
 0x115   : > { %v794_v11 = vsel %vm7041_vm1, %v3684_v59, %v3694_v50  ;;  %vm7042_vm15 = vmmov %vm7041_vm1  ;;  %v7046_v13 = vsel %vm4819_vm7, 4294967295, %v7045_v13  ;;  %v7048_v59 = vmov 0  ;;  %v3287_v50 = vpack.c.bf16 %v837_v57, %v793_v8 }
 0x116   : > { %v796_v14 = vsel %vm7042_vm15, %v3693_v44, %v3683_v31  ;;  %7047 = vst [vmem:[#allocation35_spill] sm:$0xff] %v7046_v13  ;;  %v7049_v59 = vsel %vm4826_vm5, 4294967295, %v7048_v59  ;;  %v3290_v44 = vpack.c.bf16 %v838_v27, %v794_v11  ;;  %vm7051_vm1 = vnez %v6999_v51 }
 0x117   : > { %7050 = vst [vmem:[#allocation36_spill] sm:$0xff] %v7049_v59  ;;  %v3266_v10 = vpack.c.bf16 %v840_v43, %v796_v14  ;;  %vm7052_vm15 = vnez %v7002_v52  ;;  %vm4839_vm9 = vcmp.eq.s32.totalorder %v951_v22, 1  ;;  %v7053_v21 = vmov 0 }
 0x118   : > { %v7054_v21 = vsel %vm4839_vm9, 4294967295, %v7053_v21  ;;  %vm4846_vm5 = vcmp.eq.s32.totalorder %v995_v29, 1  ;;  %v7056_v8 = vmov 0  ;;  %v3708_v28 = vunpack.i.l.bf16 %v3707_v23 }
 0x119   : > { %7055 = vst [vmem:[#allocation37_spill] sm:$0xff] %v7054_v21  ;;  %v7057_v8 = vsel %vm4846_vm5, 4294967295, %v7056_v8  ;;  %v3704_v57 = vunpack.i.h.bf16 %v3702_v12  ;;  %v3703_v27 = vunpack.i.l.bf16 %v3702_v12  ;;  %vm6735_vm7 = vmmov 1  }
 0x11a   : > { %7058 = vst [vmem:[#allocation38_spill] sm:$0xff] %v7057_v8  ;;  %vm4853_vm0 = vmpackc.low %vm4688_vm3, %vm6735_vm7  ;;  %v7059_v43 = vmov 0  ;;  %vm4860_vm9 = vcmp.eq.s32.totalorder %v947_v30, 1  ;;  %v7062_v6 = vmov 0  ;;  %vm4864_vm14 = vcmp.eq.s32.totalorder %v991_v48, 1 }
 0x11b   : > { %v7060_v43 = vsel %vm4853_vm0, 4294967295, %v7059_v43  ;;  %v7063_v6 = vsel %vm4860_vm9, 4294967295, %v7062_v6  ;;  %v7065_v22 = vmov 0  ;;  %vm7068_vm3 = vmpackc.low %vm7039_vm11, %vm7038_vm13  ;;  %vm7070_vm9 = vmmov 1  }
 0x11c   : > { %7061 = vst [vmem:[#allocation39_spill] sm:$0xff] %v7060_v43  ;;  %7064 = vst [vmem:[#allocation40_spill] sm:$0xff] %v7063_v6  ;;  %v7066_v22 = vsel %vm4864_vm14, 4294967295, %v7065_v22  ;;  %3268 = vmatpush1.bf16.msk.msra.mxu0 %vm7068_vm3, %v3266_v10  ;;  %v294_v30 = vrot.slane %v4734_v56, %v4502_v17  ;;  %vm4889_vm14 = vcmp.ne.s32.totalorder %v364_v15, 0  ;;  %v408_v48 = vand.u32 8, %v4494_v9  ;;  %v3717_v15 = vpop.permute.xlu1 %3716 }
 0x11d   : > { %7067 = vst [vmem:[#allocation41_spill] sm:$0xff] %v7066_v22  ;;  %vm7069_vm7 = vmpackc.low %vm7044_vm12, %vm7043_vm2  ;;  %v452_v12 = vand.u32 16, %v4494_v9  ;;  %v7081_v10 = vmov 0  ;;  %v3719_v32 = vunpack.i.h.bf16 %v3717_v15  ;;  %v3718_v29 = vunpack.i.l.bf16 %v3717_v15 }
 0x11e   : > { %3289 = vmatprep.subr.msk.bf16.mxu1 %vm7069_vm7, %v3287_v50  ;;  %vm4883_vm5 = vmpackc.low %vm4702_vm6, %vm7070_vm9  ;;  %vm7076_vm7 = vcmp.lt.s32.totalorder %v4511_v24, 127  ;;  %v7158_v45 = vmov 0  ;;  %v7272_v62 = vmov 0  ;;  %v7276_v63 = vmov 0 }
 0x11f   : > { %v7072_v49 = vsel %vm4883_vm5, 4294967295, %v7071_v49  ;;  %v888_v11 = vsel %vm7076_vm7, %v3709_v33, %v3708_v28  ;;  %vm7077_vm3 = vmmov %vm7076_vm7 }
 0x120   : > { %7073 = vst [vmem:[#allocation42_spill] sm:$0xff] %v7072_v49  ;;  %v885_v58 = vsel %vm7077_vm3, %v3704_v57, %v3709_v33  ;;  %vm7078_vm6 = vmmov %vm7077_vm3  ;;  %v3293_v33 = vpack.c.bf16 %v888_v11, %v4432_v1  ;;  %v7146_v1 = vrot.slane %v4734_v56, %v4506_v19 }
 0x121   : > { %v886_v14 = vsel %vm7078_vm6, %v3703_v27, %v3704_v57  ;;  %vm7079_vm2 = vmmov %vm7077_vm3  ;;  %v3296_v50 = vpack.c.bf16 %v885_v58, %v4430_v0  ;;  %v338_v0 = vrot.slane %v4739_v55, %v4502_v17  ;;  %v3727_v58 = vpop.permute.xlu1 %3726 }
 0x122   : > { %v887_v23 = vsel %vm7079_vm2, %v3708_v28, %v3703_v27  ;;  %vm7080_vm12 = vmpackc.low %vm7052_vm15, %vm7051_vm1  ;;  %v3269_v28 = vpack.c.bf16 %v886_v14, %v4438_v4  ;;  %v3712_v27 = vpop.permute.xlu0 %3711  ;;  %v496_v4 = vand.u32 32, %v4494_v9  ;;  %v3728_v15 = vunpack.i.l.bf16 %v3727_v58 }
 0x123   : > { %3292 = vmatpush1.bf16.msk.msra.mxu1 %vm7080_vm12, %v3290_v44  ;;  %vm4911_vm7 = vmpackc.low %vm4711_vm8, %vm7070_vm9  ;;  %v3272_v57 = vpack.c.bf16 %v887_v23, %v4434_v2  ;;  %v7084_v44 = vmov 0  ;;  %v3714_v31 = vunpack.i.h.bf16 %v3712_v27  ;;  %v3713_v7 = vunpack.i.l.bf16 %v3712_v27 }
 0x124   : > { %v7082_v10 = vsel %vm4911_vm7, 4294967295, %v7081_v10  ;;  %vm4922_vm2 = vmpackc.low %vm4760_vm4, %vm7070_vm9  ;;  %3271 = vmatprep.subr.msk.bf16.mxu0 %vm4853_vm0, %v3269_v28  ;;  %3295 = vmatprep.subr.msk.bf16.mxu1 %vm4883_vm5, %v3293_v33  ;;  %vm4934_vm9 = vcmp.ne.s32.totalorder %v408_v48, 0  ;;  %vm7089_vm8 = vcmp.lt.s32.totalorder %v4511_v24, 120  ;;  %vm7090_vm4 = vcmp.lt.s32.totalorder %v4511_v24, 121 }
 0x125   : > { %7083 = vst [vmem:[#allocation43_spill] sm:$0xff] %v7082_v10  ;;  %v7085_v44 = vsel %vm4922_vm2, 4294967295, %v7084_v44  ;;  %v974_v53 = vsel %vm7089_vm8, %v3718_v29, %v3719_v32  ;;  %v930_v11 = vsel %vm7090_vm4, %v3713_v7, %v3714_v31  ;;  %3274 = vmatpush1.bf16.msk.msra.mxu0 %vm4911_vm7, %v3272_v57  ;;  %vm7091_vm12 = vnez %v7032_v3 }
 0x126   : > { %7086 = vst [vmem:[#allocation44_spill] sm:$0xff] %v7085_v44  ;;  %vm6746_vm3 = vmpackc.low %vm7091_vm12, %vm4773_vm10  ;;  %v334_v48 = vrot.slane %v4739_v55, %v4506_v19  ;;  %v3275_v14 = vpack.c.bf16 %v974_v53, %v930_v11  ;;  %v3729_v23 = vunpack.i.h.bf16 %v3727_v58  ;;  %v3722_v33 = vpop.permute.xlu0 %3721  ;;  %v4957_v28 = vsel %vm4889_vm14, 1, %v6759_v20  ;;  %v4995_v58 = vpop.permute.xlu1 %3736 }
 0x127   : > { %3298 = vmatpush1.bf16.msk.msra.mxu1 %vm4922_vm2, %v3296_v50  ;;  %v3724_v50 = vunpack.i.h.bf16 %v3722_v33  ;;  %v3723_v57 = vunpack.i.l.bf16 %v3722_v33  ;;  %v4962_v27 = vsel %vm4934_vm9, 1, %v6759_v20  ;;  %vm4964_vm8 = vcmp.ne.s32.totalorder %v452_v12, 0 }
 0x128   : > { %vm7094_vm4 = vcmp.lt.s32.totalorder %v4511_v24, 120  ;;  %3277 = vmatprep.subr.msk.bf16.mxu0 %vm6746_vm3, %v3275_v14  ;;  %vm7097_vm7 = vnez %v7046_v13  ;;  %vm4985_vm5 = vcmp.ne.s32.totalorder %v496_v4, 0  ;;  %vm7104_vm2 = vnez %v7054_v21 }
 0x129   : > { %v973_v53 = vsel %vm7094_vm4, %v3719_v32, %v3729_v23  ;;  %vm7095_vm6 = vmmov %vm7094_vm4  ;;  %vm7105_vm9 = vnez %v7057_v8  ;;  %v540_v4 = vand.u32 64, %v4494_v9  ;;  %vm5019_vm0 = vcmp.eq.s32.totalorder %v286_v54, 1 }
 0x12a   : > { %v975_v11 = vsel %vm7095_vm6, %v3728_v15, %v3718_v29  ;;  %vm7096_vm14 = vmmov %vm7094_vm4  ;;  %vm7098_vm4 = vnez %v7049_v59  ;;  %vm7101_vm6 = vcmp.lt.s32.totalorder %v4511_v24, 121  ;;  %v5002_v33 = vpop.permute.xlu0 %3731  ;;  %vm5026_vm10 = vcmp.eq.s32.totalorder %v330_v5, 1 }
 0x12b   : > { %v976_v61 = vsel %vm7096_vm14, %v3729_v23, %v3728_v15  ;;  %v929_v12 = vsel %vm7101_vm6, %v3714_v31, %v3724_v50  ;;  %vm7102_vm14 = vmmov %vm7101_vm6  ;;  %v7108_v31 = vmov 0  ;;  %vm5045_vm15 = vcmp.eq.s32.totalorder %v294_v30, 1  ;;  %v1013_v30 = vpop.permute.xlu1 %1012 }
 0x12c   : > { %v931_v32 = vsel %vm7102_vm14, %v3723_v57, %v3713_v7  ;;  %vm7103_vm3 = vmmov %vm7101_vm6  ;;  %v3302_v15 = vpack.c.bf16 %v973_v53, %v929_v12  ;;  %vm7106_vm6 = vnez %v7063_v6  ;;  %vm7107_vm14 = vnez %v7066_v22 }
 0x12d   : > { %v932_v2 = vsel %vm7103_vm3, %v3724_v50, %v3723_v57  ;;  %v3278_v14 = vpack.c.bf16 %v975_v11, %v931_v32  ;;  %v584_v7 = vand.u32 128, %v4494_v9  ;;  %vm5012_vm3 = vcmp.eq.s32.totalorder %v1031_v60, 1  ;;  %vm7117_vm12 = vmpackc.low %vm7098_vm4, %vm7097_vm7 }
 0x12e   : > { %v3299_v23 = vpack.c.bf16 %v976_v61, %v932_v2  ;;  %v7109_v31 = vsel %vm5012_vm3, 4294967295, %v7108_v31  ;;  %v7111_v50 = vmov 0  ;;  %v7114_v57 = vmov 0  ;;  %vm7118_vm1 = vmpackc.low %vm7105_vm9, %vm7104_vm2 }
 0x12f   : > { %7110 = vst [vmem:[#allocation45_spill] sm:$0xff] %v7109_v31  ;;  %v7112_v50 = vsel %vm5019_vm0, 4294967295, %v7111_v50  ;;  %v7115_v57 = vsel %vm5026_vm10, 4294967295, %v7114_v57  ;;  %v374_v60 = vrot.slane %v4957_v28, %v4500_v16  ;;  %3280 = vmatpush1.bf16.msk.msra.mxu0 %vm7117_vm12, %v3278_v14  ;;  %v7119_v54 = vmov 0 }
 0x130   : > { %7113 = vst [vmem:[#allocation46_spill] sm:$0xff] %v7112_v50  ;;  %7116 = vst [vmem:[#allocation47_spill] sm:$0xff] %v7115_v57  ;;  %3301 = vmatprep.subr.msk.bf16.mxu1 %vm7118_vm1, %v3299_v23  ;;  %v7120_v54 = vsel %vm5045_vm15, 4294967295, %v7119_v54  ;;  %vm5049_vm13 = vcmp.eq.s32.totalorder %v338_v0, 1  ;;  %v7122_v5 = vmov 0  ;;  %v370_v53 = vrot.slane %v4957_v28, %v4504_v18 }
 0x131   : > { %7121 = vst [vmem:[#allocation48_spill] sm:$0xff] %v7120_v54  ;;  %v7123_v5 = vsel %vm5049_vm13, 4294967295, %v7122_v5  ;;  %vm7125_vm1 = vmpackc.low %vm7107_vm14, %vm7106_vm6  ;;  %v7126_v0 = vrot.slane %v4652_v36, %v4504_v18  ;;  %v7127_v12 = vmov 0  ;;  %v7130_v32 = vrot.slane %v4652_v36, %v4502_v17 }
 0x132   : > { %7124 = vst [vmem:[#allocation49_spill] sm:$0xff] %v7123_v5  ;;  %3304 = vmatpush1.bf16.msk.msra.mxu1 %vm7125_vm1, %v3302_v15  ;;  %v7131_v2 = vmov 0  ;;  %v7134_v14 = vrot.slane %v4734_v56, %v4504_v18  ;;  %v7135_v23 = vmov 0  ;;  %v7138_v15 = vrot.slane %v4739_v55, %v4504_v18 }
 0x133   : > { %vm5067_vm12 = vcmp.eq.s32.totalorder %v7126_v0, 1  ;;  %vm5074_vm2 = vcmp.eq.s32.totalorder %v7130_v32, 1  ;;  %v7139_v0 = vmov 0  ;;  %v418_v32 = vrot.slane %v4962_v27, %v4500_v16 }
 0x134   : > { %v7128_v12 = vsel %vm5067_vm12, 4294967295, %v7127_v12  ;;  %v7132_v2 = vsel %vm5074_vm2, 4294967295, %v7131_v2  ;;  %vm5081_vm6 = vcmp.eq.s32.totalorder %v7134_v14, 1  ;;  %vm5088_vm1 = vcmp.eq.s32.totalorder %v7138_v15, 1  ;;  %v1011_v15 = vpop.permute.xlu0 %1010 }
 0x135   : > { %7129 = vst [vmem:[#allocation50_spill] sm:$0xff] %v7128_v12  ;;  %7133 = vst [vmem:[#allocation51_spill] sm:$0xff] %v7132_v2  ;;  %v7136_v23 = vsel %vm5081_vm6, 4294967295, %v7135_v23  ;;  %v7140_v0 = vsel %vm5088_vm1, 4294967295, %v7139_v0  ;;  %v414_v61 = vrot.slane %v4962_v27, %v4504_v18  ;;  %v5099_v14 = vsel %vm4964_vm8, 1, %v6759_v20 }
 0x136   : > { %7137 = vst [vmem:[#allocation52_spill] sm:$0xff] %v7136_v23  ;;  %7141 = vst [vmem:[#allocation53_spill] sm:$0xff] %v7140_v0  ;;  %v5104_v11 = vsel %vm4985_vm5, 1, %v6759_v20  ;;  %v3739_v55 = vunpack.i.h.bf16 %v4995_v58  ;;  %v7142_v6 = vrot.slane %v4652_v36, %v4506_v19  ;;  %v7143_v22 = vmov 0 }
 0x137   : > { %vm5117_vm8 = vcmp.eq.s32.totalorder %v7146_v1, 1  ;;  %v7147_v21 = vmov 0  ;;  %vm5121_vm9 = vcmp.eq.s32.totalorder %v334_v48, 1  ;;  %v7150_v29 = vmov 0 }
 0x138   : > { %vm5110_vm14 = vcmp.eq.s32.totalorder %v7142_v6, 1  ;;  %v7148_v21 = vsel %vm5117_vm8, 4294967295, %v7147_v21  ;;  %v7151_v29 = vsel %vm5121_vm9, 4294967295, %v7150_v29  ;;  %v426_v20 = vrot.slane %v4962_v27, %v4502_v17 }
 0x139   : > { %v7144_v22 = vsel %vm5110_vm14, 4294967295, %v7143_v22  ;;  %7149 = vst [vmem:[#allocation55_spill] sm:$0xff] %v7148_v21  ;;  %7152 = vst [vmem:[#allocation56_spill] sm:$0xff] %v7151_v29  ;;  %vm541_vm5 = vcmp.ne.s32.totalorder %v540_v4, 0  ;;  %vm585_vm7 = vcmp.ne.s32.totalorder %v584_v7, 0  ;;  %v3738_v36 = vunpack.i.l.bf16 %v4995_v58  ;;  %v3742_v58 = vpop.permute.xlu0 %3741 }
 0x13a   : > { %7145 = vst [vmem:[#allocation54_spill] sm:$0xff] %v7144_v22  ;;  %v3734_v6 = vunpack.i.h.bf16 %v5002_v33  ;;  %v3733_v8 = vunpack.i.l.bf16 %v5002_v33  ;;  %vm7153_vm4 = vcmp.lt.s32.totalorder %v4511_v24, 119  ;;  %v422_v48 = vrot.slane %v4962_v27, %v4506_v19  ;;  %v3747_v33 = vpop.permute.xlu1 %3746 }
 0x13b   : > { %v1018_v56 = vsel %vm7153_vm4, %v1011_v15, %v1013_v30  ;;  %v7154_v31 = vmov 0   ;;  %v628_v4 = vand.u32 256, %v4494_v9  ;;  %v3749_v13 = vunpack.i.h.bf16 %v3747_v33 }
 0x13c   : > { %3063 = vmatprep.subr.msk.mxu0 %vm5012_vm3, %v1018_v56  ;;  %v5146_v56 = vsel %vm541_vm5, 1, %v7154_v31  ;;  %v5149_v27 = vsel %vm585_vm7, 1, %v7154_v31  ;;  %v3748_v59 = vunpack.i.l.bf16 %v3747_v33  ;;  %vm5153_vm11 = vcmp.eq.s32.totalorder %v374_v60, 1 }
 0x13d   : > { %v7155_v7 = vmov 0  ;;  %vm5157_vm9 = vcmp.eq.s32.totalorder %v418_v32, 1  ;;  %vm7161_vm7 = vcmp.lt.s32.totalorder %v4511_v24, 72  ;;  %vm7162_vm5 = vcmp.lt.s32.totalorder %v4511_v24, 73  ;;  %v1009_v35 = vpop.permute.xlu0 %1008 }
 0x13e   : > { %v7156_v7 = vsel %vm5153_vm11, 4294967295, %v7155_v7  ;;  %v7159_v45 = vsel %vm5157_vm9, 4294967295, %v7158_v45  ;;  %v318_v33 = vsel %vm7161_vm7, %v3738_v36, %v3739_v55  ;;  %v274_v44 = vsel %vm7162_vm5, %v3733_v8, %v3734_v6  ;;  %vm7163_vm4 = vmmov %vm7161_vm7  ;;  %v1015_v52 = vpop.permute.xlu1 %1014 }
 0x13f   : > { %7157 = vst [vmem:[#allocation57_spill] sm:$0xff] %v7156_v7  ;;  %7160 = vst [vmem:[#allocation58_spill] sm:$0xff] %v7159_v45  ;;  %v3744_v60 = vunpack.i.h.bf16 %v3742_v58  ;;  %v3743_v10 = vunpack.i.l.bf16 %v3742_v58  ;;  %v316_v49 = vsel %vm7163_vm4, %v3749_v13, %v3748_v59  ;;  %v7165_v58 = vmov 0 }
 0x140   : > { %vm7164_vm7 = vmmov %vm7162_vm5  ;;  %vm5181_vm5 = vcmp.eq.s32.totalorder %v370_v53, 1  ;;  %vm5185_vm3 = vcmp.eq.s32.totalorder %v414_v61, 1  ;;  %v7168_v32 = vmov 0  ;;  %vm5189_vm9 = vcmp.ne.s32.totalorder %v628_v4, 0 }
 0x141   : > { %v272_v51 = vsel %vm7164_vm7, %v3744_v60, %v3743_v10  ;;  %v7166_v58 = vsel %vm5181_vm5, 4294967295, %v7165_v58  ;;  %v7169_v32 = vsel %vm5185_vm3, 4294967295, %v7168_v32  ;;  %v7171_v1 = vmov 0 }
 0x142   : > { %7167 = vst [vmem:[#allocation59_spill] sm:$0xff] %v7166_v58  ;;  %7170 = vst [vmem:[#allocation60_spill] sm:$0xff] %v7169_v32  ;;  %v7172_v1 = vsel %vm5189_vm9, 4294967295, %v7171_v1  ;;  %v1381_v3 = vand.u32 262144, %v4494_v9  ;;  %v5194_v43 = vpack.c.bf16 %v318_v33, %v274_v44  ;;  %v319_v34 = vsel %vm7163_vm4, %v3748_v59, %v3738_v36  ;;  %v1053_v33 = vld [vmem:[#allocation8 + $0x8] sm:$0xff] }
 0x143   : > { %v275_v53 = vsel %vm7164_vm7, %v3743_v10, %v3733_v8  ;;  %vm7173_vm5 = vcmp.lt.s32.totalorder %v4511_v24, 119  ;;  %v7174_v4 = vrot.slane %v4957_v28, %v4502_v17  ;;  %v7175_v44 = vmov 0 }
 0x144   : > { %v1017_v61 = vsel %vm7173_vm5, %v1013_v30, %v1015_v52  ;;  %vm5213_vm4 = vcmp.eq.s32.totalorder %v426_v20, 1  ;;  %v7178_v59 = vmov 0  ;;  %vm7181_vm7 = vcmp.lt.s32.totalorder %v4511_v24, 72 }
 0x145   : > { %vm5209_vm11 = vcmp.eq.s32.totalorder %v7174_v4, 1  ;;  %v7179_v59 = vsel %vm5213_vm4, 4294967295, %v7178_v59  ;;  %v317_v8 = vsel %vm7181_vm7, %v3739_v55, %v3749_v13  ;;  %vm7182_vm5 = vcmp.lt.s32.totalorder %v4511_v24, 73  ;;  %v3752_v4 = vpop.permute.xlu0 %3751 }
 0x146   : > { %v7176_v44 = vsel %vm5209_vm11, 4294967295, %v7175_v44  ;;  %7180 = vst [vmem:[#allocation62_spill] sm:$0xff] %v7179_v59  ;;  %v273_v10 = vsel %vm7182_vm5, %v3734_v6, %v3744_v60  ;;  %vm7183_vm9 = vcmp.lt.s32.totalorder %v4511_v24, 119  ;;  %v7185_v20 = vrot.slane %v4957_v28, %v4506_v19  ;;  %v3757_v28 = vpop.permute.xlu1 %3756 }
 0x147   : > { %7177 = vst [vmem:[#allocation61_spill] sm:$0xff] %v7176_v44  ;;  %v1019_v30 = vsel %vm7183_vm9, %v1009_v35, %v1011_v15  ;;  %vm7184_vm3 = vmmov %vm7183_vm9  ;;  %v7186_v13 = vmov 0  ;;  %vm5236_vm7 = vcmp.eq.s32.totalorder %v422_v48, 1  ;;  %v7189_v55 = vmov 0 }
 0x148   : > { %v1020_v36 = vsel %vm7184_vm3, %v1015_v52, %v1009_v35  ;;  %vm5232_vm4 = vcmp.eq.s32.totalorder %v7185_v20, 1  ;;  %v7190_v55 = vsel %vm5236_vm7, 4294967295, %v7189_v55  ;;  %v5240_v15 = vpack.c.bf16 %v316_v49, %v272_v51  ;;  %3064 = vmatpush1.msk.msra.mxu0 %vm5067_vm12, %v1019_v30  ;;  %vm7192_vm3 = vmpackc.low %vm5026_vm10, %vm5019_vm0 }
 0x149   : > { %v7187_v13 = vsel %vm5232_vm4, 4294967295, %v7186_v13  ;;  %7191 = vst [vmem:[#allocation64_spill] sm:$0xff] %v7190_v55  ;;  %3079 = vmatprep.subr.msk.mxu1 %vm5074_vm2, %v1020_v36  ;;  %v1412_v51 = vand.u32 524288, %v4494_v9  ;;  %v5255_v49 = vpack.c.bf16 %v319_v34, %v275_v53  ;;  %3307 = vmatprep.subr.msk.bf16.mxu0 %vm7192_vm3, %v5194_v43  ;;  %vm7193_vm5 = vnez %v7151_v29  ;;  %vm7196_vm9 = vmpackc.low %vm5049_vm13, %vm5045_vm15  ;;  %v3762_v23 = vpop.permute.xlu0 %3761 }
 0x14a   : > { %7188 = vst [vmem:[#allocation63_spill] sm:$0xff] %v7187_v13  ;;  %3080 = vmatpush1.msk.msra.mxu1 %vm5110_vm14, %v1017_v61  ;;  %vm7194_vm11 = vnez %v7172_v1  ;;  %v1443_v48 = vand.u32 1048576, %v4494_v9  ;;  %v5277_v60 = vpack.c.bf16 %v317_v8, %v273_v10  ;;  %v3759_v53 = vunpack.i.h.bf16 %v3757_v28  ;;  %vm7210_vm13 = vmpackc.low %vm7193_vm5, %vm5117_vm8  ;;  %v3767_v52 = vpop.permute.xlu1 %3766 }
 0x14b   : > { %v5274_v6 = vsel %vm7194_vm11, 1, %v7154_v31  ;;  %v3758_v61 = vunpack.i.l.bf16 %v3757_v28  ;;  %vm7195_vm3 = vcmask 588800   ;;  %3331 = vmatprep.subr.msk.bf16.mxu1 %vm7196_vm9, %v5240_v15  ;;  %v7197_v1 = vrot.slane %v5099_v14, %v4500_v16  ;;  %vm7207_vm9 = vmpackc.low %vm5088_vm1, %vm5081_vm6 }
 0x14c   : > { %3030 = vmatmul.mubr.msk.f32.vlgmr.msra.gmra.mrb[0].mxu0 %vm7195_vm3, %v1053_v33  ;;  %v7198_v8 = vmov 0  ;;  %v7201_v10 = vrot.slane %v5104_v11, %v4500_v16  ;;  %v7202_v30 = vmov 0  ;;  %vm5302_vm15 = vcmp.ne.s32.totalorder %v1381_v3, 0 }
 0x14d   : > { %vm5291_vm0 = vcmp.eq.s32.totalorder %v7197_v1, 1  ;;  %v3754_v20 = vunpack.i.h.bf16 %v3752_v4  ;;  %v3753_v28 = vunpack.i.l.bf16 %v3752_v4  ;;  %3310 = vmatpush1.bf16.msk.msra.mxu0 %vm7207_vm9, %v5255_v49  ;;  %vm7208_vm11 = vcmask 588800  }
 0x14e   : > { %v7199_v8 = vsel %vm5291_vm0, 4294967295, %v7198_v8  ;;  %vm5298_vm3 = vcmp.eq.s32.totalorder %v7201_v10, 1  ;;  %3031 = vmatmul.mubr.msk.f32.vlgmr.msra.gmra.mrb[0].mxu1 %vm7208_vm11, %v1053_v33  ;;  %vm7209_vm14 = vcmp.lt.s32.totalorder %v4511_v24, 65  ;;  %v7211_v1 = vmov 0.0   ;;  %v3777_v3 = vpop.permute.xlu1 %3776 }
 0x14f   : > { %7200 = vst [vmem:[#allocation65_spill] sm:$0xff] %v7199_v8  ;;  %v7203_v30 = vsel %vm5298_vm3, 4294967295, %v7202_v30  ;;  %v406_v10 = vsel %vm7209_vm14, %v3758_v61, %v3759_v53  ;;  %3334 = vmatpush1.bf16.msk.msra.mxu1 %vm7210_vm13, %v5277_v60  ;;  %1303 = vmatprep.mubr.f32.mxu0 %v7211_v1  ;;  %vm5330_vm11 = vcmp.ne.s32.totalorder %v1412_v51, 0  ;;  %vm7214_vm14 = vcmp.lt.s32.totalorder %v4511_v24, 71 }
 0x150   : > { %7204 = vst [vmem:[#allocation66_spill] sm:$0xff] %v7203_v30  ;;  %v362_v34 = vsel %vm7214_vm14, %v3753_v28, %v3754_v20  ;;  %vm7215_vm9 = vnez %v7156_v7  ;;  %vm7216_vm13 = vnez %v7159_v45  ;;  %v7217_v4 = vrot.slane %v5099_v14, %v4504_v18  ;;  %1374 = vmatprep.mubr.f32.mxu1 %v7211_v1 }
 0x151   : > { %v7218_v33 = vmov 0  ;;  %v7221_v51 = vrot.slane %v5104_v11, %v4504_v18  ;;  %v7222_v35 = vmov 0  ;;  %v5364_v54 = vpack.c.bf16 %v406_v10, %v362_v34 }
 0x152   : > { %vm5343_vm5 = vcmp.eq.s32.totalorder %v7217_v4, 1  ;;  %v5361_v4 = vsel %vm5302_vm15, 1, %v7154_v31  ;;  %v3769_v5 = vunpack.i.h.bf16 %v3767_v52  ;;  %v7225_v0 = vrot.slane %v5099_v14, %v4502_v17 }
 0x153   : > { %v7219_v33 = vsel %vm5343_vm5, 4294967295, %v7218_v33  ;;  %vm5350_vm6 = vcmp.eq.s32.totalorder %v7221_v51, 1  ;;  %v3768_v51 = vunpack.i.l.bf16 %v3767_v52  ;;  %v7226_v21 = vmov 0 }
 0x154   : > { %7220 = vst [vmem:[#allocation67_spill] sm:$0xff] %v7219_v33  ;;  %v7223_v35 = vsel %vm5350_vm6, 4294967295, %v7222_v35  ;;  %vm5369_vm14 = vcmp.eq.s32.totalorder %v7225_v0, 1  ;;  %v7229_v29 = vrot.slane %v5104_v11, %v4502_v17  ;;  %v7230_v36 = vmov 0 }
 0x155   : > { %7224 = vst [vmem:[#allocation68_spill] sm:$0xff] %v7223_v35  ;;  %v7227_v21 = vsel %vm5369_vm14, 4294967295, %v7226_v21  ;;  %vm5380_vm15 = vcmp.ne.s32.totalorder %v1443_v48, 0  ;;  %v3764_v52 = vunpack.i.h.bf16 %v3762_v23  ;;  %v3763_v10 = vunpack.i.l.bf16 %v3762_v23 }
 0x156   : > { %7228 = vst [vmem:[#allocation69_spill] sm:$0xff] %v7227_v21  ;;  %vm5376_vm8 = vcmp.eq.s32.totalorder %v7229_v29, 1  ;;  %v7235_v22 = vrot.slane %v5099_v14, %v4506_v19  ;;  %v7236_v0 = vmov 0  ;;  %v7239_v50 = vrot.slane %v5104_v11, %v4506_v19 }
 0x157   : > { %v7231_v36 = vsel %vm5376_vm8, 4294967295, %v7230_v36  ;;  %v7240_v29 = vmov 0  ;;  %v5403_v23 = vsel %vm5330_vm11, 1, %v7154_v31  ;;  %vm7243_vm2 = vcmp.lt.s32.totalorder %v4511_v24, 65 }
 0x158   : > { %7232 = vst [vmem:[#allocation70_spill] sm:$0xff] %v7231_v36  ;;  %vm5387_vm1 = vcmp.eq.s32.totalorder %v7235_v22, 1  ;;  %vm5394_vm10 = vcmp.eq.s32.totalorder %v7239_v50, 1  ;;  %v404_v22 = vsel %vm7243_vm2, %v3769_v5, %v3768_v51  ;;  %vm7244_vm12 = vmmov %vm7243_vm2  ;;  %vm7247_vm8 = vnez %v7166_v58 }
 0x159   : > { %v7237_v0 = vsel %vm5387_vm1, 4294967295, %v7236_v0  ;;  %v7241_v29 = vsel %vm5394_vm10, 4294967295, %v7240_v29  ;;  %v405_v14 = vsel %vm7244_vm12, %v3759_v53, %v3769_v5  ;;  %vm7245_vm1 = vmmov %vm7243_vm2  ;;  %vm7248_vm11 = vnez %v7169_v32  ;;  %v3787_v32 = vpop.permute.xlu1 %3786 }
 0x15a   : > { %7238 = vst [vmem:[#allocation71_spill] sm:$0xff] %v7237_v0  ;;  %7242 = vst [vmem:[#allocation72_spill] sm:$0xff] %v7241_v29  ;;  %v407_v50 = vsel %vm7245_vm1, %v3768_v51, %v3758_v61  ;;  %vm7249_vm2 = vcmp.lt.s32.totalorder %v4511_v24, 71  ;;  %v5436_v51 = vsel %vm5380_vm15, 1, %v7154_v31  ;;  %v7255_v34 = vmov 0 }
 0x15b   : > { %vm7246_vm10 = vmpackc.low %vm7216_vm13, %vm7215_vm9  ;;  %v360_v5 = vsel %vm7249_vm2, %v3764_v52, %v3763_v10  ;;  %vm7253_vm9 = vnez %v7179_v59  ;;  %v7266_v59 = vmov 0  ;;  %v7268_v55 = vrot.slane %v5149_v27, %v4504_v18 }
 0x15c   : > { %3313 = vmatprep.subr.msk.bf16.mxu0 %vm7246_vm10, %v5364_v54  ;;  %vm6812_vm14 = vmpackc.low %vm7248_vm11, %vm7247_vm8  ;;  %vm7252_vm10 = vnez %v7176_v44  ;;  %v5440_v11 = vpack.c.bf16 %v404_v22, %v360_v5  ;;  %v7259_v22 = vmov 0  ;;  %v7265_v44 = vrot.slane %v5146_v56, %v4504_v18 }
 0x15d   : > { %vm7250_vm12 = vmmov %vm7249_vm2  ;;  %v7269_v13 = vmov 0  ;;  %v1430_v45 = vrot.slane %v5403_v23, %v4502_v17  ;;  %v3789_v12 = vunpack.i.h.bf16 %v3787_v32  ;;  %v7271_v26 = vrot.slane %v5146_v56, %v4502_v17 }
 0x15e   : > { %v361_v53 = vsel %vm7250_vm12, %v3754_v20, %v3764_v52  ;;  %vm7251_vm1 = vmmov %vm7249_vm2  ;;  %v3779_v20 = vunpack.i.h.bf16 %v3777_v3  ;;  %v3772_v52 = vpop.permute.xlu0 %3771  ;;  %vm7264_vm12 = vcmp.lt.s32.totalorder %v4511_v24, 64  ;;  %v7278_v57 = vrot.slane %v5146_v56, %v4506_v19 }
 0x15f   : > { %v363_v61 = vsel %vm7251_vm1, %v3763_v10, %v3753_v28  ;;  %v5442_v7 = vpack.c.bf16 %v405_v14, %v361_v53  ;;  %vm6825_vm2 = vmpackc.low %vm5236_vm7, %vm5232_vm4  ;;  %v7254_v28 = vrot.slane %v5146_v56, %v4500_v16  ;;  %v7258_v10 = vrot.slane %v5149_v27, %v4500_v16 }
 0x160   : > { %v5438_v48 = vpack.c.bf16 %v407_v50, %v363_v61  ;;  %v3778_v14 = vunpack.i.l.bf16 %v3777_v3  ;;  %v3774_v50 = vunpack.i.h.bf16 %v3772_v52  ;;  %v3773_v5 = vunpack.i.l.bf16 %v3772_v52  ;;  %vm7262_vm1 = vmpackc.low %vm7253_vm9, %vm7252_vm10 }
 0x161   : > { %vm5453_vm15 = vcmp.eq.s32.totalorder %v7254_v28, 1  ;;  %vm5460_vm13 = vcmp.eq.s32.totalorder %v7258_v10, 1  ;;  %v1422_v53 = vrot.slane %v5403_v23, %v4500_v16  ;;  %3337 = vmatprep.subr.msk.bf16.mxu1 %vm7262_vm1, %v5440_v11  ;;  %v1387_v61 = vrot.slane %v5361_v4, %v4504_v18  ;;  %vm7289_vm9 = vmpackc.low %vm5298_vm3, %vm5291_vm0 }
 0x162   : > { %v7256_v34 = vsel %vm5453_vm15, 4294967295, %v7255_v34  ;;  %v7260_v22 = vsel %vm5460_vm13, 4294967295, %v7259_v22  ;;  %3316 = vmatpush1.bf16.msk.msra.mxu0 %vm6812_vm14, %v5438_v48  ;;  %v1418_v3 = vrot.slane %v5403_v23, %v4504_v18  ;;  %v1399_v52 = vrot.slane %v5361_v4, %v4502_v17  ;;  %3340 = vmatpush1.bf16.msk.msra.mxu1 %vm6825_vm2, %v5442_v7  ;;  %v3782_v25 = vpop.permute.xlu0 %3781 }
 0x163   : > { %7257 = vst [vmem:[#allocation73_spill] sm:$0xff] %v7256_v34  ;;  %7261 = vst [vmem:[#allocation74_spill] sm:$0xff] %v7260_v22  ;;  %v1474_v28 = vand.u32 2097152, %v4494_v9  ;;  %vm7263_vm14 = vcmp.lt.s32.totalorder %v4511_v24, 63  ;;  %v450_v58 = vsel %vm7264_vm12, %v3773_v5, %v3774_v50  ;;  %vm5509_vm12 = vcmp.eq.s32.totalorder %v7268_v55, 1 }
 0x164   : > { %v494_v10 = vsel %vm7263_vm14, %v3778_v14, %v3779_v20  ;;  %vm5502_vm14 = vcmp.eq.s32.totalorder %v7265_v44, 1  ;;  %v7270_v13 = vsel %vm5509_vm12, 4294967295, %v7269_v13  ;;  %v3788_v44 = vunpack.i.l.bf16 %v3787_v32 }
 0x165   : > { %v7267_v59 = vsel %vm5502_vm14, 4294967295, %v7266_v59  ;;  %v5517_v2 = vpack.c.bf16 %v494_v10, %v450_v58  ;;  %vm5522_vm2 = vcmp.eq.s32.totalorder %v7271_v26, 1  ;;  %v7275_v55 = vrot.slane %v5149_v27, %v4502_v17 }
 0x166   : > { %v7273_v62 = vsel %vm5522_vm2, 4294967295, %v7272_v62  ;;  %v1395_v58 = vrot.slane %v5361_v4, %v4506_v19  ;;  %v3784_v10 = vunpack.i.h.bf16 %v3782_v25  ;;  %v3783_v32 = vunpack.i.l.bf16 %v3782_v25  ;;  %v3792_v42 = vpop.permute.xlu0 %3791 }
 0x167   : > { %7274 = vst [vmem:[#allocation75_spill] sm:$0xff] %v7273_v62  ;;  %vm5529_vm1 = vcmp.eq.s32.totalorder %v7275_v55, 1  ;;  %vm5538_vm4 = vcmp.eq.s32.totalorder %v7278_v57, 1  ;;  %v7279_v26 = vmov 0  ;;  %v7282_v46 = vrot.slane %v5149_v27, %v4506_v19  ;;  %3319 = vmatprep.subr.msk.bf16.mxu0 %vm7289_vm9, %v5517_v2 }
 0x168   : > { %v7277_v63 = vsel %vm5529_vm1, 4294967295, %v7276_v63  ;;  %v7280_v26 = vsel %vm5538_vm4, 4294967295, %v7279_v26  ;;  %v7283_v55 = vmov 0  ;;  %v1426_v47 = vrot.slane %v5403_v23, %v4506_v19 }
 0x169   : > { %7281 = vst [vmem:[#allocation76_spill] sm:$0xff] %v7280_v26  ;;  %vm5545_vm7 = vcmp.eq.s32.totalorder %v7282_v46, 1  ;;  %vm7286_vm8 = vcmp.lt.s32.totalorder %v4511_v24, 63  ;;  %vm5569_vm4 = vcmp.ne.s32.totalorder %v1474_v28, 0  ;;  %vm7295_vm9 = vnez %v7227_v21 }
 0x16a   : > { %v7284_v55 = vsel %vm5545_vm7, 4294967295, %v7283_v55  ;;  %v492_v25 = vsel %vm7286_vm8, %v3789_v12, %v3788_v44  ;;  %vm7287_vm11 = vmmov %vm7286_vm8  ;;  %vm7296_vm7 = vnez %v7231_v36  ;;  %vm5608_vm1 = vcmp.eq.s32.totalorder %v1422_v53, 1 }
 0x16b   : > { %7285 = vst [vmem:[#allocation77_spill] sm:$0xff] %v7284_v55  ;;  %v493_v57 = vsel %vm7287_vm11, %v3779_v20, %v3789_v12  ;;  %vm7288_vm10 = vmmov %vm7286_vm8  ;;  %vm7292_vm11 = vcmp.lt.s32.totalorder %v4511_v24, 64  ;;  %v3797_v20 = vpop.permute.xlu1 %3796  ;;  %vm5616_vm2 = vcmp.eq.s32.totalorder %v1418_v3, 1  ;;  %v7317_v53 = vmov 0 }
 0x16c   : > { %v495_v56 = vsel %vm7288_vm10, %v3788_v44, %v3778_v14  ;;  %v448_v12 = vsel %vm7292_vm11, %v3784_v10, %v3783_v32  ;;  %vm7293_vm10 = vmmov %vm7292_vm11  ;;  %v1536_v14 = vand.u32 8388608, %v4494_v9  ;;  %v3799_v30 = vunpack.i.h.bf16 %v3797_v20 }
 0x16d   : > { %v449_v27 = vsel %vm7293_vm10, %v3774_v50, %v3784_v10  ;;  %vm7294_vm0 = vmmov %vm7293_vm10  ;;  %v5586_v44 = vpack.c.bf16 %v492_v25, %v448_v12  ;;  %vm7297_vm11 = vnez %v7237_v0  ;;  %v7299_v50 = vrot.slane %v5274_v6, %v4500_v16 }
 0x16e   : > { %v451_v23 = vsel %vm7294_vm0, %v3783_v32, %v3773_v5  ;;  %v5588_v8 = vpack.c.bf16 %v493_v57, %v449_v27  ;;  %vm7298_vm0 = vnez %v7241_v29  ;;  %v7300_v5 = vmov 0 }
 0x16f   : > { %v5584_v28 = vpack.c.bf16 %v495_v56, %v451_v23  ;;  %vm5597_vm8 = vcmp.eq.s32.totalorder %v7299_v50, 1  ;;  %v7303_v10 = vrot.slane %v5361_v4, %v4500_v16  ;;  %v7304_v32 = vmov 0 }
 0x170   : > { %v7301_v5 = vsel %vm5597_vm8, 4294967295, %v7300_v5  ;;  %v7306_v25 = vmov 0  ;;  %v3798_v57 = vunpack.i.l.bf16 %v3797_v20  ;;  %v3794_v56 = vunpack.i.h.bf16 %v3792_v42 }
 0x171   : > { %7302 = vst [vmem:[#allocation78_spill] sm:$0xff] %v7301_v5  ;;  %vm5604_vm3 = vcmp.eq.s32.totalorder %v7303_v10, 1  ;;  %v7307_v25 = vsel %vm5608_vm1, 4294967295, %v7306_v25  ;;  %v3793_v12 = vunpack.i.l.bf16 %v3792_v42  ;;  %vm5612_vm10 = vcmp.eq.s32.totalorder %v1387_v61, 1  ;;  %vm7313_vm1 = vmpackc.low %vm5350_vm6, %vm5343_vm5  ;;  %v659_v5 = vld [vmem:[#allocation8] sm:$0xff] }
 0x172   : > { %v7305_v32 = vsel %vm5604_vm3, 4294967295, %v7304_v32  ;;  %v7308_v27 = vmov 0  ;;  %v7310_v23 = vmov 0  ;;  %v5623_v4 = vsel %vm5569_vm4, 1, %v7154_v31  ;;  %3322 = vmatpush1.bf16.msk.msra.mxu0 %vm7313_vm1, %v5584_v28 }
 0x173   : > { %v7309_v27 = vsel %vm5612_vm10, 4294967295, %v7308_v27  ;;  %v7311_v23 = vsel %vm5616_vm2, 4294967295, %v7310_v23  ;;  %vm7314_vm10 = vmpackc.low %vm7296_vm7, %vm7295_vm9  ;;  %vm5637_vm2 = vcmp.eq.s32.totalorder %v1399_v52, 1  ;;  %v7315_v42 = vmov 0 }
 0x174   : > { %7312 = vst [vmem:[#allocation79_spill] sm:$0xff] %v7311_v23  ;;  %3343 = vmatprep.subr.msk.bf16.mxu1 %vm7314_vm10, %v5586_v44  ;;  %v7316_v42 = vsel %vm5637_vm2, 4294967295, %v7315_v42  ;;  %vm5641_vm4 = vcmp.eq.s32.totalorder %v1430_v45, 1  ;;  %v1461_v61 = vrot.slane %v5436_v51, %v4502_v17  ;;  %v1449_v3 = vrot.slane %v5436_v51, %v4504_v18  ;;  %vm7321_vm10 = vmpackc.low %vm7298_vm0, %vm7297_vm11  ;;  %v3807_v45 = vpop.permute.xlu1 %3806 }
 0x175   : > { %v7318_v53 = vsel %vm5641_vm4, 4294967295, %v7317_v53  ;;  %vm7319_vm1 = vcmp.lt.s32.totalorder %v4511_v24, 56  ;;  %vm7320_vm9 = vcmp.lt.s32.totalorder %v4511_v24, 57  ;;  %3346 = vmatpush1.bf16.msk.msra.mxu1 %vm7321_vm10, %v5588_v8  ;;  %v7322_v52 = vrot.slane %v5274_v6, %v4504_v18 }
 0x176   : > { %v582_v46 = vsel %vm7319_vm1, %v3798_v57, %v3799_v30  ;;  %v538_v20 = vsel %vm7320_vm9, %v3793_v12, %v3794_v56  ;;  %v7323_v50 = vmov 0  ;;  %v7325_v10 = vrot.slane %v5274_v6, %v4502_v17 }
 0x177   : > { %vm5666_vm1 = vcmp.eq.s32.totalorder %v7322_v52, 1  ;;  %v7326_v0 = vmov 0  ;;  %vm5677_vm10 = vcmp.eq.s32.totalorder %v1395_v58, 1  ;;  %v7328_v29 = vmov 0  ;;  %v3802_v58 = vpop.permute.xlu0 %3801 }
 0x178   : > { %v7324_v50 = vsel %vm5666_vm1, 4294967295, %v7323_v50  ;;  %vm5673_vm9 = vcmp.eq.s32.totalorder %v7325_v10, 1  ;;  %v7329_v29 = vsel %vm5677_vm10, 4294967295, %v7328_v29  ;;  %vm5681_vm11 = vcmp.eq.s32.totalorder %v1426_v47, 1 }
 0x179   : > { %v7327_v0 = vsel %vm5673_vm9, 4294967295, %v7326_v0  ;;  %v7330_v21 = vmov 0  ;;  %vm5685_vm7 = vcmp.ne.s32.totalorder %v1505_v41, 0  ;;  %vm5689_vm0 = vcmp.ne.s32.totalorder %v1536_v14, 0 }
 0x17a   : > { %v7331_v21 = vsel %vm5681_vm11, 4294967295, %v7330_v21  ;;  %v5693_v10 = vpack.c.bf16 %v582_v46, %v538_v20  ;;  %v3809_v33 = vunpack.i.h.bf16 %v3807_v45  ;;  %v3808_v35 = vunpack.i.l.bf16 %v3807_v45 }
 0x17b   : > { %v7336_v39 = vrot.slane %v5274_v6, %v4506_v19  ;;  %v7337_v47 = vmov 0  ;;  %v7339_v41 = vrot.slane %v5436_v51, %v4500_v16  ;;  %v7340_v14 = vmov 0 }
 0x17c   : > { %v1484_v46 = vrot.slane %v5623_v4, %v4500_v16  ;;  %v3804_v20 = vunpack.i.h.bf16 %v3802_v58  ;;  %v3803_v45 = vunpack.i.l.bf16 %v3802_v58  ;;  %v1492_v40 = vrot.slane %v5623_v4, %v4502_v17 }
 0x17d   : > { %vm5698_vm5 = vcmp.eq.s32.totalorder %v7336_v39, 1  ;;  %vm5705_vm6 = vcmp.eq.s32.totalorder %v7339_v41, 1  ;;  %v1567_v39 = vand.u32 16777216, %v4494_v9  ;;  %vm7342_vm11 = vcmp.lt.s32.totalorder %v4511_v24, 56 }
 0x17e   : > { %v7338_v47 = vsel %vm5698_vm5, 4294967295, %v7337_v47  ;;  %v7341_v14 = vsel %vm5705_vm6, 4294967295, %v7340_v14  ;;  %v580_v6 = vsel %vm7342_vm11, %v3809_v33, %v3808_v35  ;;  %vm7343_vm5 = vmmov %vm7342_vm11  ;;  %v1598_v58 = vand.u32 33554432, %v4494_v9 }
 0x17f   : > { %v581_v37 = vsel %vm7343_vm5, %v3799_v30, %v3809_v33  ;;  %vm7344_vm10 = vmmov %vm7343_vm5  ;;  %vm7346_vm11 = vcmp.lt.s32.totalorder %v4511_v24, 57  ;;  %v5744_v34 = vsel %vm5685_vm7, 1, %v7154_v31  ;;  %vm7353_vm7 = vcmp.lt.s32.totalorder %v4511_v24, 55 }
 0x180   : > { %v583_v41 = vsel %vm7344_vm10, %v3808_v35, %v3798_v57  ;;  %vm7345_vm6 = vmpackc.low %vm5460_vm13, %vm5453_vm15  ;;  %v536_v30 = vsel %vm7346_vm11, %v3804_v20, %v3803_v45  ;;  %v618_v57 = vpop.permute.xlu1 %617  ;;  %vm7349_vm15 = vnez %v7273_v62  ;;  %vm5765_vm13 = vcmp.eq.s32.totalorder %v1461_v61, 1 }
 0x181   : > { %3325 = vmatprep.subr.msk.bf16.mxu0 %vm7345_vm6, %v5693_v10  ;;  %vm7347_vm5 = vmmov %vm7346_vm11  ;;  %vm7350_vm6 = vnez %v7277_v63  ;;  %v5748_v22 = vpack.c.bf16 %v580_v6, %v536_v30  ;;  %vm7351_vm11 = vnez %v7280_v26  ;;  %vm5769_vm9 = vcmp.eq.s32.totalorder %v1449_v3, 1  ;;  %v3964_v26 = vld [vmem:[#allocation3] sm:$0xf] }
 0x182   : > { %v537_v35 = vsel %vm7347_vm5, %v3794_v56, %v3804_v20  ;;  %vm7348_vm10 = vmmov %vm7347_vm5  ;;  %v616_v56 = vpop.permute.xlu0 %615  ;;  %vm7352_vm5 = vnez %v7284_v55  ;;  %v7354_v20 = vmov 0  ;;  %v1515_v36 = vrot.slane %v5744_v34, %v4500_v16 }
 0x183   : > { %v539_v33 = vsel %vm7348_vm10, %v3803_v45, %v3793_v12  ;;  %v5750_v38 = vpack.c.bf16 %v581_v37, %v537_v35  ;;  %v5759_v12 = vsel %vm5689_vm0, 1, %v7154_v31  ;;  %v5763_v52 = vsel %vm7353_vm7, %v616_v56, %v618_v57  ;;  %vm7358_vm0 = vmpackc.low %vm5509_vm12, %vm5502_vm14 }
 0x184   : > { %v5746_v9 = vpack.c.bf16 %v583_v41, %v539_v33  ;;  %v7355_v20 = vsel %vm5765_vm13, 4294967295, %v7354_v20  ;;  %v7356_v37 = vmov 0  ;;  %v1480_v45 = vrot.slane %v5623_v4, %v4504_v18  ;;  %vm7359_vm7 = vmpackc.low %vm7350_vm6, %vm7349_vm15 }
 0x185   : > { %v7357_v37 = vsel %vm5769_vm9, 4294967295, %v7356_v37  ;;  %3349 = vmatprep.subr.msk.bf16.mxu1 %vm7359_vm7, %v5748_v22  ;;  %v1457_v61 = vrot.slane %v5436_v51, %v4506_v19  ;;  %vm5791_vm10 = vcmp.ne.s32.totalorder %v1567_v39, 0  ;;  %vm5795_vm9 = vcmp.ne.s32.totalorder %v1598_v58, 0  ;;  %v620_v51 = vpop.permute.xlu1 %619 }
 0x186   : > { %3328 = vmatpush1.bf16.msk.msra.mxu0 %vm7358_vm0, %v5746_v9  ;;  %vm7364_vm0 = vmpackc.low %vm7352_vm5, %vm7351_vm11  ;;  %vm7365_vm7 = vnez %v7307_v25  ;;  %vm5812_vm6 = vcmp.eq.s32.totalorder %v1484_v46, 1  ;;  %v7366_v39 = vmov 0  ;;  %vm5816_vm14 = vcmp.eq.s32.totalorder %v1492_v40, 1  ;;  %v622_v33 = vpop.permute.xlu0 %621 }
 0x187   : > { %3097 = vmatprep.subr.msk.mxu0 %vm5597_vm8, %v5763_v52  ;;  %3352 = vmatpush1.bf16.msk.msra.mxu1 %vm7364_vm0, %v5750_v38  ;;  %v7367_v39 = vsel %vm5812_vm6, 4294967295, %v7366_v39  ;;  %v7368_v41 = vmov 0  ;;  %v1546_v58 = vrot.slane %v5759_v12, %v4500_v16  ;;  %v1488_v30 = vrot.slane %v5623_v4, %v4506_v19 }
 0x188   : > { %v7369_v41 = vsel %vm5816_vm14, 4294967295, %v7368_v41  ;;  %vm7370_vm0 = vcmp.lt.s32.totalorder %v4511_v24, 55  ;;  %vm7372_vm11 = vnez %v7311_v23  ;;  %v1523_v40 = vrot.slane %v5744_v34, %v4502_v17 }
 0x189   : > { %v5826_v35 = vsel %vm7370_vm0, %v618_v57, %v620_v51  ;;  %v1554_v46 = vrot.slane %v5759_v12, %v4502_v17  ;;  %v1629_v55 = vand.u32 67108864, %v3964_v26  ;;  %vm7373_vm8 = vmmov %vm7370_vm0  ;;  %v5842_v57 = vsel %vm7370_vm0, %v622_v33, %v616_v56 }
 0x18a   : > { %v5838_v4 = vsel %vm7373_vm8, %v620_v51, %v622_v33  ;;  %v1569_v62 = vsel %vm5791_vm10, 1, %v7154_v31  ;;  %v1600_v26 = vsel %vm5795_vm9, 1, %v7154_v31  ;;  %3098 = vmatpush1.msk.msra.mxu0 %vm5666_vm1, %v5842_v57  ;;  %vm7374_vm8 = vnez %v7327_v0  ;;  %vm7380_vm10 = vmpackc.low %vm7365_vm7, %vm5604_vm3 }
 0x18b   : > { %3115 = vmatprep.subr.msk.mxu1 %vm7374_vm8, %v5838_v4  ;;  %vm7376_vm5 = vnez %v7331_v21  ;;  %vm5864_vm15 = vcmp.eq.s32.totalorder %v1480_v45, 1  ;;  %v7377_v56 = vmov 0  ;;  %v1511_v3 = vrot.slane %v5744_v34, %v4504_v18  ;;  %3355 = vmatprep.subr.msk.bf16.mxu0 %vm7380_vm10, %v5277_v60  ;;  %vm7389_vm1 = vmpackc.low %vm5641_vm4, %vm5637_vm2 }
 0x18c   : > { %v7378_v56 = vsel %vm5864_vm15, 4294967295, %v7377_v56  ;;  %v1542_v6 = vrot.slane %v5759_v12, %v4504_v18  ;;  %v1519_v51 = vrot.slane %v5744_v34, %v4506_v19  ;;  %vm7379_vm9 = vnez %v7338_v47 }
 0x18d   : > { %3116 = vmatpush1.msk.msra.mxu1 %vm7379_vm9, %v5826_v35  ;;  %vm7381_vm12 = vnez %v7341_v14  ;;  %vm5887_vm8 = vcmp.eq.s32.totalorder %v1515_v36, 1  ;;  %v7382_v45 = vmov 0  ;;  %vm5891_vm0 = vcmp.eq.s32.totalorder %v1546_v58, 1 }
 0x18e   : > { %v7383_v45 = vsel %vm5887_vm8, 4294967295, %v7382_v45  ;;  %v7384_v34 = vmov 0  ;;  %vm5895_vm9 = vcmp.eq.s32.totalorder %v1457_v61, 1  ;;  %v7386_v33 = vmov 0  ;;  %3379 = vmatprep.subr.msk.bf16.mxu1 %vm7389_vm1, %v5255_v49 }
 0x18f   : > { %v7385_v34 = vsel %vm5891_vm0, 4294967295, %v7384_v34  ;;  %v7387_v33 = vsel %vm5895_vm9, 4294967295, %v7386_v33  ;;  %v1550_v60 = vrot.slane %v5759_v12, %v4506_v19  ;;  %vm7388_vm10 = vcmask 588800  }
 0x190   : > { %3032 = vmatmul.mubr.msk.f32.vlgmr.msra.gmra.mrb[0].mxu0 %vm7388_vm10, %v659_v5  ;;  %vm5912_vm7 = vcmp.eq.s32.totalorder %v1488_v30, 1  ;;  %v7390_v36 = vmov 0  ;;  %vm5916_vm9 = vcmp.eq.s32.totalorder %v1523_v40, 1  ;;  %v7392_v12 = vmov 0 }
 0x191   : > { %v7391_v36 = vsel %vm5912_vm7, 4294967295, %v7390_v36  ;;  %v7393_v12 = vsel %vm5916_vm9, 4294967295, %v7392_v12  ;;  %v1577_v61 = vrot.slane %v1569_v62, %v4500_v16  ;;  %v1608_v58 = vrot.slane %v1600_v26, %v4500_v16  ;;  %1765 = vmatprep.mubr.f32.mxu0 %v7211_v1 }
 0x192   : > { %vm7394_vm1 = vnez %v7309_v27  ;;  %vm7396_vm3 = vcmask 588800   ;;  %vm5933_vm7 = vcmp.eq.s32.totalorder %v1554_v46, 1  ;;  %v7398_v49 = vmov 0 }
 0x193   : > { %vm7395_vm10 = vmpackc.low %vm7372_vm11, %vm7394_vm1  ;;  %3033 = vmatmul.mubr.msk.f32.vlgmr.msra.gmra.mrb[0].mxu1 %vm7396_vm3, %v659_v5  ;;  %v7399_v49 = vsel %vm5933_vm7, 4294967295, %v7398_v49  ;;  %v1585_v30 = vrot.slane %v1569_v62, %v4502_v17  ;;  %v1616_v40 = vrot.slane %v1600_v26, %v4502_v17  ;;  %vm5939_vm9 = vcmp.ne.s32.totalorder %v1629_v55, 0 }
 0x194   : > { %3358 = vmatpush1.bf16.msk.msra.mxu0 %vm7395_vm10, %v5194_v43  ;;  %vm7402_vm3 = vmpackc.low %vm5812_vm6, %vm7381_vm12  ;;  %vm7403_vm10 = vnez %v7329_v29  ;;  %vm5959_vm11 = vcmp.eq.s32.totalorder %v1511_v3, 1  ;;  %v7405_v43 = vmov 0  ;;  %vm5963_vm2 = vcmp.eq.s32.totalorder %v1542_v6, 1  ;;  %1836 = vmatprep.mubr.f32.mxu1 %v7211_v1 }
 0x195   : > { %3361 = vmatprep.subr.msk.bf16.mxu0 %vm7402_vm3, %v5442_v7  ;;  %vm7404_vm4 = vmpackc.low %vm7376_vm5, %vm7403_vm10  ;;  %v7406_v43 = vsel %vm5959_vm11, 4294967295, %v7405_v43  ;;  %vm5967_vm3 = vcmp.eq.s32.totalorder %v1519_v51, 1  ;;  %v7409_v7 = vmov 0  ;;  %vm7412_vm1 = vnez %v7387_v33 }
 0x196   : > { %3382 = vmatpush1.bf16.msk.msra.mxu1 %vm7404_vm4, %v5240_v15  ;;  %v7410_v7 = vsel %vm5967_vm3, 4294967295, %v7409_v7  ;;  %vm7411_vm4 = vmpackc.low %vm5816_vm14, %vm5765_vm13  ;;  %vm7413_vm10 = vnez %v7391_v36  ;;  %vm5981_vm12 = vcmp.eq.s32.totalorder %v1550_v60, 1  ;;  %v1573_v5 = vrot.slane %v1569_v62, %v4504_v18 }
 0x197   : > { %3385 = vmatprep.subr.msk.bf16.mxu1 %vm7411_vm4, %v5438_v48  ;;  %v1604_v46 = vrot.slane %v1600_v26, %v4504_v18  ;;  %v1581_v3 = vrot.slane %v1569_v62, %v4506_v19  ;;  %vm7416_vm13 = vnez %v7393_v12  ;;  %vm5993_vm14 = vcmp.eq.s32.totalorder %v1577_v61, 1 }
 0x198   : > { %v7417_v48 = vmov 0  ;;  %vm5997_vm5 = vcmp.eq.s32.totalorder %v1608_v58, 1  ;;  %v1631_v51 = vsel %vm5939_vm9, 1, %v7154_v31  ;;  %v1612_v62 = vrot.slane %v1600_v26, %v4506_v19 }
 0x199   : > { %v7418_v48 = vsel %vm5993_vm14, 4294967295, %v7417_v48  ;;  %vm7421_vm4 = vnez %v7357_v37  ;;  %vm6016_vm14 = vcmp.eq.s32.totalorder %v1585_v30, 1  ;;  %v7423_v60 = vmov 0 }
 0x19a   : > { %vm7422_vm6 = vmpackc.low %vm5864_vm15, %vm7421_vm4  ;;  %v7424_v60 = vsel %vm6016_vm14, 4294967295, %v7423_v60  ;;  %vm6020_vm9 = vcmp.eq.s32.totalorder %v1616_v40, 1  ;;  %v7426_v31 = vmov 0  ;;  %vm6050_vm11 = vcmp.eq.s32.totalorder %v1573_v5, 1 }
 0x19b   : > { %3364 = vmatpush1.bf16.msk.msra.mxu0 %vm7422_vm6, %v5364_v54  ;;  %7425 = vst [vmem:[#allocation80_spill] sm:$0xff] %v7424_v60  ;;  %v7427_v31 = vsel %vm6020_vm9, 4294967295, %v7426_v31  ;;  %vm7429_vm4 = vmpackc.low %vm5891_vm0, %vm5887_vm8  ;;  %v7434_v54 = vmov 0  ;;  %vm6067_vm0 = vcmp.eq.s32.totalorder %v1612_v62, 1  ;;  %v7443_v23 = vmov 0  ;;  %v7647_v60 = vld [vmem:[#allocation67_spill] sm:$0xff] }
 0x19c   : > { %7428 = vst [vmem:[#allocation81_spill] sm:$0xff] %v7427_v31  ;;  %3367 = vmatprep.subr.msk.bf16.mxu0 %vm7429_vm4, %v5588_v8  ;;  %vm7430_vm6 = vmpackc.low %vm7413_vm10, %vm7412_vm1  ;;  %vm7432_vm4 = vnez %v7418_v48  ;;  %v7435_v54 = vsel %vm6050_vm11, 4294967295, %v7434_v54  ;;  %v7437_v8 = vmov 0  ;;  %v7444_v23 = vsel %vm6067_vm0, 4294967295, %v7443_v23  ;;  %v7666_v31 = vld [vmem:[#allocation73_spill] sm:$0xff] }
 0x19d   : > { %3388 = vmatpush1.bf16.msk.msra.mxu1 %vm7430_vm6, %v5440_v11  ;;  %vm7431_vm15 = vmpackc.low %vm5933_vm7, %vm7416_vm13  ;;  %7436 = vst [vmem:[#allocation82_spill] sm:$0xff] %v7435_v54  ;;  %vm6054_vm6 = vcmp.eq.s32.totalorder %v1604_v46, 1  ;;  %v1639_v11 = vrot.slane %v1631_v51, %v4500_v16  ;;  %v1647_v26 = vrot.slane %v1631_v51, %v4502_v17  ;;  %vm7446_vm13 = vnez %v7406_v43 }
 0x19e   : > { %3391 = vmatprep.subr.msk.bf16.mxu1 %vm7431_vm15, %v5584_v28  ;;  %vm7433_vm8 = vmmov %vm5997_vm5  ;;  %v7438_v8 = vsel %vm6054_vm6, 4294967295, %v7437_v8  ;;  %vm6063_vm5 = vcmp.eq.s32.totalorder %v1581_v3, 1  ;;  %v7440_v28 = vmov 0  ;;  %7445 = vst [vmem:[#allocation85_spill] sm:$0xff] %v7444_v23  ;;  %v1635_v16 = vrot.slane %v1631_v51, %v4504_v18  ;;  %v7480_v23 = vld [vmem:[#allocation20_spill] sm:$0xff] }
 0x19f   : > { %7439 = vst [vmem:[#allocation83_spill] sm:$0xff] %v7438_v8  ;;  %v7441_v28 = vsel %vm6063_vm5, 4294967295, %v7440_v28  ;;  %vm7447_vm7 = vmpackc.low %vm5963_vm2, %vm7446_vm13  ;;  %v7451_v17 = vmov 0  ;;  %vm6110_vm13 = vcmp.eq.s32.totalorder %v1647_v26, 1  ;;  %v7454_v18 = vmov 0 }
 0x1a0   : > { %7442 = vst [vmem:[#allocation84_spill] sm:$0xff] %v7441_v28  ;;  %3370 = vmatpush1.bf16.msk.msra.mxu0 %vm7447_vm7, %v5517_v2  ;;  %vm7448_vm15 = vmpackc.low %vm7433_vm8, %vm7432_vm4  ;;  %v7455_v18 = vsel %vm6110_vm13, 4294967295, %v7454_v18  ;;  %v1661_v2 = vld [vmem:[#allocation8 + $0x10] sm:$0xff] }
 0x1a1   : > { %3373 = vmatprep.subr.msk.bf16.mxu0 %vm7448_vm15, %v5750_v38  ;;  %vm7449_vm1 = vmpackc.low %vm5981_vm12, %vm5967_vm3  ;;  %vm6101_vm15 = vcmp.eq.s32.totalorder %v1639_v11, 1  ;;  %v1643_v38 = vrot.slane %v1631_v51, %v4506_v19  ;;  %7456 = vst [vmem:[#allocation87_spill] sm:$0xff] %v7455_v18  ;;  %v7458_v19 = vmov 0  ;;  %vm7496_vm3 = vcmp.lt.s32.totalorder %v4511_v24, 7 }
 0x1a2   : > { %3394 = vmatpush1.bf16.msk.msra.mxu1 %vm7449_vm1, %v5586_v44  ;;  %vm7450_vm7 = vmpackc.low %vm6020_vm9, %vm6016_vm14  ;;  %v7452_v17 = vsel %vm6101_vm15, 4294967295, %v7451_v17  ;;  %vm6129_vm14 = vcmp.eq.s32.totalorder %v1635_v16, 1  ;;  %v7461_v44 = vmov 0 }
 0x1a3   : > { %3397 = vmatprep.subr.msk.bf16.mxu1 %vm7450_vm7, %v5746_v9  ;;  %7453 = vst [vmem:[#allocation86_spill] sm:$0xff] %v7452_v17  ;;  %vm6913_vm1 = vmpackc.low %vm6067_vm0, %vm6063_vm5  ;;  %v7459_v19 = vsel %vm6129_vm14, 4294967295, %v7458_v19  ;;  %vm7477_vm0 = vcmp.lt.s32.totalorder %v4511_v24, 9 }
 0x1a4   : > { %vm7457_vm7 = vmpackc.low %vm6054_vm6, %vm6050_vm11  ;;  %7460 = vst [vmem:[#allocation88_spill] sm:$0xff] %v7459_v19 }
 0x1a5   : > { %3376 = vmatpush1.bf16.msk.msra.mxu0 %vm7457_vm7, %v5693_v10  ;;  %vm6136_vm7 = vcmp.eq.s32.totalorder %v1643_v38, 1  ;;  %vm7478_vm11 = vmmov %vm7477_vm0 }
 0x1a6   : > { %3133 = vmatprep.subr.msk.mxu0 %vm6101_vm15, %v5826_v35  ;;  %3400 = vmatpush1.bf16.msk.msra.mxu1 %vm6913_vm1, %v5748_v22  ;;  %v7462_v44 = vsel %vm6136_vm7, 4294967295, %v7461_v44  ;;  %vm7464_vm15 = vcmask 588800   ;;  %vm7479_vm6 = vmmov %vm7477_vm0 }
 0x1a7   : > { %3151 = vmatprep.subr.msk.mxu1 %vm6110_vm13, %v5842_v57  ;;  %7463 = vst [vmem:[#allocation89_spill] sm:$0xff] %v7462_v44  ;;  %vm7465_vm1 = vmmov %vm7464_vm15 }
 0x1a9   : > { %3134 = vmatpush1.msk.msra.mxu0 %vm6129_vm14, %v5763_v52 }
 0x1aa   : > { %3034 = vmatmul.mubr.msk.f32.vlgmr.msra.gmra.mrb[0].mxu0 %vm7464_vm15, %v1661_v2  ;;  %3152 = vmatpush1.msk.msra.mxu1 %vm6136_vm7, %v5838_v4 }
 0x1ab   : > { %3035 = vmatmul.mubr.msk.f32.vlgmr.msra.gmra.mrb[0].mxu1 %vm7465_vm1, %v1661_v2  ;;  %2373 = vmatprep.mubr.f32.mxu0 %v7211_v1 }
 0x1ac   : > { %2444 = vmatprep.mubr.f32.mxu1 %v7211_v1 }
 0x27d   : > { %v1767_v22 = vpop.f32.mrb[0].mxu0 }
 0x27e   : > { %v1853_v10 = vmul.f32 %v1767_v22, %v1767_v22  ;;  %v1769_v9 = vpop.f32.mrb[1].mxu0  ;;  %v1838_v35 = vpop.f32.mrb[0].mxu1 }
 0x27f   : > { %v1847_v57 = vadd.f32 %v1769_v9, %v1767_v22  ;;  %v1854_v61 = vmul.f32 %v1769_v9, %v1769_v9  ;;  %v1840_v58 = vpop.f32.mrb[1].mxu1  ;;  %v1855_v52 = vmul.f32 %v1838_v35, %v1838_v35 }
 0x280   : > { %v1856_v46 = vmul.f32 %v1840_v58, %v1840_v58 }
 0x281   : > { %v1848_v30 = vadd.f32 %v1847_v57, %v1838_v35  ;;  %v1857_v40 = vadd.f32 %v1854_v61, %v1853_v10 }
 0x283   : > { %v1849_v5 = vadd.f32 %v1848_v30, %v1840_v58  ;;  %v1858_v3 = vadd.f32 %v1857_v40, %v1855_v52 }
 0x285   : > { %1850 = vadd.xlane.f32.xlu0 %v1849_v5  ;;  %v1859_v4 = vadd.f32 %v1858_v3, %v1856_v46 }
 0x287   : > { %1860 = vadd.xlane.f32.xlu1 %v1859_v4 }
 0x312   : > { %v1851_v51 = vpop.xlane.xlu0 %1850 }
 0x313   : > { %v1852_v62 = vmul.f32 0.001953125, %v1851_v51 }
 0x314   : > { %v1861_v11 = vpop.xlane.xlu1 %1860 }
 0x315   : > { %v1862_v26 = vmul.f32 0.001953125, %v1861_v11  ;;  %v1863_v16 = vmul.f32 %v1852_v62, %v1852_v62  ;;  %v1865_v44 = vsub.f32 %v1767_v22, %v1852_v62  ;;  %v1866_v19 = vsub.f32 %v1769_v9, %v1852_v62 }
 0x316   : > { %v1867_v18 = vsub.f32 %v1838_v35, %v1852_v62  ;;  %v1868_v28 = vsub.f32 %v1840_v58, %v1852_v62 }
 0x317   : > { %v1864_v38 = vsub.f32 %v1862_v26, %v1863_v16 }
 0x319   : > { %v1869_v2 = vadd.f32 1e-05, %v1864_v38 }
 0x31b   : > { %3960 = vrsqrt.f32 %v1869_v2 }
 0x325   : > { %v3961_v57 = vpop.eup %3960 }
 0x326   : > { %v1871_v10 = vmul.f32 %v3961_v57, %v1865_v44  ;;  %v1872_v61 = vmul.f32 %v3961_v57, %v1866_v19  ;;  %v1873_v30 = vmul.f32 %v3961_v57, %v1867_v18  ;;  %v1874_v52 = vmul.f32 %v3961_v57, %v1868_v28 }
 0x328   : > { %vm1875_vm15 = vcmp.ge.f32.partialorder %v1871_v10, 0.0  ;;  %vm1876_vm1 = vcmp.ge.f32.partialorder %v1872_v61, 0.0  ;;  %v1879_v40 = vmul.f32 0.01, %v1871_v10  ;;  %v1880_v5 = vmul.f32 0.01, %v1872_v61 }
 0x329   : > { %v1881_v46 = vmul.f32 0.01, %v1873_v30  ;;  %vm1877_vm7 = vcmp.ge.f32.partialorder %v1873_v30, 0.0  ;;  %vm1878_vm14 = vcmp.ge.f32.partialorder %v1874_v52, 0.0  ;;  %v1882_v3 = vmul.f32 0.01, %v1874_v52 }
 0x32a   : > { %v6150_v4 = vsel %vm1875_vm15, %v1871_v10, %v1879_v40  ;;  %v6152_v51 = vsel %vm1876_vm1, %v1872_v61, %v1880_v5 }
 0x32b   : > { %v3815_v22 = vpack.i.bf16 %v6152_v51, %v6150_v4  ;;  %v6156_v9 = vsel %vm1877_vm7, %v1873_v30, %v1881_v46  ;;  %v6158_v19 = vsel %vm1878_vm14, %v1874_v52, %v1882_v3  ;;  %vm7467_vm14 = vcmp.lt.s32.totalorder %v4511_v24, 8  ;;  %v7469_v46 = vld [vmem:[#allocation18_spill] sm:$0xff]  ;;  %v7471_v3 = vld [vmem:[#allocation17_spill] sm:$0xff] }
 0x32c   : > { %v3825_v28 = vpack.i.bf16 %v6156_v9, %v6158_v19  ;;  %v3855_v18 = vpack.i.bf16 %v6158_v19, %v6150_v4  ;;  %v3850_v44 = vpack.i.bf16 %v6156_v9, %v6152_v51  ;;  %vm7468_vm7 = vcmp.lt.s32.totalorder %v4511_v24, 9  ;;  %vm7474_vm5 = vmmov %vm7467_vm14 }
 0x32d   : > { %3816 = vrot.lane.b32.xlu1 %v3815_v22, %s4166_s23  ;;  %3811 = vrot.lane.b32.xlu0 %v3815_v22, %s4165_s21  ;;  %vm7470_vm15 = vnez %v7469_v46  ;;  %vm7472_vm1 = vnez %v7471_v3 }
 0x32e   : > { %vm7473_vm13 = vmpackc.low %vm7470_vm15, %vm7472_vm1 }
 0x331   : > { %3826 = vrot.lane.b32.xlu1 %v3825_v28, %s4166_s23  ;;  %3821 = vrot.lane.b32.xlu0 %v3825_v28, %s4165_s21  ;;  %s7466_s21 = smov 71   ;;  %s255_s23 = scalar_lea.vmem [#allocation11], %s4415_s8 }
 0x335   : > { %3836 = vrot.lane.b32.xlu1 %v3815_v22, %s4167_s9  ;;  %3831 = vrot.lane.b32.xlu0 %v3815_v22, %s4168_s11 }
 0x339   : > { %3846 = vrot.lane.b32.xlu1 %v3825_v28, %s4167_s9  ;;  %3841 = vrot.lane.b32.xlu0 %v3825_v28, %s4168_s11  ;;  %s2914_s9 = sshll.u32 %s255_s23, 4  ;;  %s6657_s9 = int_to_ptr.vmem [resolvable:$true] %s2914_s9 }
 0x33d   : > { %3856 = vrot.lane.b32.xlu1 %v3855_v18, %s4169_s10  ;;  %3851 = vrot.lane.b32.xlu0 %v3850_v44, %s4169_s10 }
 0x341   : > { %3866 = vrot.lane.b32.xlu1 %v3850_v44, %s4170_s25  ;;  %3861 = vrot.lane.b32.xlu0 %v3850_v44, %s4171_s27 }
 0x345   : > { %3876 = vrot.lane.b32.xlu1 %v3855_v18, %s4170_s25  ;;  %3871 = vrot.lane.b32.xlu0 %v3855_v18, %s4171_s27  ;;  %s4079_s27 = scalar_lea.vmem %s6657_s9, 512 }
 0x346   : > { %p4080_p7 = scmp.ne.s32.totalorder %s6657_s9, %s4079_s27 }
 0x348   : > { %p4081_p12 = pnand %p4080_p7, %p4362_p5 }
 0x349   : > { %3886 = vrot.lane.b32.xlu1 %v3815_v22, %s4172_s30  ;;  %3881 = vrot.lane.b32.xlu0 %v3815_v22, %s4173_s24 }
 0x34a   : > { %p4082_p1 = pneg %p4081_p12 }
 0x34d   : > { %2252 = vrot.lane.b32.xlu1 %v6156_v9, %s4175_s14  ;;  %2250 = vrot.lane.b32.xlu0 %v6152_v51, %s4175_s14 }
 0x351   : > { %3896 = vrot.lane.b32.xlu1 %v3825_v28, %s4172_s30  ;;  %3891 = vrot.lane.b32.xlu0 %v3825_v28, %s4173_s24  ;;  %s4185_s30 = smov [#allocation11]  }
 0x352   : > { %s4083_s24 = sshll.u32 %s4185_s30, 4  ;;  %s4084_s24 = int_to_ptr.vmem [resolvable:$false] %s4083_s24 }
 0x353   : > { %p4086_p2 = scmp.lt.s32.totalorder %s6657_s9, %s4084_s24 }
 0x355   : > { %2254 = vrot.lane.b32.xlu1 %v6158_v19, %s4175_s14  ;;  %2248 = vrot.lane.b32.xlu0 %v6150_v4, %s4175_s14  ;;  %s4085_s14 = scalar_lea.vmem %s4084_s24, 1024 }
 0x356   : > { %p4087_p4 = scmp.lt.s32.totalorder %s4085_s14, %s4079_s27 }
 0x358   : > { %p4088_p0 = por %p4087_p4, %p4086_p2 }
 0x359   : > { %3906 = vrot.lane.b32.xlu1 %v3815_v22, %s4176_s20  ;;  %3901 = vrot.lane.b32.xlu0 %v3815_v22, %s7466_s21 }
 0x35a   : > { %p4089_p9 = pnand %p4088_p0, %p4082_p1 }
 0x35d   : > { %3916 = vrot.lane.b32.xlu1 %v3825_v28, %s4176_s20  ;;  %3911 = vrot.lane.b32.xlu0 %v3825_v28, %s7466_s21 }
 0x361   : > { %3926 = vrot.lane.b32.xlu1 %v3815_v22, %s4178_s6  ;;  %3921 = vrot.lane.b32.xlu0 %v3815_v22, %s4179_s5 }
 0x365   : > { %3936 = vrot.lane.b32.xlu1 %v3825_v28, %s4178_s6  ;;  %3931 = vrot.lane.b32.xlu0 %v3825_v28, %s4179_s5 }
 0x369   : > { %3946 = vrot.lane.b32.xlu1 %v3815_v22, %s4180_s7  ;;  %3941 = vrot.lane.b32.xlu0 %v3815_v22, %s4181_s28 }
 0x36d   : > { %3956 = vrot.lane.b32.xlu1 %v3825_v28, %s4180_s7  ;;  %3951 = vrot.lane.b32.xlu0 %v3825_v28, %s4181_s28  ;;  %s3048_s28 = sshll.u32 %s4232_s19, 9  ;;  %s7752_s19 = sand.u32 1, %s4149_s16  }
 0x36e   : > { %s6655_s25 = scalar_lea.hbm %s6704_s4, %s3048_s28  ;;  %s2900_s8 = scalar_lea.sflag [#allocation5], %s7752_s19 }
 0x371   : > { %2049 = vrot.lane.b32.xlu1 %v6152_v51, %s4182_s29  ;;  %2047 = vrot.lane.b32.xlu0 %v6150_v4, %s4182_s29 }
 0x375   : > { %2051 = vrot.lane.b32.xlu1 %v6156_v9, %s4182_s29  ;;  %2053 = vrot.lane.b32.xlu0 %v6158_v19, %s4182_s29 }
 0x39f   : > { %v3817_v35 = vpop.permute.xlu1 %3816  ;;  %v3812_v58 = vpop.permute.xlu0 %3811 }
 0x3a0   : > { %v3819_v62 = vunpack.i.h.bf16 %v3817_v35  ;;  %v3818_v11 = vunpack.i.l.bf16 %v3817_v35  ;;  %v3814_v26 = vunpack.i.h.bf16 %v3812_v58  ;;  %v3813_v16 = vunpack.i.l.bf16 %v3812_v58 }
 0x3a2   : > { %v2134_v38 = vsel %vm7467_vm14, %v3818_v11, %v3819_v62  ;;  %v2114_v2 = vsel %vm7468_vm7, %v3813_v16, %v3814_v26  ;;  %vm7475_vm14 = vmmov %vm7474_vm5 }
 0x3a3   : > { %v3401_v57 = vpack.c.bf16 %v2134_v38, %v2114_v2  ;;  %v3827_v10 = vpop.permute.xlu1 %3826  ;;  %v3822_v61 = vpop.permute.xlu0 %3821  ;;  %vm7476_vm7 = vmmov %vm7474_vm5 }
 0x3a4   : > { %v3829_v30 = vunpack.i.h.bf16 %v3827_v10  ;;  %v3828_v52 = vunpack.i.l.bf16 %v3827_v10  ;;  %v3824_v40 = vunpack.i.h.bf16 %v3822_v61  ;;  %v3823_v5 = vunpack.i.l.bf16 %v3822_v61 }
 0x3a5   : > { %3403 = vmatprep.subr.msk.bf16.mxu0 %vm7473_vm13, %v3401_v57  ;;  %vm7481_vm13 = vnez %v7480_v23 }
 0x3a6   : > { %v2132_v22 = vsel %vm7474_vm5, %v3829_v30, %v3828_v52  ;;  %v2133_v28 = vsel %vm7475_vm14, %v3819_v62, %v3829_v30  ;;  %v2135_v18 = vsel %vm7476_vm7, %v3828_v52, %v3818_v11  ;;  %v2112_v44 = vsel %vm7477_vm0, %v3824_v40, %v3823_v5  ;;  %v7482_v11 = vld [vmem:[#allocation19_spill] sm:$0xff]  ;;  %v7486_v52 = vld [vmem:[#allocation22_spill] sm:$0xff] }
 0x3a7   : > { %v2113_v35 = vsel %vm7478_vm11, %v3814_v26, %v3824_v40  ;;  %v2115_v58 = vsel %vm7479_vm6, %v3823_v5, %v3813_v16  ;;  %v3425_v38 = vpack.c.bf16 %v2132_v22, %v2112_v44  ;;  %v3837_v2 = vpop.permute.xlu1 %3836  ;;  %v3832_v57 = vpop.permute.xlu0 %3831  ;;  %vm7483_vm5 = vnez %v7482_v11  ;;  %v7488_v16 = vld [vmem:[#allocation21_spill] sm:$0xff]  ;;  %v7491_v40 = vld [vmem:[#allocation24_spill] sm:$0xff]  ;;  %v7493_v5 = vld [vmem:[#allocation23_spill] sm:$0xff] }
 0x3a8   : > { %v3404_v10 = vpack.c.bf16 %v2135_v18, %v2115_v58  ;;  %v3428_v61 = vpack.c.bf16 %v2133_v28, %v2113_v35  ;;  %v3839_v46 = vunpack.i.h.bf16 %v3837_v2  ;;  %v3838_v3 = vunpack.i.l.bf16 %v3837_v2  ;;  %vm7484_vm0 = vmpackc.low %vm7481_vm13, %vm7483_vm5  ;;  %v7501_v11 = vld [vmem:[#allocation26_spill] sm:$0xff] }
 0x3a9   : > { %v3834_v62 = vunpack.i.h.bf16 %v3832_v57  ;;  %v3833_v30 = vunpack.i.l.bf16 %v3832_v57  ;;  %3427 = vmatprep.subr.msk.bf16.mxu1 %vm7484_vm0, %v3425_v38  ;;  %vm7485_vm11 = vcmp.lt.s32.totalorder %v4511_v24, 1  ;;  %vm7487_vm6 = vnez %v7486_v52  ;;  %v7503_v52 = vld [vmem:[#allocation25_spill] sm:$0xff] }
 0x3aa   : > { %v2174_v26 = vsel %vm7485_vm11, %v3838_v3, %v3839_v46  ;;  %vm7489_vm15 = vnez %v7488_v16  ;;  %vm7492_vm14 = vnez %v7491_v40  ;;  %vm7494_vm7 = vnez %v7493_v5  ;;  %vm7497_vm13 = vmmov %vm7485_vm11 }
 0x3ab   : > { %vm7490_vm1 = vmpackc.low %vm7487_vm6, %vm7489_vm15  ;;  %v2154_v23 = vsel %vm7496_vm3, %v3833_v30, %v3834_v62  ;;  %v3847_v22 = vpop.permute.xlu1 %3846  ;;  %v3842_v28 = vpop.permute.xlu0 %3841 }
 0x3ac   : > { %3406 = vmatpush1.bf16.msk.msra.mxu0 %vm7490_vm1, %v3404_v10  ;;  %vm7495_vm9 = vmpackc.low %vm7492_vm14, %vm7494_vm7  ;;  %v3407_v18 = vpack.c.bf16 %v2174_v26, %v2154_v23  ;;  %v3849_v44 = vunpack.i.h.bf16 %v3847_v22  ;;  %v3848_v35 = vunpack.i.l.bf16 %v3847_v22  ;;  %v3844_v58 = vunpack.i.h.bf16 %v3842_v28 }
 0x3ad   : > { %3430 = vmatpush1.bf16.msk.msra.mxu1 %vm7495_vm9, %v3428_v61  ;;  %v3843_v38 = vunpack.i.l.bf16 %v3842_v28  ;;  %vm7498_vm5 = vmmov %vm7485_vm11  ;;  %vm7504_vm11 = vnez %v7503_v52  ;;  %vm7508_vm14 = vcmp.lt.s32.totalorder %v4511_v24, 127  ;;  %v7524_v52 = vld [vmem:[#allocation31_spill] sm:$0xff] }
 0x3ae   : > { %v2172_v2 = vsel %vm7497_vm13, %v3849_v44, %v3848_v35  ;;  %v2173_v57 = vsel %vm7498_vm5, %v3839_v46, %v3849_v44  ;;  %vm7499_vm0 = vmmov %vm7498_vm5 }
 0x3af   : > { %v2175_v10 = vsel %vm7499_vm0, %v3848_v35, %v3838_v3  ;;  %vm7500_vm9 = vmmov %vm7496_vm3  ;;  %vm7502_vm3 = vnez %v7501_v11  ;;  %v3857_v46 = vpop.permute.xlu1 %3856  ;;  %v3852_v5 = vpop.permute.xlu0 %3851  ;;  %v7509_v11 = vld [vmem:[#allocation28_spill] sm:$0xff] }
 0x3b0   : > { %v2153_v61 = vsel %vm7500_vm9, %v3834_v62, %v3844_v58  ;;  %vm7505_vm6 = vmpackc.low %vm7502_vm3, %vm7504_vm11  ;;  %v3859_v22 = vunpack.i.h.bf16 %v3857_v46  ;;  %v3858_v28 = vunpack.i.l.bf16 %v3857_v46  ;;  %v3854_v62 = vunpack.i.h.bf16 %v3852_v5 }
 0x3b1   : > { %3409 = vmatprep.subr.msk.bf16.mxu0 %vm7505_vm6, %v3407_v18  ;;  %vm7506_vm15 = vmmov %vm7500_vm9  ;;  %v3434_v40 = vpack.c.bf16 %v2173_v57, %v2153_v61  ;;  %v3853_v44 = vunpack.i.l.bf16 %v3852_v5  ;;  %vm7510_vm7 = vnez %v7509_v11  ;;  %v7511_v18 = vld [vmem:[#allocation27_spill] sm:$0xff]  ;;  %v7522_v61 = vld [vmem:[#allocation32_spill] sm:$0xff] }
 0x3b2   : > { %v2152_v26 = vsel %vm7506_vm15, %v3844_v58, %v3843_v38  ;;  %vm7507_vm1 = vmmov %vm7500_vm9  ;;  %v2199_v35 = vsel %vm7508_vm14, %v3859_v22, %v3858_v28  ;;  %vm7512_vm13 = vnez %v7511_v18  ;;  %v7514_v58 = vld [vmem:[#allocation30_spill] sm:$0xff] }
 0x3b3   : > { %v2155_v16 = vsel %vm7507_vm1, %v3843_v38, %v3833_v30  ;;  %v3431_v3 = vpack.c.bf16 %v2172_v2, %v2152_v26  ;;  %vm7513_vm5 = vmpackc.low %vm7510_vm7, %vm7512_vm13  ;;  %vm7515_vm0 = vnez %v7514_v58  ;;  %v7516_v30 = vld [vmem:[#allocation29_spill] sm:$0xff]  ;;  %v3437_v38 = vpack.c.bf16 %v2199_v35, %v6158_v19  ;;  %v3867_v26 = vpop.permute.xlu1 %3866  ;;  %v7527_v35 = vld [vmem:[#allocation42_spill] sm:$0xff] }
 0x3b4   : > { %v3410_v23 = vpack.c.bf16 %v2175_v10, %v2155_v16  ;;  %vm7517_vm9 = vnez %v7516_v30  ;;  %vm7519_vm11 = vmmov %vm7508_vm14  ;;  %vm7523_vm1 = vnez %v7522_v61  ;;  %vm7525_vm14 = vnez %v7524_v52  ;;  %v3862_v16 = vpop.permute.xlu0 %3861 }
 0x3b5   : > { %vm7518_vm3 = vmpackc.low %vm7515_vm0, %vm7517_vm9  ;;  %v2196_v2 = vsel %vm7519_vm11, %v3854_v62, %v3859_v22  ;;  %v3864_v22 = vunpack.i.h.bf16 %v3862_v16  ;;  %vm7528_vm13 = vnez %v7527_v35  ;;  %vm7531_vm0 = vcmp.lt.s32.totalorder %v4511_v24, 120 }
 0x3b6   : > { %3412 = vmatpush1.bf16.msk.msra.mxu0 %vm7513_vm5, %v3410_v23  ;;  %3433 = vmatprep.subr.msk.bf16.mxu1 %vm7518_vm3, %v3431_v3  ;;  %vm7520_vm6 = vmmov %vm7519_vm11  ;;  %v3440_v46 = vpack.c.bf16 %v2196_v2, %v6156_v9  ;;  %v3869_v23 = vunpack.i.h.bf16 %v3867_v26  ;;  %v3868_v3 = vunpack.i.l.bf16 %v3867_v26  ;;  %vm7532_vm9 = vcmp.lt.s32.totalorder %v4511_v24, 121  ;;  %v7541_v26 = vld [vmem:[#allocation34_spill] sm:$0xff] }
 0x3b7   : > { %v2197_v57 = vsel %vm7520_vm6, %v3853_v44, %v3854_v62  ;;  %vm7521_vm15 = vmmov %vm7520_vm6  ;;  %v3863_v62 = vunpack.i.l.bf16 %v3862_v16  ;;  %v7543_v16 = vld [vmem:[#allocation33_spill] sm:$0xff] }
 0x3b8   : > { %v2198_v10 = vsel %vm7521_vm15, %v3858_v28, %v3853_v44  ;;  %vm7526_vm7 = vmpackc.low %vm7523_vm1, %vm7525_vm14  ;;  %v3413_v19 = vpack.c.bf16 %v2197_v57, %v6152_v51  ;;  %v7529_v28 = vld [vmem:[#allocation39_spill] sm:$0xff]  ;;  %v3877_v51 = vpop.permute.xlu1 %3876  ;;  %v3872_v11 = vpop.permute.xlu0 %3871 }
 0x3b9   : > { %3436 = vmatpush1.bf16.msk.msra.mxu1 %vm7526_vm7, %v3434_v40  ;;  %v3416_v5 = vpack.c.bf16 %v2198_v10, %v6150_v4  ;;  %vm7530_vm5 = vnez %v7529_v28  ;;  %v2237_v40 = vsel %vm7531_vm0, %v3868_v3, %v3869_v23  ;;  %v2217_v9 = vsel %vm7532_vm9, %v3863_v62, %v3864_v22  ;;  %v7533_v44 = vld [vmem:[#allocation43_spill] sm:$0xff]  ;;  %v7535_v4 = vld [vmem:[#allocation44_spill] sm:$0xff]  ;;  %vm7537_vm6 = vmmov %vm7531_vm0 }
 0x3ba   : > { %3439 = vmatprep.subr.msk.bf16.mxu1 %vm7528_vm13, %v3437_v38  ;;  %3415 = vmatprep.subr.msk.bf16.mxu0 %vm7530_vm5, %v3413_v19  ;;  %vm7534_vm3 = vnez %v7533_v44  ;;  %vm7536_vm11 = vnez %v7535_v4  ;;  %v3419_v18 = vpack.c.bf16 %v2237_v40, %v2217_v9  ;;  %v3879_v58 = vunpack.i.h.bf16 %v3877_v51  ;;  %vm7538_vm15 = vmmov %vm7531_vm0  ;;  %v7548_v40 = vld [vmem:[#allocation36_spill] sm:$0xff]  ;;  %v7553_v9 = vld [vmem:[#allocation38_spill] sm:$0xff] }
 0x3bb   : > { %3418 = vmatpush1.bf16.msk.msra.mxu0 %vm7534_vm3, %v3416_v5  ;;  %v3878_v30 = vunpack.i.l.bf16 %v3877_v51  ;;  %v3874_v38 = vunpack.i.h.bf16 %v3872_v11  ;;  %v3873_v2 = vunpack.i.l.bf16 %v3872_v11  ;;  %vm7539_vm1 = vmmov %vm7531_vm0  ;;  %vm7542_vm7 = vnez %v7541_v26  ;;  %v7555_v44 = vld [vmem:[#allocation37_spill] sm:$0xff] }
 0x3bc   : > { %v2236_v57 = vsel %vm7537_vm6, %v3869_v23, %v3879_v58  ;;  %vm7540_vm14 = vmmov %vm7532_vm9  ;;  %vm7544_vm13 = vnez %v7543_v16  ;;  %v3887_v23 = vpop.permute.xlu1 %3886  ;;  %vm7549_vm3 = vnez %v7548_v40 }
 0x3bd   : > { %3442 = vmatpush1.bf16.msk.msra.mxu1 %vm7536_vm11, %v3440_v46  ;;  %v2238_v10 = vsel %vm7538_vm15, %v3878_v30, %v3868_v3  ;;  %v2239_v61 = vsel %vm7539_vm1, %v3879_v58, %v3878_v30  ;;  %v2216_v52 = vsel %vm7540_vm14, %v3864_v22, %v3874_v38  ;;  %vm7545_vm5 = vmpackc.low %vm7542_vm7, %vm7544_vm13  ;;  %v3882_v3 = vpop.permute.xlu0 %3881  ;;  %v7550_v22 = vld [vmem:[#allocation35_spill] sm:$0xff]  ;;  %vm7554_vm15 = vnez %v7553_v9  ;;  %v7560_v58 = vld [vmem:[#allocation40_spill] sm:$0xff] }
 0x3be   : > { %3421 = vmatprep.subr.msk.bf16.mxu0 %vm7545_vm5, %v3419_v18  ;;  %vm7546_vm0 = vmmov %vm7532_vm9  ;;  %v3446_v5 = vpack.c.bf16 %v2236_v57, %v2216_v52  ;;  %vm7551_vm11 = vnez %v7550_v22  ;;  %vm7556_vm1 = vnez %v7555_v44  ;;  %v3888_v4 = vunpack.i.l.bf16 %v3887_v23  ;;  %v7558_v18 = vld [vmem:[#allocation41_spill] sm:$0xff] }
 0x3bf   : > { %v2218_v46 = vsel %vm7546_vm0, %v3873_v2, %v3863_v62  ;;  %vm7547_vm9 = vmmov %vm7546_vm0  ;;  %v3889_v62 = vunpack.i.h.bf16 %v3887_v23  ;;  %v3884_v51 = vunpack.i.h.bf16 %v3882_v3  ;;  %v3883_v11 = vunpack.i.l.bf16 %v3882_v3  ;;  %v7564_v57 = vld [vmem:[#allocation45_spill] sm:$0xff] }
 0x3c0   : > { %v2219_v19 = vsel %vm7547_vm9, %v3874_v38, %v3873_v2  ;;  %v3422_v35 = vpack.c.bf16 %v2238_v10, %v2218_v46  ;;  %vm7552_vm6 = vmpackc.low %vm7549_vm3, %vm7551_vm11  ;;  %vm7559_vm7 = vnez %v7558_v18  ;;  %vm7561_vm13 = vnez %v7560_v58  ;;  %v2253_v30 = vpop.permute.xlu1 %2252 }
 0x3c1   : > { %v3443_v28 = vpack.c.bf16 %v2239_v61, %v2219_v19  ;;  %vm7557_vm14 = vmpackc.low %vm7554_vm15, %vm7556_vm1  ;;  %v2251_v38 = vpop.permute.xlu0 %2250  ;;  %vm7563_vm0 = vcmp.lt.s32.totalorder %v4511_v24, 119  ;;  %vm7565_vm9 = vnez %v7564_v57  ;;  %vm7566_vm3 = vcmp.lt.s32.totalorder %v4511_v24, 72 }
 0x3c2   : > { %3424 = vmatpush1.bf16.msk.msra.mxu0 %vm7552_vm6, %v3422_v35  ;;  %vm7562_vm5 = vmpackc.low %vm7559_vm7, %vm7561_vm13  ;;  %v2257_v2 = vsel %vm7563_vm0, %v2251_v38, %v2253_v30  ;;  %v1917_v10 = vsel %vm7566_vm3, %v3888_v4, %v3889_v62  ;;  %vm7567_vm11 = vcmp.lt.s32.totalorder %v4511_v24, 73 }
 0x3c3   : > { %3445 = vmatprep.subr.msk.bf16.mxu1 %vm7557_vm14, %v3443_v28  ;;  %3167 = vmatprep.subr.msk.mxu0 %vm7565_vm9, %v2257_v2  ;;  %v1897_v61 = vsel %vm7567_vm11, %v3883_v11, %v3884_v51  ;;  %vm7568_vm6 = vmmov %vm7566_vm3  ;;  %v2269_v2 = vld [vmem:[#allocation9 + $0x8] sm:$0xff] }
 0x3c4   : > { %3448 = vmatpush1.bf16.msk.msra.mxu1 %vm7562_vm5, %v3446_v5  ;;  %v3897_v52 = vpop.permute.xlu1 %3896  ;;  %v6348_v23 = vpack.c.bf16 %v1917_v10, %v1897_v61  ;;  %vm7569_vm15 = vmmov %vm7566_vm3  ;;  %v7576_v10 = vld [vmem:[#allocation50_spill] sm:$0xff] }
 0x3c5   : > { %v3892_v26 = vpop.permute.xlu0 %3891  ;;  %v3899_v16 = vunpack.i.h.bf16 %v3897_v52  ;;  %v3898_v46 = vunpack.i.l.bf16 %v3897_v52  ;;  %vm7570_vm1 = vmmov %vm7567_vm11  ;;  %v7585_v52 = vld [vmem:[#allocation54_spill] sm:$0xff] }
 0x3c6   : > { %v3894_v19 = vunpack.i.h.bf16 %v3892_v26  ;;  %v3893_v5 = vunpack.i.l.bf16 %v3892_v26  ;;  %vm7571_vm14 = vmmov %vm7570_vm1 }
 0x3c7   : > { %v1915_v3 = vsel %vm7568_vm6, %v3899_v16, %v3898_v46  ;;  %v1918_v35 = vsel %vm7569_vm15, %v3898_v46, %v3888_v4  ;;  %vm7572_vm7 = vmmov %vm7566_vm3  ;;  %vm7577_vm3 = vnez %v7576_v10 }
 0x3c8   : > { %v1895_v28 = vsel %vm7570_vm1, %v3894_v19, %v3893_v5  ;;  %v1898_v40 = vsel %vm7571_vm14, %v3893_v5, %v3883_v11  ;;  %v2255_v22 = vpop.permute.xlu1 %2254  ;;  %v1916_v44 = vsel %vm7572_vm7, %v3889_v62, %v3899_v16  ;;  %vm7573_vm13 = vmmov %vm7570_vm1  ;;  %v7578_v62 = vld [vmem:[#allocation51_spill] sm:$0xff]  ;;  %vm7586_vm14 = vnez %v7585_v52  ;;  %v7606_v52 = vld [vmem:[#allocation58_spill] sm:$0xff] }
 0x3c9   : > { %v2249_v9 = vpop.permute.xlu0 %2248  ;;  %v1896_v18 = vsel %vm7573_vm13, %v3884_v51, %v3894_v19  ;;  %vm7574_vm5 = vmmov %vm7563_vm0  ;;  %v6370_v11 = vpack.c.bf16 %v1918_v35, %v1898_v40  ;;  %v6372_v61 = vpack.c.bf16 %v1915_v3, %v1895_v28  ;;  %vm7579_vm11 = vnez %v7578_v62  ;;  %v7580_v51 = vld [vmem:[#allocation47_spill] sm:$0xff]  ;;  %v7588_v35 = vld [vmem:[#allocation53_spill] sm:$0xff] }
 0x3ca   : > { %v2256_v58 = vsel %vm7574_vm5, %v2253_v30, %v2255_v22  ;;  %v2258_v4 = vsel %vm7563_vm0, %v2249_v9, %v2251_v38  ;;  %vm7575_vm9 = vmmov %vm7563_vm0  ;;  %vm7581_vm6 = vnez %v7580_v51  ;;  %v7582_v30 = vld [vmem:[#allocation46_spill] sm:$0xff]  ;;  %v6382_v38 = vpack.c.bf16 %v1916_v44, %v1896_v18  ;;  %v7590_v28 = vld [vmem:[#allocation52_spill] sm:$0xff] }
 0x3cb   : > { %v2259_v57 = vsel %vm7575_vm9, %v2255_v22, %v2249_v9  ;;  %3168 = vmatpush1.msk.msra.mxu0 %vm7577_vm3, %v2258_v4  ;;  %vm7583_vm15 = vnez %v7582_v30  ;;  %vm7587_vm7 = vcmask 588800   ;;  %vm7589_vm13 = vnez %v7588_v35  ;;  %v7593_v40 = vld [vmem:[#allocation49_spill] sm:$0xff]  ;;  %v7595_v22 = vld [vmem:[#allocation48_spill] sm:$0xff] }
 0x3cc   : > { %3183 = vmatprep.subr.msk.mxu1 %vm7579_vm11, %v2259_v57  ;;  %vm7584_vm1 = vmpackc.low %vm7581_vm6, %vm7583_vm15  ;;  %v3907_v26 = vpop.permute.xlu1 %3906  ;;  %3036 = vmatmul.mubr.msk.f32.vlgmr.msra.gmra.mrb[2].mxu0 %vm7587_vm7, %v2269_v2  ;;  %vm7591_vm5 = vnez %v7590_v28  ;;  %vm7594_vm9 = vnez %v7593_v40  ;;  %vm7596_vm3 = vnez %v7595_v22  ;;  %vm7599_vm15 = vcmp.lt.s32.totalorder %v4511_v24, 65  ;;  %v7601_v18 = vld [vmem:[#allocation56_spill] sm:$0xff] }
 0x3cd   : > { %3451 = vmatprep.subr.msk.bf16.mxu0 %vm7584_vm1, %v6348_v23  ;;  %3184 = vmatpush1.msk.msra.mxu1 %vm7586_vm14, %v2256_v58  ;;  %v3902_v16 = vpop.permute.xlu0 %3901  ;;  %v3909_v46 = vunpack.i.h.bf16 %v3907_v26  ;;  %v3908_v19 = vunpack.i.l.bf16 %v3907_v26  ;;  %vm7592_vm0 = vmpackc.low %vm7589_vm13, %vm7591_vm5  ;;  %vm7600_vm1 = vcmp.lt.s32.totalorder %v4511_v24, 71  ;;  %vm7602_vm14 = vnez %v7601_v18  ;;  %v7603_v58 = vld [vmem:[#allocation55_spill] sm:$0xff]  ;;  %v7608_v26 = vld [vmem:[#allocation57_spill] sm:$0xff] }
 0x3ce   : > { %v3904_v5 = vunpack.i.h.bf16 %v3902_v16  ;;  %v3903_v3 = vunpack.i.l.bf16 %v3902_v16  ;;  %3454 = vmatpush1.bf16.msk.msra.mxu0 %vm7592_vm0, %v6370_v11  ;;  %vm7597_vm11 = vmpackc.low %vm7594_vm9, %vm7596_vm3  ;;  %2518 = vmatprep.mubr.f32.mxu0 %v7211_v1  ;;  %vm7607_vm5 = vnez %v7606_v52  ;;  %vm7609_vm0 = vnez %v7608_v26  ;;  %v7616_v52 = vld [vmem:[#allocation62_spill] sm:$0xff]  ;;  %v7618_v26 = vld [vmem:[#allocation61_spill] sm:$0xff] }
 0x3cf   : > { %3475 = vmatprep.subr.msk.bf16.mxu1 %vm7597_vm11, %v6372_v61  ;;  %vm7598_vm6 = vmmov %vm7587_vm7  ;;  %v1957_v9 = vsel %vm7599_vm15, %v3908_v19, %v3909_v46  ;;  %vm7604_vm7 = vnez %v7603_v58 }
 0x3d0   : > { %3037 = vmatmul.mubr.msk.f32.vlgmr.msra.gmra.mrb[2].mxu1 %vm7598_vm6, %v2269_v2  ;;  %v1937_v44 = vsel %vm7600_vm1, %v3903_v3, %v3904_v5  ;;  %vm7605_vm13 = vmpackc.low %vm7602_vm14, %vm7604_vm7  ;;  %v3917_v2 = vpop.permute.xlu1 %3916  ;;  %vm7617_vm7 = vnez %v7616_v52 }
 0x3d1   : > { %3478 = vmatpush1.bf16.msk.msra.mxu1 %vm7605_vm13, %v6382_v38  ;;  %2589 = vmatprep.mubr.f32.mxu1 %v7211_v1  ;;  %v6412_v4 = vpack.c.bf16 %v1957_v9, %v1937_v44  ;;  %v3912_v57 = vpop.permute.xlu0 %3911  ;;  %v3919_v10 = vunpack.i.h.bf16 %v3917_v2  ;;  %v3918_v62 = vunpack.i.l.bf16 %v3917_v2  ;;  %vm7610_vm9 = vmpackc.low %vm7607_vm5, %vm7609_vm0  ;;  %vm7619_vm13 = vnez %v7618_v26 }
 0x3d2   : > { %v3914_v51 = vunpack.i.h.bf16 %v3912_v57  ;;  %v3913_v30 = vunpack.i.l.bf16 %v3912_v57  ;;  %vm7611_vm3 = vmmov %vm7599_vm15  ;;  %vm7621_vm0 = vcmp.lt.s32.totalorder %v4511_v24, 63 }
 0x3d3   : > { %3457 = vmatprep.subr.msk.bf16.mxu0 %vm7610_vm9, %v6412_v4  ;;  %v1955_v16 = vsel %vm7611_vm3, %v3919_v10, %v3918_v62  ;;  %vm7612_vm11 = vmmov %vm7611_vm3 }
 0x3d4   : > { %v1956_v35 = vsel %vm7612_vm11, %v3909_v46, %v3919_v10  ;;  %vm7613_vm6 = vmmov %vm7611_vm3  ;;  %v1936_v22 = vsel %vm7600_vm1, %v3904_v5, %v3914_v51  ;;  %v3927_v18 = vpop.permute.xlu1 %3926 }
 0x3d5   : > { %v1958_v28 = vsel %vm7613_vm6, %v3918_v62, %v3908_v19  ;;  %vm7614_vm15 = vmmov %vm7600_vm1  ;;  %v3922_v58 = vpop.permute.xlu0 %3921  ;;  %v6436_v57 = vpack.c.bf16 %v1956_v35, %v1936_v22  ;;  %v3929_v46 = vunpack.i.h.bf16 %v3927_v18  ;;  %v3928_v10 = vunpack.i.l.bf16 %v3927_v18 }
 0x3d6   : > { %v1935_v40 = vsel %vm7614_vm15, %v3914_v51, %v3913_v30  ;;  %vm7615_vm14 = vmmov %vm7600_vm1  ;;  %v3924_v19 = vunpack.i.h.bf16 %v3922_v58  ;;  %v3923_v62 = vunpack.i.l.bf16 %v3922_v58  ;;  %v7624_v51 = vld [vmem:[#allocation59_spill] sm:$0xff] }
 0x3d7   : > { %v1938_v9 = vsel %vm7615_vm14, %v3913_v30, %v3903_v3  ;;  %v6432_v44 = vpack.c.bf16 %v1955_v16, %v1935_v40  ;;  %vm7620_vm5 = vmpackc.low %vm7617_vm7, %vm7619_vm13  ;;  %v1997_v5 = vsel %vm7621_vm0, %v3928_v10, %v3929_v46  ;;  %v7622_v3 = vld [vmem:[#allocation60_spill] sm:$0xff]  ;;  %vm7625_vm3 = vnez %v7624_v51  ;;  %v7629_v16 = vld [vmem:[#allocation63_spill] sm:$0xff] }
 0x3d8   : > { %v6434_v2 = vpack.c.bf16 %v1958_v28, %v1938_v9  ;;  %vm7623_vm9 = vnez %v7622_v3  ;;  %v7627_v30 = vld [vmem:[#allocation64_spill] sm:$0xff]  ;;  %vm7630_vm15 = vnez %v7629_v16  ;;  %vm7632_vm14 = vcmp.lt.s32.totalorder %v4511_v24, 64  ;;  %v3937_v28 = vpop.permute.xlu1 %3936  ;;  %vm7633_vm7 = vmmov %vm7621_vm0  ;;  %v7637_v16 = vld [vmem:[#allocation66_spill] sm:$0xff] }
 0x3d9   : > { %3481 = vmatprep.subr.msk.bf16.mxu1 %vm7620_vm5, %v6432_v44  ;;  %vm7626_vm11 = vmpackc.low %vm7623_vm9, %vm7625_vm3  ;;  %vm7628_vm6 = vnez %v7627_v30  ;;  %v1977_v35 = vsel %vm7632_vm14, %v3923_v62, %v3924_v19  ;;  %v3932_v40 = vpop.permute.xlu0 %3931  ;;  %v3939_v9 = vunpack.i.h.bf16 %v3937_v28  ;;  %v3938_v18 = vunpack.i.l.bf16 %v3937_v28 }
 0x3da   : > { %3460 = vmatpush1.bf16.msk.msra.mxu0 %vm7626_vm11, %v6434_v2  ;;  %vm7631_vm1 = vmpackc.low %vm7628_vm6, %vm7630_vm15  ;;  %v6460_v22 = vpack.c.bf16 %v1997_v5, %v1977_v35  ;;  %v3934_v58 = vunpack.i.h.bf16 %v3932_v40  ;;  %v3933_v52 = vunpack.i.l.bf16 %v3932_v40  ;;  %vm7638_vm9 = vnez %v7637_v16  ;;  %v7639_v5 = vld [vmem:[#allocation65_spill] sm:$0xff] }
 0x3db   : > { %3484 = vmatpush1.bf16.msk.msra.mxu1 %vm7631_vm1, %v6436_v57  ;;  %v1995_v26 = vsel %vm7633_vm7, %v3939_v9, %v3938_v18  ;;  %vm7634_vm13 = vmmov %vm7621_vm0  ;;  %vm7640_vm3 = vnez %v7639_v5  ;;  %vm7644_vm1 = vcmp.lt.s32.totalorder %v4511_v24, 56  ;;  %v7645_v5 = vld [vmem:[#allocation68_spill] sm:$0xff]  ;;  %vm7648_vm7 = vnez %v7647_v60 }
 0x3dc   : > { %v1996_v3 = vsel %vm7634_vm13, %v3929_v46, %v3939_v9  ;;  %vm7635_vm5 = vmmov %vm7621_vm0  ;;  %v3947_v40 = vpop.permute.xlu1 %3946 }
 0x3dd   : > { %v1998_v51 = vsel %vm7635_vm5, %v3938_v18, %v3928_v10  ;;  %vm7636_vm0 = vmmov %vm7632_vm14  ;;  %v3942_v9 = vpop.permute.xlu0 %3941  ;;  %v3949_v17 = vunpack.i.h.bf16 %v3947_v40  ;;  %vm7646_vm14 = vnez %v7645_v5 }
 0x3de   : > { %v1976_v30 = vsel %vm7636_vm0, %v3924_v19, %v3934_v58  ;;  %vm7641_vm11 = vmpackc.low %vm7638_vm9, %vm7640_vm3  ;;  %v3948_v19 = vunpack.i.l.bf16 %v3947_v40  ;;  %v3944_v54 = vunpack.i.h.bf16 %v3942_v9  ;;  %v3943_v8 = vunpack.i.l.bf16 %v3942_v9 }
 0x3df   : > { %3463 = vmatprep.subr.msk.bf16.mxu0 %vm7641_vm11, %v6460_v22  ;;  %vm7642_vm6 = vmmov %vm7636_vm0  ;;  %v3488_v46 = vpack.c.bf16 %v1996_v3, %v1976_v30  ;;  %vm7655_vm3 = vcmp.lt.s32.totalorder %v4511_v24, 57  ;;  %v7658_v3 = vld [vmem:[#allocation71_spill] sm:$0xff] }
 0x3e0   : > { %v1975_v35 = vsel %vm7642_vm6, %v3934_v58, %v3933_v52  ;;  %vm7643_vm15 = vmmov %vm7636_vm0  ;;  %v2037_v16 = vsel %vm7644_vm1, %v3948_v19, %v3949_v17  ;;  %v7650_v58 = vld [vmem:[#allocation70_spill] sm:$0xff]  ;;  %vm7659_vm6 = vnez %v7658_v3 }
 0x3e1   : > { %v1978_v28 = vsel %vm7643_vm15, %v3933_v52, %v3923_v62  ;;  %v3485_v18 = vpack.c.bf16 %v1995_v26, %v1975_v35  ;;  %vm7649_vm13 = vmpackc.low %vm7646_vm14, %vm7648_vm7  ;;  %vm7651_vm5 = vnez %v7650_v58  ;;  %v7652_v62 = vld [vmem:[#allocation69_spill] sm:$0xff]  ;;  %v2017_v52 = vsel %vm7655_vm3, %v3943_v8, %v3944_v54  ;;  %v7656_v26 = vld [vmem:[#allocation72_spill] sm:$0xff]  ;;  %v3952_v30 = vpop.permute.xlu0 %3951 }
 0x3e2   : > { %v3464_v10 = vpack.c.bf16 %v1998_v51, %v1978_v28  ;;  %vm7653_vm0 = vnez %v7652_v62  ;;  %vm7657_vm11 = vnez %v7656_v26  ;;  %v3957_v51 = vpop.permute.xlu1 %3956  ;;  %v3467_v60 = vpack.c.bf16 %v2037_v16, %v2017_v52  ;;  %vm7661_vm14 = vmmov %vm7644_vm1  ;;  %v7664_v3 = vld [vmem:[#allocation74_spill] sm:$0xff] }
 0x3e3   : > { %vm7654_vm9 = vmpackc.low %vm7651_vm5, %vm7653_vm0  ;;  %v3959_v35 = vunpack.i.h.bf16 %v3957_v51  ;;  %v3958_v28 = vunpack.i.l.bf16 %v3957_v51  ;;  %v3954_v40 = vunpack.i.h.bf16 %v3952_v30  ;;  %v3953_v9 = vunpack.i.l.bf16 %v3952_v30 }
 0x3e4   : > { %3466 = vmatpush1.bf16.msk.msra.mxu0 %vm7649_vm13, %v3464_v10  ;;  %3487 = vmatprep.subr.msk.bf16.mxu1 %vm7654_vm9, %v3485_v18  ;;  %vm7660_vm15 = vmpackc.low %vm7657_vm11, %vm7659_vm6  ;;  %vm7665_vm5 = vnez %v7664_v3  ;;  %vm7667_vm0 = vnez %v7666_v31  ;;  %vm7670_vm6 = vcmp.lt.s32.totalorder %v4511_v24, 55  ;;  %v7675_v31 = vld [vmem:[#allocation75_spill] sm:$0xff] }
 0x3e5   : > { %3490 = vmatpush1.bf16.msk.msra.mxu1 %vm7660_vm15, %v3488_v46  ;;  %v2035_v5 = vsel %vm7644_vm1, %v3959_v35, %v3958_v28  ;;  %v2036_v58 = vsel %vm7661_vm14, %v3949_v17, %v3959_v35  ;;  %vm7662_vm7 = vmmov %vm7644_vm1  ;;  %v2015_v16 = vsel %vm7655_vm3, %v3954_v40, %v3953_v9  ;;  %v2048_v30 = vpop.permute.xlu0 %2047  ;;  %vm7671_vm15 = vnez %v7270_v13  ;;  %v7697_v24 = vld [vmem:[#allocation79_spill] sm:$0xff] }
 0x3e6   : > { %v2038_v62 = vsel %vm7662_vm7, %v3958_v28, %v3948_v19  ;;  %vm7663_vm13 = vmmov %vm7655_vm3  ;;  %v2050_v17 = vpop.permute.xlu1 %2049  ;;  %v3491_v19 = vpack.c.bf16 %v2035_v5, %v2015_v16  ;;  %vm7672_vm1 = vnez %v7267_v59  ;;  %vm7674_vm7 = vnez %v7277_v63  ;;  %v7680_v28 = vld [vmem:[#allocation77_spill] sm:$0xff] }
 0x3e7   : > { %v2016_v26 = vsel %vm7663_vm13, %v3944_v54, %v3954_v40  ;;  %vm7668_vm9 = vmpackc.low %vm7665_vm5, %vm7667_vm0  ;;  %v2057_v54 = vsel %vm7670_vm6, %v2048_v30, %v2050_v17  ;;  %vm7676_vm13 = vnez %v7675_v31  ;;  %v7682_v40 = vld [vmem:[#allocation76_spill] sm:$0xff] }
 0x3e8   : > { %3469 = vmatprep.subr.msk.bf16.mxu0 %vm7668_vm9, %v3467_v60  ;;  %vm7669_vm11 = vmmov %vm7655_vm3  ;;  %v3494_v51 = vpack.c.bf16 %v2036_v58, %v2016_v26  ;;  %vm7681_vm9 = vnez %v7680_v28  ;;  %vm7683_vm3 = vnez %v7682_v40  ;;  %v2067_v58 = vld [vmem:[#allocation9] sm:$0xff] }
 0x3e9   : > { %v2018_v52 = vsel %vm7669_vm11, %v3953_v9, %v3943_v8  ;;  %vm7673_vm14 = vmpackc.low %vm7671_vm15, %vm7672_vm1  ;;  %v7678_v8 = vld [vmem:[#allocation78_spill] sm:$0xff]  ;;  %v2054_v9 = vpop.permute.xlu0 %2053 }
 0x3ea   : > { %v3470_v35 = vpack.c.bf16 %v2038_v62, %v2018_v52  ;;  %vm7677_vm5 = vmpackc.low %vm7674_vm7, %vm7676_vm13  ;;  %vm7679_vm0 = vnez %v7678_v8  ;;  %v2052_v13 = vpop.permute.xlu1 %2051  ;;  %vm7688_vm7 = vnez %v7324_v50  ;;  %vm7689_vm13 = vnez %v7338_v47  ;;  %v7746_v50 = vld [vmem:[#allocation88_spill] sm:$0xff]  ;;  %v7749_v47 = vld [vmem:[#allocation89_spill] sm:$0xff] }
 0x3eb   : > { %3493 = vmatprep.subr.msk.bf16.mxu1 %vm7677_vm5, %v3491_v19  ;;  %vm7684_vm11 = vmpackc.low %vm7681_vm9, %vm7683_vm3  ;;  %v2056_v59 = vsel %vm7670_vm6, %v2050_v17, %v2052_v13  ;;  %vm7690_vm5 = vnez %v7307_v25  ;;  %vm7693_vm3 = vcmask 588800   ;;  %v7739_v25 = vld [vmem:[#allocation85_spill] sm:$0xff] }
 0x3ec   : > { %3472 = vmatpush1.bf16.msk.msra.mxu0 %vm7673_vm14, %v3470_v35  ;;  %3496 = vmatpush1.bf16.msk.msra.mxu1 %vm7684_vm11, %v3494_v51  ;;  %vm7685_vm15 = vmmov %vm7670_vm6  ;;  %vm7687_vm14 = vnez %v7327_v0  ;;  %vm7694_vm11 = vnez %v7318_v53  ;;  %v7732_v0 = vld [vmem:[#allocation83_spill] sm:$0xff]  ;;  %v2669_v53 = vld [vmem:[#allocation9 + $0x10] sm:$0xff] }
 0x3ed   : > { %3201 = vmatprep.subr.msk.mxu0 %vm7679_vm0, %v2057_v54  ;;  %v2055_v63 = vsel %vm7685_vm15, %v2052_v13, %v2054_v9  ;;  %vm7686_vm1 = vmmov %vm7670_vm6  ;;  %vm7691_vm0 = vnez %v7305_v32  ;;  %vm7695_vm6 = vnez %v7316_v42  ;;  %v7737_v32 = vld [vmem:[#allocation86_spill] sm:$0xff]  ;;  %v7744_v42 = vld [vmem:[#allocation87_spill] sm:$0xff] }
 0x3ee   : > { %v2058_v5 = vsel %vm7686_vm1, %v2054_v9, %v2048_v30  ;;  %3219 = vmatprep.subr.msk.mxu1 %vm7687_vm14, %v2055_v63  ;;  %vm7692_vm9 = vmpackc.low %vm7690_vm5, %vm7691_vm0  ;;  %vm7698_vm1 = vnez %v7697_v24  ;;  %vm7699_vm14 = vnez %v7309_v27  ;;  %vm7702_vm5 = vnez %v7367_v39  ;;  %v7741_v27 = vld [vmem:[#allocation84_spill] sm:$0xff] }
 0x3ef   : > { %vm7696_vm15 = vmpackc.low %vm7694_vm11, %vm7695_vm6  ;;  %vm7703_vm0 = vnez %v7341_v14  ;;  %vm7706_vm11 = vnez %v7329_v29  ;;  %v7734_v29 = vld [vmem:[#allocation82_spill] sm:$0xff] }
 0x3f0   : > { %3202 = vmatpush1.msk.msra.mxu0 %vm7688_vm7, %v2058_v5  ;;  %3220 = vmatpush1.msk.msra.mxu1 %vm7689_vm13, %v2056_v59  ;;  %vm7700_vm7 = vmpackc.low %vm7698_vm1, %vm7699_vm14  ;;  %vm7709_vm1 = vnez %v7355_v20 }
 0x3f1   : > { %3499 = vmatprep.subr.msk.bf16.mxu0 %vm7692_vm9, %v6382_v38  ;;  %3038 = vmatmul.mubr.msk.f32.vlgmr.msra.gmra.mrb[2].mxu0 %vm7693_vm3, %v2067_v58  ;;  %vm7701_vm13 = vmmov %vm7693_vm3  ;;  %vm7705_vm3 = vnez %v7331_v21  ;;  %v7727_v21 = vld [vmem:[#allocation81_spill] sm:$0xff] }
 0x3f2   : > { %3523 = vmatprep.subr.msk.bf16.mxu1 %vm7696_vm15, %v6370_v11  ;;  %3502 = vmatpush1.bf16.msk.msra.mxu0 %vm7700_vm7, %v6348_v23  ;;  %vm7704_vm9 = vmpackc.low %vm7702_vm5, %vm7703_vm0  ;;  %vm7708_vm15 = vnez %v7369_v41  ;;  %vm7711_vm7 = vnez %v7378_v56  ;;  %vm7714_vm0 = vnez %v7385_v34 }
 0x3f3   : > { %3039 = vmatmul.mubr.msk.f32.vlgmr.msra.gmra.mrb[2].mxu1 %vm7701_vm13, %v2067_v58  ;;  %3505 = vmatprep.subr.msk.bf16.mxu0 %vm7704_vm9, %v6436_v57  ;;  %vm7707_vm6 = vmpackc.low %vm7705_vm3, %vm7706_vm11  ;;  %vm7712_vm13 = vnez %v7357_v37  ;;  %vm7715_vm9 = vnez %v7383_v45  ;;  %vm7717_vm11 = vnez %v7387_v33 }
 0x3f4   : > { %3526 = vmatpush1.bf16.msk.msra.mxu1 %vm7707_vm6, %v6372_v61  ;;  %vm7710_vm14 = vmpackc.low %vm7708_vm15, %vm7709_vm1  ;;  %2773 = vmatprep.mubr.f32.mxu0 %v7211_v1  ;;  %vm7719_vm15 = vnez %v7399_v49  ;;  %vm7720_vm1 = vnez %v7393_v12 }
 0x3f5   : > { %3529 = vmatprep.subr.msk.bf16.mxu1 %vm7710_vm14, %v6434_v2  ;;  %2844 = vmatprep.mubr.f32.mxu1 %v7211_v1  ;;  %vm7713_vm5 = vmpackc.low %vm7711_vm7, %vm7712_vm13  ;;  %vm7722_vm7 = vnez %v7406_v43  ;;  %v7729_v1 = vld [vmem:[#allocation80_spill] sm:$0xff] }
 0x3f6   : > { %3508 = vmatpush1.bf16.msk.msra.mxu0 %vm7713_vm5, %v6412_v4  ;;  %vm7716_vm3 = vmpackc.low %vm7714_vm0, %vm7715_vm9  ;;  %vm7728_vm9 = vnez %v7727_v21 }
 0x3f7   : > { %3511 = vmatprep.subr.msk.bf16.mxu0 %vm7716_vm3, %v3488_v46  ;;  %vm7718_vm6 = vmpackc.low %vm7413_vm10, %vm7717_vm11  ;;  %vm7725_vm10 = vnez %v7410_v7  ;;  %vm7730_vm3 = vnez %v7729_v1 }
 0x3f8   : > { %3532 = vmatpush1.bf16.msk.msra.mxu1 %vm7718_vm6, %v6432_v44  ;;  %vm7721_vm14 = vmpackc.low %vm7719_vm15, %vm7720_vm1  ;;  %vm7735_vm6 = vnez %v7734_v29 }
 0x3f9   : > { %3535 = vmatprep.subr.msk.bf16.mxu1 %vm7721_vm14, %v3464_v10  ;;  %vm7723_vm13 = vmpackc.low %vm5963_vm2, %vm7722_vm7  ;;  %vm7733_vm2 = vnez %v7732_v0  ;;  %vm7745_vm14 = vnez %v7744_v42  ;;  %vm7747_vm7 = vnez %v7746_v50 }
 0x3fa   : > { %3514 = vmatpush1.bf16.msk.msra.mxu0 %vm7723_vm13, %v6460_v22  ;;  %vm7724_vm5 = vmpackc.low %vm7433_vm8, %vm7432_vm4  ;;  %vm7738_vm8 = vnez %v7737_v32  ;;  %vm7740_vm4 = vnez %v7739_v25  ;;  %vm7748_vm13 = vcmask 588800  }
 0x3fb   : > { %3517 = vmatprep.subr.msk.bf16.mxu0 %vm7724_vm5, %v3494_v51  ;;  %vm7726_vm0 = vmpackc.low %vm5981_vm12, %vm7725_vm10  ;;  %vm7742_vm12 = vnez %v7741_v27  ;;  %vm7750_vm5 = vnez %v7749_v47 }
 0x3fc   : > { %3538 = vmatpush1.bf16.msk.msra.mxu1 %vm7726_vm0, %v3485_v18  ;;  %vm7731_vm11 = vmpackc.low %vm7728_vm9, %vm7730_vm3 }
 0x3fd   : > { %3541 = vmatprep.subr.msk.bf16.mxu1 %vm7731_vm11, %v3470_v35  ;;  %vm7736_vm15 = vmpackc.low %vm7733_vm2, %vm7735_vm6 }
 0x3fe   : > { %3520 = vmatpush1.bf16.msk.msra.mxu0 %vm7736_vm15, %v3467_v60  ;;  %vm7743_vm1 = vmpackc.low %vm7740_vm4, %vm7742_vm12 }
 0x3ff   : > { %3237 = vmatprep.subr.msk.mxu0 %vm7738_vm8, %v2056_v59  ;;  %vm7751_vm10 = vmmov %vm7748_vm13 }
 0x400   : > { %3544 = vmatpush1.bf16.msk.msra.mxu1 %vm7743_vm1, %v3491_v19 }
 0x401   : > { %3255 = vmatprep.subr.msk.mxu1 %vm7745_vm14, %v2058_v5 }
 0x402   : > { %3238 = vmatpush1.msk.msra.mxu0 %vm7747_vm7, %v2057_v54 }
 0x403   : > { %3040 = vmatmul.mubr.msk.f32.vlgmr.msra.gmra.mrb[2].mxu0 %vm7748_vm13, %v2669_v53 }
 0x404   : > { %3256 = vmatpush1.msk.msra.mxu1 %vm7750_vm5, %v2055_v63 }
 0x405   : > { %3041 = vmatmul.mubr.msk.f32.vlgmr.msra.gmra.mrb[2].mxu1 %vm7751_vm10, %v2669_v53 }
 0x4d6   : > { %v2775_v14 = vpop.f32.mrb[2].mxu0 }
 0x4d7   : > { %v2861_v20 = vmul.f32 %v2775_v14, %v2775_v14  ;;  %v2777_v37 = vpop.f32.mrb[3].mxu0 }
 0x4d8   : > { %v2846_v39 = vpop.f32.mrb[2].mxu1  ;;  %v2855_v41 = vadd.f32 %v2777_v37, %v2775_v14  ;;  %v2862_v56 = vmul.f32 %v2777_v37, %v2777_v37 }
 0x4d9   : > { %v2848_v45 = vpop.f32.mrb[3].mxu1  ;;  %v2863_v33 = vmul.f32 %v2846_v39, %v2846_v39 }
 0x4da   : > { %v2865_v34 = vadd.f32 %v2862_v56, %v2861_v20  ;;  %v2856_v36 = vadd.f32 %v2855_v41, %v2846_v39  ;;  %v2864_v12 = vmul.f32 %v2848_v45, %v2848_v45 }
 0x4dc   : > { %v2857_v49 = vadd.f32 %v2856_v36, %v2848_v45  ;;  %v2866_v43 = vadd.f32 %v2865_v34, %v2863_v33 }
 0x4de   : > { %2858 = vadd.xlane.f32.xlu0 %v2857_v49  ;;  %v2867_v55 = vadd.f32 %v2866_v43, %v2864_v12 }
 0x4e0   : > { %2868 = vadd.xlane.f32.xlu1 %v2867_v55 }
 0x56b   : > { %v2859_v7 = vpop.xlane.xlu0 %2858 }
 0x56c   : > { %v2860_v15 = vmul.f32 0.001953125, %v2859_v7 }
 0x56d   : > { %v2869_v48 = vpop.xlane.xlu1 %2868 }
 0x56e   : > { %v2870_v6 = vmul.f32 0.001953125, %v2869_v48  ;;  %v2871_v23 = vmul.f32 %v2860_v15, %v2860_v15  ;;  %v2873_v38 = vsub.f32 %v2775_v14, %v2860_v15  ;;  %v2874_v4 = vsub.f32 %v2777_v37, %v2860_v15 }
 0x56f   : > { %v2875_v44 = vsub.f32 %v2846_v39, %v2860_v15  ;;  %v2876_v2 = vsub.f32 %v2848_v45, %v2860_v15 }
 0x570   : > { %v2872_v11 = vsub.f32 %v2870_v6, %v2871_v23 }
 0x572   : > { %v2877_v61 = vadd.f32 1e-05, %v2872_v11 }
 0x574   : > { %3962 = vrsqrt.f32 %v2877_v61 }
 0x57e   : > { %v3963_v57 = vpop.eup %3962 }
 0x57f   : > { %v2879_v22 = vmul.f32 %v3963_v57, %v2873_v38  ;;  %v2880_v46 = vmul.f32 %v3963_v57, %v2874_v4  ;;  %v2881_v10 = vmul.f32 %v3963_v57, %v2875_v44  ;;  %v2882_v18 = vmul.f32 %v3963_v57, %v2876_v2 }
 0x581   : > { %vm2883_vm0 = vcmp.ge.f32.partialorder %v2879_v22, 0.0  ;;  %vm2884_vm9 = vcmp.ge.f32.partialorder %v2880_v46, 0.0  ;;  %vm2885_vm3 = vcmp.ge.f32.partialorder %v2881_v10, 0.0  ;;  %vm2886_vm11 = vcmp.ge.f32.partialorder %v2882_v18, 0.0 }
 0x582   : > { %v2887_v60 = vmul.f32 0.01, %v2879_v22  ;;  %v2888_v62 = vmul.f32 0.01, %v2880_v46  ;;  %v2889_v26 = vmul.f32 0.01, %v2881_v10 }
 0x583   : > { %v2890_v3 = vmul.f32 0.01, %v2882_v18 }
 0x584   : > { %v2891_v16 = vsel %vm2883_vm0, %v2879_v22, %v2887_v60  ;;  %v2892_v52 = vsel %vm2884_vm9, %v2880_v46, %v2888_v62  ;;  %v2893_v51 = vsel %vm2885_vm3, %v2881_v10, %v2889_v26 }
 0x585   : > { %v2894_v17 = vsel %vm2886_vm11, %v2882_v18, %v2890_v3  ;;  %2895 = vst [vmem:[%s255_s23] sm:$0xff] %v2891_v16  ;;  %2896 = vst [vmem:[%s255_s23 + $0x8] sm:$0xff] %v2892_v52 }
 0x586   : > { %2897 = vst [vmem:[%s255_s23 + $0x10] sm:$0xff] %v2893_v51  ;;  %2898 = vst [vmem:[%s255_s23 + $0x18] sm:$0xff] %v2894_v17 }
 0x587   : > { %4092 = shalt.err (!%p4089_p9)
}
 0x588   : > { %s4093_s20 = scalar_lea.hbm %s6655_s25, 512  ;;  %s4097_s5 = scalar_lea.hbm %s6704_s4, 1024 }
 0x589   : > { %p4094_p8 = scmp.ne.s32.totalorder %s6655_s25, %s4093_s20  ;;  %p4098_p6 = scmp.lt.u32.totalorder %s6655_s25, %s6704_s4 }
 0x58a   : > { %p4099_p10 = scmp.lt.u32.totalorder %s4097_s5, %s4093_s20  ;;  %p4101_p7 = scmp.lt.u32.totalorder %s4093_s20, %s6655_s25 }
 0x58b   : > { %p4095_p11 = pnand %p4094_p8, %p4362_p5 }
 0x58c   : > { %p4100_p3 = por %p4099_p10, %p4098_p6 }
 0x58d   : > { %p4096_p13 = pneg %p4095_p11 }
 0x58e   : > { %p4102_p12 = por %p4101_p7, %p4100_p3 }
 0x590   : > { %p4103_p1 = pnand %p4102_p12, %p4096_p13 }
 0x592   : > { %4106 = shalt.err (!%p4103_p1)
}
 0x593   : > { %3575 = dma.vmem_to_hbm [thread:$0]  (%p4362_p5), %s6657_s9, 512, %s6655_s25, %s2900_s8  }
 0x594 PF: > { %s2926_s28 = sand.u32 1, %s4145_s15   ;;  %p7753_p2 = scmp.ne.s32.totalorder %s6934_s22, 0 }
 0x595   : > { %p7754_p4 = scmp.ge.s32.totalorder %s4157_s18, 2  ;;  %s2927_s23 = scalar_lea.sflag [#allocation5], %s2926_s28 }
 0x597   : > { %p3592_p0 = pnand %p7754_p4, %p7753_p2 }
 0x599   : > { %4140 = dma.done.wait (!%p3592_p0), %s2927_s23, 512  }
 0x59a   : > { %4142 = vsyncadd (!%p3592_p0), %s2927_s23, 4294966784  ;;  %p19_p9 = scmp.ge.s32.totalorder %s4348_s26, 4   ;;  %s7755_s15 = smov %s4149_s16 }
 0x59b   : > { %s7756_s16 = smov %s4153_s17  ;;  %s7757_s17 = smov %s4358_s12 }
 0x59c   : > { %s7758_s18 = smov %s4348_s26  ;;  %21 = sbr.rel (!%p19_p9) target bundleno = 7 (0x7), region = 98 }
 0x5a3   :  { %2932 = vsyncpa [#allocation4], 1 }
 0x5a4   :  { %2934 = vsyncpa [#allocation4 + $0x1], 1 }
 0x5a5   :  { %2935 = vsyncpa [#allocation7], 1 }
 0x5a6   :  { %2937 = vsyncpa [#allocation7 + $0x1], 1 }
 0x5a7   :  { %2938 = vsyncpa [#allocation10], 1 }
 0x5a8   :  { %2939 = vsyncpa [#allocation5], 1 }
 0x5a9   :  { %2941 = vsyncpa [#allocation5 + $0x1], 1 }

</bundles_post_ra>
